<compile_context>
chip_gen: v7x
topology: tpu7x:2x2x1
jax: 0.10.0
libtpu: 0.0.40
codegen_flags: <defaults>
</compile_context>

<pallas_src>
import math
import functools

import jax
import jax.numpy as jnp
from jax.experimental import pallas as pl
from jax.experimental.pallas import tpu as pltpu

FEAT = 784          # 28*28
FEAT_PAD = 896      # 7*128
HID = 1024
NCLS = 10
NCLS_PAD = 128      # lane-dense logit slab


# -----------------------------------------------------------------------------
# Kernel: full IB-VAE forward for one batch tile.
#   encoder:  relu(x@W1+b1) -> relu(.@W2+b2) -> zp = .@W3+b3   (2k wide)
#   mu = zp[:, :k] ; std = softplus(zp[:, k:] - 5) ; z = mu + std*eps
#   decoder:  logit = z@W4+b4   (padded to 128 cols)
# Outputs: mustd (TB, 2k) = [mu | std] packed lane-dense, logit (TB, 128).
# -----------------------------------------------------------------------------
def _ib_vae_kernel(x_ref, w1_ref, b1_ref, w2_ref, b2_ref, w3_ref, b3_ref,
                   w4_ref, b4_ref, eps_ref, mustd_ref, logit_ref, *, k):
    # layer 1: Linear(896->1024) + ReLU   (bf16 MXU inputs, f32 accumulate)
    x = x_ref[...].astype(jnp.bfloat16)
    h1 = jnp.dot(x, w1_ref[...], preferred_element_type=jnp.float32) + b1_ref[...]
    h1 = jnp.maximum(h1, 0.0)

    # layer 2: Linear(1024->1024) + ReLU
    h2 = jnp.dot(h1.astype(jnp.bfloat16), w2_ref[...],
                 preferred_element_type=jnp.float32) + b2_ref[...]
    h2 = jnp.maximum(h2, 0.0)

    # fused encoder head: Linear(1024 -> 2k)
    zp = jnp.dot(h2.astype(jnp.bfloat16), w3_ref[...],
                 preferred_element_type=jnp.float32) + b3_ref[...]

    # softplus(zp - 5) over the full 2k width (stable form); select per column.
    pre = zp - 5.0
    sp = jnp.maximum(pre, 0.0) + jnp.log1p(jnp.exp(-jnp.abs(pre)))   # f32 on EUP
    col = jax.lax.broadcasted_iota(jnp.int32, zp.shape, 1)
    mustd_ref[...] = jnp.where(col < k, zp, sp)       # [mu | std], one dense store

    mu = zp[:, :k]
    std = sp[:, k:]

    # reparametrization: z = mu + std * eps  (eps ~ N(0,1) supplied by caller)
    z = mu + std * eps_ref[...]

    # decoder: Linear(k -> 10), padded to 128 output columns
    logit_ref[...] = jnp.dot(z.astype(jnp.bfloat16), w4_ref[...],
                             preferred_element_type=jnp.float32) + b4_ref[...]


# -----------------------------------------------------------------------------
# Parameter init, mirroring the PyTorch module __init__:
#   xavier_uniform_(weight, gain=calculate_gain('relu')) for every Linear,
#   bias.zero_().  PyTorch Linear weight is (out, in); we store (in, out).
# -----------------------------------------------------------------------------
def _xavier_uniform_t(key, fan_in, fan_out, gain):
    bound = gain * math.sqrt(6.0 / (fan_in + fan_out))
    w = jax.random.uniform(key, (fan_out, fan_in), minval=-bound, maxval=bound,
                           dtype=jnp.float32)
    return jnp.transpose(w)          # (in, out)


def init_params(key, k):
    gain = math.sqrt(2.0)            # nn.init.calculate_gain('relu'), all layers
    k1, k2, k3, k4 = jax.random.split(key, 4)
    return {
        "w1": _xavier_uniform_t(k1, FEAT, HID, gain),
        "b1": jnp.zeros((1, HID), jnp.float32),
        "w2": _xavier_uniform_t(k2, HID, HID, gain),
        "b2": jnp.zeros((1, HID), jnp.float32),
        "w3": _xavier_uniform_t(k3, HID, 2 * k, gain),
        "b3": jnp.zeros((1, 2 * k), jnp.float32),
        "w4": _xavier_uniform_t(k4, k, NCLS, gain),
        "b4": jnp.zeros((1, NCLS), jnp.float32),
    }


# -----------------------------------------------------------------------------
# One-time parameter preparation for the kernel:
#   - pad w1 K-dim 784->896 with zero rows, pad w4/b4 N-dim 10->128 zero cols
#   - cast weights to bfloat16 (biases stay f32)
# Done OUTSIDE the jitted forward so the cost is paid once, not per call.
# -----------------------------------------------------------------------------
def prepare_params(params, k):
    w1 = jnp.pad(params["w1"], ((0, FEAT_PAD - FEAT), (0, 0))).astype(jnp.bfloat16)
    w2 = params["w2"].astype(jnp.bfloat16)
    w3 = params["w3"].astype(jnp.bfloat16)
    w4 = jnp.pad(params["w4"], ((0, 0), (0, NCLS_PAD - NCLS))).astype(jnp.bfloat16)
    b4 = jnp.pad(params["b4"], ((0, 0), (0, NCLS_PAD - NCLS)))
    return {"w1": w1, "b1": params["b1"], "w2": w2, "b2": params["b2"],
            "w3": w3, "b3": params["b3"], "w4": w4, "b4": b4}


# -----------------------------------------------------------------------------
# Wrapper.  Returns ((mu, std), logit) with logit of shape (B, 10)
# — i.e. the module's `logit[0]` (single reparametrization sample).
# -----------------------------------------------------------------------------
@functools.partial(jax.jit, static_argnames=("k",))
def mnist_ib_vae_forward(x_nchw, prep, eps, *, k):
    B = x_nchw.shape[0]
    x = x_nchw.reshape(B, -1).astype(jnp.float32)              # (B, 784)
    x = jnp.pad(x, ((0, 0), (0, FEAT_PAD - x.shape[1])))       # (B, 896)

    # batch tiling: TB rows per grid step, batch padded to a multiple of TB
    if B <= 128:
        TB = ((B + 7) // 8) * 8
        B_pad = TB
    else:
        TB = 128
        B_pad = ((B + TB - 1) // TB) * TB
    if B_pad != B:
        x = jnp.pad(x, ((0, B_pad - B), (0, 0)))
        eps_p = jnp.pad(eps, ((0, B_pad - B), (0, 0)))
    else:
        eps_p = eps

    grid = (B_pad // TB,)
    const = lambda i: (0, 0)       # weights / biases: fetched once, reused

    mustd, logit_pad = pl.pallas_call(
        functools.partial(_ib_vae_kernel, k=k),
        grid=grid,
        in_specs=[
            pl.BlockSpec((TB, FEAT_PAD), lambda i: (i, 0)),     # x
            pl.BlockSpec((FEAT_PAD, HID), const),               # w1 (bf16)
            pl.BlockSpec((1, HID), const),                      # b1
            pl.BlockSpec((HID, HID), const),                    # w2 (bf16)
            pl.BlockSpec((1, HID), const),                      # b2
            pl.BlockSpec((HID, 2 * k), const),                  # w3 (bf16)
            pl.BlockSpec((1, 2 * k), const),                    # b3
            pl.BlockSpec((k, NCLS_PAD), const),                 # w4 (bf16, padded)
            pl.BlockSpec((1, NCLS_PAD), const),                 # b4 (padded)
            pl.BlockSpec((TB, k), lambda i: (i, 0)),            # eps
        ],
        out_specs=(
            pl.BlockSpec((TB, 2 * k), lambda i: (i, 0)),        # [mu | std]
            pl.BlockSpec((TB, NCLS_PAD), lambda i: (i, 0)),     # padded logits
        ),
        out_shape=(
            jax.ShapeDtypeStruct((B_pad, 2 * k), jnp.float32),
            jax.ShapeDtypeStruct((B_pad, NCLS_PAD), jnp.float32),
        ),
        compiler_params=pltpu.CompilerParams(
            dimension_semantics=("parallel",),
            vmem_limit_bytes=32 * 1024 * 1024,
        ),
    )(x, prep["w1"], prep["b1"], prep["w2"], prep["b2"],
      prep["w3"], prep["b3"], prep["w4"], prep["b4"], eps_p)

    mu = mustd[:B, :k]
    std = mustd[:B, k:]
    logit = logit_pad[:B, :NCLS]
    return (mu, std), logit


# -----------------------------------------------------------------------------
# Pure-JAX reference (same math, same bf16 params) for a sanity check.
# -----------------------------------------------------------------------------
def _reference(x_nchw, prep, eps, k):
    B = x_nchw.shape[0]
    x = x_nchw.reshape(B, -1).astype(jnp.float32)
    x = jnp.pad(x, ((0, 0), (0, FEAT_PAD - x.shape[1])))

    def dot(a, w, b):
        return jnp.dot(a.astype(jnp.bfloat16), w,
                       preferred_element_type=jnp.float32) + b

    h1 = jax.nn.relu(dot(x, prep["w1"], prep["b1"]))
    h2 = jax.nn.relu(dot(h1, prep["w2"], prep["b2"]))
    zp = dot(h2, prep["w3"], prep["b3"])
    mu = zp[:, :k]
    pre = zp[:, k:] - 5.0
    std = jnp.maximum(pre, 0.0) + jnp.log1p(jnp.exp(-jnp.abs(pre)))
    z = mu + std * eps
    logit = dot(z, prep["w4"], prep["b4"])[:, :NCLS]
    return (mu, std), logit


if __name__ == "__main__":
    K = 32            # latent size (paper uses 256; small here)
    B = 2             # batch
    key = jax.random.PRNGKey(0)
    k_x, k_p, k_eps = jax.random.split(key, 3)

    # MNIST-shaped NCHW input (B, 1, 28, 28) -> flattened to (B, 784)
    x = jax.random.uniform(k_x, (B, 1, 28, 28), dtype=jnp.float32)
    params = init_params(k_p, K)
    prep = prepare_params(params, K)
    # TODO(synk): utils.reparametrize draws eps ~ N(0,1) from torch's stateful
    # RNG; here eps is supplied explicitly for determinism.
    eps = jax.random.normal(k_eps, (B, K), dtype=jnp.float32)

    (mu, std), logit = mnist_ib_vae_forward(x, prep, eps, k=K)
    jax.block_until_ready((mu, std, logit))

    (mu_r, std_r), logit_r = _reference(x, prep, eps, K)
    assert mu.shape == (B, K) and std.shape == (B, K) and logit.shape == (B, NCLS)
    assert jnp.allclose(mu, mu_r, atol=1e-2, rtol=1e-2)
    assert jnp.allclose(std, std_r, atol=1e-2, rtol=1e-2)
    assert jnp.allclose(logit, logit_r, atol=1e-2, rtol=1e-2)

    print("KERNEL_OK")
</pallas_src>

<mosaic_0001>
module attributes {stable_mosaic.version = 11 : i64} {
  func.func @_ib_vae_kernel(%arg0: i32, %arg1: memref<8x896xf32, #tpu.memory_space<vmem>>, %arg2: memref<896x1024xbf16, #tpu.memory_space<vmem>>, %arg3: memref<1x1024xf32, #tpu.memory_space<vmem>>, %arg4: memref<1024x1024xbf16, #tpu.memory_space<vmem>>, %arg5: memref<1x1024xf32, #tpu.memory_space<vmem>>, %arg6: memref<1024x64xbf16, #tpu.memory_space<vmem>>, %arg7: memref<1x64xf32, #tpu.memory_space<vmem>>, %arg8: memref<32x128xbf16, #tpu.memory_space<vmem>>, %arg9: memref<1x128xf32, #tpu.memory_space<vmem>>, %arg10: memref<8x32xf32, #tpu.memory_space<vmem>>, %arg11: memref<8x64xf32, #tpu.memory_space<vmem>>, %arg12: memref<8x128xf32, #tpu.memory_space<vmem>>) attributes {dimension_semantics = [#tpu.dimension_semantics<parallel>], iteration_bounds = array<i64: 1>, scalar_prefetch = 0 : i64, scratch_operands = 0 : i64, tpu.core_type = #tpu.core_type<tc>, window_params = [{transform_indices = @transform_0, window_bounds = array<i64: 8, 896>}, {pipeline_mode = #tpu.pipeline_mode<synchronous>, transform_indices = @transform_1, window_bounds = array<i64: 896, 1024>}, {pipeline_mode = #tpu.pipeline_mode<synchronous>, transform_indices = @transform_2, window_bounds = array<i64: 1, 1024>}, {pipeline_mode = #tpu.pipeline_mode<synchronous>, transform_indices = @transform_3, window_bounds = array<i64: 1024, 1024>}, {pipeline_mode = #tpu.pipeline_mode<synchronous>, transform_indices = @transform_4, window_bounds = array<i64: 1, 1024>}, {pipeline_mode = #tpu.pipeline_mode<synchronous>, transform_indices = @transform_5, window_bounds = array<i64: 1024, 64>}, {pipeline_mode = #tpu.pipeline_mode<synchronous>, transform_indices = @transform_6, window_bounds = array<i64: 1, 64>}, {pipeline_mode = #tpu.pipeline_mode<synchronous>, transform_indices = @transform_7, window_bounds = array<i64: 32, 128>}, {pipeline_mode = #tpu.pipeline_mode<synchronous>, transform_indices = @transform_8, window_bounds = array<i64: 1, 128>}, {transform_indices = @transform_9, window_bounds = array<i64: 8, 32>}, {transform_indices = @transform_10, window_bounds = array<i64: 8, 64>}, {transform_indices = @transform_11, window_bounds = array<i64: 8, 128>}]} {
    %c0 = arith.constant 0 : index
    %c0_0 = arith.constant 0 : index
    %0 = vector.load %arg1[%c0, %c0_0] : memref<8x896xf32, #tpu.memory_space<vmem>>, vector<8x896xf32>
    %1 = arith.truncf %0 : vector<8x896xf32> to vector<8x896xbf16>
    %c0_1 = arith.constant 0 : index
    %c0_2 = arith.constant 0 : index
    %2 = vector.load %arg2[%c0_1, %c0_2] : memref<896x1024xbf16, #tpu.memory_space<vmem>>, vector<896x1024xbf16>
    %cst = arith.constant dense<0.000000e+00> : vector<8x1024xf32>
    %3 = tpu.matmul %1, %2, %cst {dimension_numbers = #tpu.dot_dimension_numbers<[1], [0], [0], [1], [0, 0, 1, 1], [], []>} : vector<8x896xbf16>, vector<896x1024xbf16>, vector<8x1024xf32> -> vector<8x1024xf32>
    %c0_3 = arith.constant 0 : index
    %c0_4 = arith.constant 0 : index
    %4 = vector.load %arg3[%c0_3, %c0_4] : memref<1x1024xf32, #tpu.memory_space<vmem>>, vector<1x1024xf32>
    %5 = vector.broadcast %4 : vector<1x1024xf32> to vector<8x1024xf32>
    %6 = arith.addf %3, %5 : vector<8x1024xf32>
    %cst_5 = arith.constant 0.000000e+00 : f32
    %7 = vector.broadcast %cst_5 : f32 to vector<8x1024xf32>
    %8 = arith.maximumf %6, %7 : vector<8x1024xf32>
    %9 = arith.truncf %8 : vector<8x1024xf32> to vector<8x1024xbf16>
    %c0_6 = arith.constant 0 : index
    %c0_7 = arith.constant 0 : index
    %10 = vector.load %arg4[%c0_6, %c0_7] : memref<1024x1024xbf16, #tpu.memory_space<vmem>>, vector<1024x1024xbf16>
    %cst_8 = arith.constant dense<0.000000e+00> : vector<8x1024xf32>
    %11 = tpu.matmul %9, %10, %cst_8 {dimension_numbers = #tpu.dot_dimension_numbers<[1], [0], [0], [1], [0, 0, 1, 1], [], []>} : vector<8x1024xbf16>, vector<1024x1024xbf16>, vector<8x1024xf32> -> vector<8x1024xf32>
    %c0_9 = arith.constant 0 : index
    %c0_10 = arith.constant 0 : index
    %12 = vector.load %arg5[%c0_9, %c0_10] : memref<1x1024xf32, #tpu.memory_space<vmem>>, vector<1x1024xf32>
    %13 = vector.broadcast %12 : vector<1x1024xf32> to vector<8x1024xf32>
    %14 = arith.addf %11, %13 : vector<8x1024xf32>
    %cst_11 = arith.constant 0.000000e+00 : f32
    %15 = vector.broadcast %cst_11 : f32 to vector<8x1024xf32>
    %16 = arith.maximumf %14, %15 : vector<8x1024xf32>
    %17 = arith.truncf %16 : vector<8x1024xf32> to vector<8x1024xbf16>
    %c0_12 = arith.constant 0 : index
    %c0_13 = arith.constant 0 : index
    %18 = vector.load %arg6[%c0_12, %c0_13] : memref<1024x64xbf16, #tpu.memory_space<vmem>>, vector<1024x64xbf16>
    %cst_14 = arith.constant dense<0.000000e+00> : vector<8x64xf32>
    %19 = tpu.matmul %17, %18, %cst_14 {dimension_numbers = #tpu.dot_dimension_numbers<[1], [0], [0], [1], [0, 0, 1, 1], [], []>} : vector<8x1024xbf16>, vector<1024x64xbf16>, vector<8x64xf32> -> vector<8x64xf32>
    %c0_15 = arith.constant 0 : index
    %c0_16 = arith.constant 0 : index
    %20 = vector.load %arg7[%c0_15, %c0_16] : memref<1x64xf32, #tpu.memory_space<vmem>>, vector<1x64xf32>
    %21 = vector.broadcast %20 : vector<1x64xf32> to vector<8x64xf32>
    %22 = arith.addf %19, %21 : vector<8x64xf32>
    %cst_17 = arith.constant 5.000000e+00 : f32
    %23 = vector.broadcast %cst_17 : f32 to vector<8x64xf32>
    %24 = arith.subf %22, %23 : vector<8x64xf32>
    %cst_18 = arith.constant 0.000000e+00 : f32
    %25 = vector.broadcast %cst_18 : f32 to vector<8x64xf32>
    %26 = arith.maximumf %24, %25 : vector<8x64xf32>
    %27 = math.absf %24 : vector<8x64xf32>
    %cst_19 = arith.constant 0.000000e+00 : f32
    %28 = vector.broadcast %cst_19 : f32 to vector<8x64xf32>
    %29 = arith.subf %28, %27 : vector<8x64xf32>
    %30 = math.exp %29 : vector<8x64xf32>
    %31 = math.log1p %30 : vector<8x64xf32>
    %32 = arith.addf %26, %31 : vector<8x64xf32>
    %33 = tpu.iota {dimensions = array<i32: 1>} : vector<8x64xi32>
    %c32_i32 = arith.constant 32 : i32
    %34 = vector.broadcast %c32_i32 : i32 to vector<8x64xi32>
    %35 = arith.cmpi slt, %33, %34 : vector<8x64xi32>
    %36 = arith.select %35, %22, %32 : vector<8x64xi1>, vector<8x64xf32>
    %c0_20 = arith.constant 0 : index
    %c0_21 = arith.constant 0 : index
    %37 = vector.load %arg11[%c0_20, %c0_21] : memref<8x64xf32, #tpu.memory_space<vmem>>, vector<8x64xf32>
    tpu.vector_store %arg11[%c0_20, %c0_21], %36 {strides = array<i32>} : memref<8x64xf32, #tpu.memory_space<vmem>>, vector<8x64xf32>,
    %38 = vector.extract_strided_slice %22 {offsets = [0, 0], sizes = [8, 32], strides = [1, 1]} : vector<8x64xf32> to vector<8x32xf32>
    %39 = vector.extract_strided_slice %32 {offsets = [0, 32], sizes = [8, 32], strides = [1, 1]} : vector<8x64xf32> to vector<8x32xf32>
    %c0_22 = arith.constant 0 : index
    %c0_23 = arith.constant 0 : index
    %40 = vector.load %arg10[%c0_22, %c0_23] : memref<8x32xf32, #tpu.memory_space<vmem>>, vector<8x32xf32>
    %41 = arith.mulf %39, %40 : vector<8x32xf32>
    %42 = arith.addf %38, %41 : vector<8x32xf32>
    %43 = arith.truncf %42 : vector<8x32xf32> to vector<8x32xbf16>
    %c0_24 = arith.constant 0 : index
    %c0_25 = arith.constant 0 : index
    %44 = vector.load %arg8[%c0_24, %c0_25] : memref<32x128xbf16, #tpu.memory_space<vmem>>, vector<32x128xbf16>
    %cst_26 = arith.constant dense<0.000000e+00> : vector<8x128xf32>
    %45 = tpu.matmul %43, %44, %cst_26 {dimension_numbers = #tpu.dot_dimension_numbers<[1], [0], [0], [1], [0, 0, 1, 1], [], []>} : vector<8x32xbf16>, vector<32x128xbf16>, vector<8x128xf32> -> vector<8x128xf32>
    %c0_27 = arith.constant 0 : index
    %c0_28 = arith.constant 0 : index
    %46 = vector.load %arg9[%c0_27, %c0_28] : memref<1x128xf32, #tpu.memory_space<vmem>>, vector<1x128xf32>
    %47 = vector.broadcast %46 : vector<1x128xf32> to vector<8x128xf32>
    %48 = arith.addf %45, %47 : vector<8x128xf32>
    %c0_29 = arith.constant 0 : index
    %c0_30 = arith.constant 0 : index
    %49 = vector.load %arg12[%c0_29, %c0_30] : memref<8x128xf32, #tpu.memory_space<vmem>>, vector<8x128xf32>
    tpu.vector_store %arg12[%c0_29, %c0_30], %48 {strides = array<i32>} : memref<8x128xf32, #tpu.memory_space<vmem>>, vector<8x128xf32>,
    return
  }
  func.func @transform_0(%arg0: i32) -> (i32, i32) {
    %c0_i32 = arith.constant 0 : i32
    %c0_i32_0 = arith.constant 0 : i32
    return %arg0, %c0_i32 : i32, i32
  }
  func.func @transform_1(%arg0: i32) -> (i32, i32) {
    %c0_i32 = arith.constant 0 : i32
    %c0_i32_0 = arith.constant 0 : i32
    %c0_i32_1 = arith.constant 0 : i32
    return %c0_i32, %c0_i32_0 : i32, i32
  }
  func.func @transform_2(%arg0: i32) -> (i32, i32) {
    %c0_i32 = arith.constant 0 : i32
    %c0_i32_0 = arith.constant 0 : i32
    %c0_i32_1 = arith.constant 0 : i32
    return %c0_i32, %c0_i32_0 : i32, i32
  }
  func.func @transform_3(%arg0: i32) -> (i32, i32) {
    %c0_i32 = arith.constant 0 : i32
    %c0_i32_0 = arith.constant 0 : i32
    %c0_i32_1 = arith.constant 0 : i32
    return %c0_i32, %c0_i32_0 : i32, i32
  }
  func.func @transform_4(%arg0: i32) -> (i32, i32) {
    %c0_i32 = arith.constant 0 : i32
    %c0_i32_0 = arith.constant 0 : i32
    %c0_i32_1 = arith.constant 0 : i32
    return %c0_i32, %c0_i32_0 : i32, i32
  }
  func.func @transform_5(%arg0: i32) -> (i32, i32) {
    %c0_i32 = arith.constant 0 : i32
    %c0_i32_0 = arith.constant 0 : i32
    %c0_i32_1 = arith.constant 0 : i32
    return %c0_i32, %c0_i32_0 : i32, i32
  }
  func.func @transform_6(%arg0: i32) -> (i32, i32) {
    %c0_i32 = arith.constant 0 : i32
    %c0_i32_0 = arith.constant 0 : i32
    %c0_i32_1 = arith.constant 0 : i32
    return %c0_i32, %c0_i32_0 : i32, i32
  }
  func.func @transform_7(%arg0: i32) -> (i32, i32) {
    %c0_i32 = arith.constant 0 : i32
    %c0_i32_0 = arith.constant 0 : i32
    %c0_i32_1 = arith.constant 0 : i32
    return %c0_i32, %c0_i32_0 : i32, i32
  }
  func.func @transform_8(%arg0: i32) -> (i32, i32) {
    %c0_i32 = arith.constant 0 : i32
    %c0_i32_0 = arith.constant 0 : i32
    %c0_i32_1 = arith.constant 0 : i32
    return %c0_i32, %c0_i32_0 : i32, i32
  }
  func.func @transform_9(%arg0: i32) -> (i32, i32) {
    %c0_i32 = arith.constant 0 : i32
    %c0_i32_0 = arith.constant 0 : i32
    return %arg0, %c0_i32 : i32, i32
  }
  func.func @transform_10(%arg0: i32) -> (i32, i32) {
    %c0_i32 = arith.constant 0 : i32
    %c0_i32_0 = arith.constant 0 : i32
    return %arg0, %c0_i32 : i32, i32
  }
  func.func @transform_11(%arg0: i32) -> (i32, i32) {
    %c0_i32 = arith.constant 0 : i32
    %c0_i32_0 = arith.constant 0 : i32
    return %arg0, %c0_i32 : i32, i32
  }
}

</mosaic_0001>

<bundles_post_ra>
// kernel: mnist_ib_vae_forward.1
= control target key start
LH: loop header
LB: loop body
LE: loop exit
PB: predicated region body
PF: predicated region fallthrough
CT: control target
= control target key end

     0   :  { %17 = vsyncpa [#allocation3], 0  ;;  %s10177_s0 = inlined_call_operand.vmem [shape: f32[8,896], index: 0, kind: input, shape index: {}]   ;;  %s10178_s1 = inlined_call_operand.hbm [shape: bf16[896,1024], index: 1, kind: input, shape index: {}]   ;;  %s10179_s2 = inlined_call_operand.hbm [shape: f32[1,1024], index: 2, kind: input, shape index: {}]   ;;  %s10180_s3 = inlined_call_operand.hbm [shape: bf16[1024,1024], index: 3, kind: input, shape index: {}]   ;;  %s10181_s4 = inlined_call_operand.hbm [shape: f32[1,1024], index: 4, kind: input, shape index: {}]   ;;  %s10182_s5 = inlined_call_operand.vmem [shape: bf16[1024,64], index: 5, kind: input, shape index: {}]   ;;  %s10183_s6 = inlined_call_operand.hbm [shape: f32[1,64], index: 6, kind: input, shape index: {}]   ;;  %s10184_s7 = inlined_call_operand.hbm [shape: bf16[32,128], index: 7, kind: input, shape index: {}]   ;;  %s10185_s8 = inlined_call_operand.hbm [shape: f32[1,128], index: 8, kind: input, shape index: {}]   ;;  %s10186_s9 = inlined_call_operand.vmem [shape: f32[8,32], index: 9, kind: input, shape index: {}]   ;;  %s10187_s10 = inlined_call_operand.vmem [shape: f32[8,64], index: 10, kind: output, shape index: {0}]   ;;  %s10188_s11 = inlined_call_operand.vmem [shape: f32[8,128], index: 11, kind: output, shape index: {1}]  }
   0x1   :  { %18 = vsyncpa [#allocation5], 0 }
   0x2   :  { %19 = vsyncpa [#allocation8], 0 }
   0x3   :  { %20 = vsyncpa [#allocation11], 0  ;;  %s9609_s17 = smov [#allocation4]   ;;  %s9610_s19 = smov [#allocation7]  }
   0x4   :  { %s41_s18 = sshll.u32 %s9609_s17, 4  ;;  %s63_s20 = sshll.u32 %s9610_s19, 4  ;;  %s42_s18 = int_to_ptr.vmem [resolvable:$true] %s41_s18  ;;  %s64_s20 = int_to_ptr.vmem [resolvable:$true] %s63_s20 }
   0x5   :  { %s9447_s23 = scalar_lea.hbm %s10179_s2, 128 }
   0x6   :  { %p9448_p0 = scmp.ne.s32.totalorder %s10179_s2, %s9447_s23  ;;  %p9451_p1 = scmp.lt.u32.totalorder %s9447_s23, %s10179_s2 }
   0x8   :  { %p9453_p2 = pnand %p9451_p1, %p9448_p0 }
   0xa   :  { %9456 = shalt.err (!%p9453_p2)
}
   0xb   :  { %s9457_s28 = scalar_lea.vmem %s42_s18, 128  ;;  %p9462_p4 = scmp.lt.s32.totalorder %s42_s18, %s42_s18 }
   0xc   :  { %p9458_p3 = scmp.ne.s32.totalorder %s42_s18, %s9457_s28  ;;  %p9463_p5 = scmp.lt.s32.totalorder %s9457_s28, %s9457_s28 }
   0xe   :  { %p9464_p6 = por %p9463_p5, %p9462_p4 }
  0x10   :  { %p9465_p7 = pnand %p9464_p6, %p9458_p3 }
  0x12   :  { %9468 = shalt.err (!%p9465_p7)
}
  0x13   :  { %44 = dma.hbm_to_vmem [thread:$0]  %s10179_s2, 128, %s42_s18, [#allocation5]  }
  0x14   :  { %s9469_s14 = scalar_lea.hbm %s10181_s4, 128 }
  0x15   :  { %p9470_p8 = scmp.ne.s32.totalorder %s10181_s4, %s9469_s14  ;;  %p9473_p9 = scmp.lt.u32.totalorder %s9469_s14, %s10181_s4 }
  0x17   :  { %p9475_p10 = pnand %p9473_p9, %p9470_p8 }
  0x19   :  { %9478 = shalt.err (!%p9475_p10)
}
  0x1a   :  { %s9479_s21 = scalar_lea.vmem %s64_s20, 128  ;;  %p9484_p12 = scmp.lt.s32.totalorder %s64_s20, %s64_s20 }
  0x1b   :  { %p9480_p11 = scmp.ne.s32.totalorder %s64_s20, %s9479_s21  ;;  %p9485_p13 = scmp.lt.s32.totalorder %s9479_s21, %s9479_s21 }
  0x1d   :  { %p9486_p0 = por %p9485_p13, %p9484_p12 }
  0x1f   :  { %p9487_p1 = pnand %p9486_p0, %p9480_p11 }
  0x21   :  { %9490 = shalt.err (!%p9487_p1)
}
  0x22   :  { %66 = dma.hbm_to_vmem [thread:$0]  %s10181_s4, 128, %s64_s20, [#allocation8]  }
  0x23   :  { %s9611_s22 = smov [#allocation10]   ;;  %s9491_s26 = scalar_lea.hbm %s10184_s7, 256 }
  0x24   :  { %s84_s23 = sshll.u32 %s9611_s22, 4  ;;  %p9492_p2 = scmp.ne.s32.totalorder %s10184_s7, %s9491_s26  ;;  %s85_s23 = int_to_ptr.vmem [resolvable:$true] %s84_s23 }
  0x25   :  { %p9495_p3 = scmp.lt.u32.totalorder %s9491_s26, %s10184_s7 }
  0x27   :  { %p9497_p4 = pnand %p9495_p3, %p9492_p2 }
  0x29   :  { %9500 = shalt.err (!%p9497_p4)
}
  0x2a   :  { %s9501_s12 = scalar_lea.vmem %s85_s23, 256  ;;  %p9506_p6 = scmp.lt.s32.totalorder %s85_s23, %s85_s23 }
  0x2b   :  { %p9502_p5 = scmp.ne.s32.totalorder %s85_s23, %s9501_s12  ;;  %p9507_p7 = scmp.lt.s32.totalorder %s9501_s12, %s9501_s12 }
  0x2d   :  { %p9508_p8 = por %p9507_p7, %p9506_p6 }
  0x2f   :  { %p9509_p9 = pnand %p9508_p8, %p9502_p5 }
  0x31   :  { %9512 = shalt.err (!%p9509_p9)
}
  0x32   :  { %s9612_s4 = smov 64   ;;  %s9613_s20 = smov 4  }
  0x33   :  { %90 = dma.hbm_to_vmem [thread:$0]  %s10184_s7, 256, %s85_s23, [#allocation11], %s9612_s4, %s9612_s4, %s9613_s20  }
  0x34   :  { %s9614_s15 = smov [#allocation2]   ;;  %s9513_s21 = scalar_lea.hbm %s10178_s1, 57344 }
  0x35   :  { %s28_s16 = sshll.u32 %s9614_s15, 4  ;;  %p9514_p10 = scmp.ne.s32.totalorder %s10178_s1, %s9513_s21  ;;  %s29_s16 = int_to_ptr.vmem [resolvable:$true] %s28_s16 }
  0x36   :  { %p9517_p11 = scmp.lt.u32.totalorder %s9513_s21, %s10178_s1 }
  0x38   :  { %p9519_p12 = pnand %p9517_p11, %p9514_p10 }
  0x3a   :  { %9522 = shalt.err (!%p9519_p12)
}
  0x3b   :  { %s9523_s25 = scalar_lea.vmem %s29_s16, 57344  ;;  %p9528_p0 = scmp.lt.s32.totalorder %s29_s16, %s29_s16 }
  0x3c   :  { %p9524_p13 = scmp.ne.s32.totalorder %s29_s16, %s9523_s25  ;;  %p9529_p1 = scmp.lt.s32.totalorder %s9523_s25, %s9523_s25 }
  0x3e   :  { %p9530_p2 = por %p9529_p1, %p9528_p0 }
  0x40   :  { %p9531_p3 = pnand %p9530_p2, %p9524_p13 }
  0x42   :  { %9534 = shalt.err (!%p9531_p3)
}
  0x43   :  { %s9615_s7 = smov 512   ;;  %s9616_s23 = smov 32  }
  0x44   :  { %34 = dma.hbm_to_vmem [thread:$0]  %s10178_s1, 57344, %s29_s16, [#allocation3], %s9615_s7, %s9615_s7, %s9616_s23  }
  0x45   :  { %s9617_s28 = smov [#allocation6]   ;;  %s9618_s30 = smov [#allocation9]  }
  0x46   :  { %s50_s29 = sshll.u32 %s9617_s28, 4  ;;  %s75_s12 = sshll.u32 %s9618_s30, 4  ;;  %s51_s29 = int_to_ptr.vmem [resolvable:$true] %s50_s29  ;;  %s76_s12 = int_to_ptr.vmem [resolvable:$true] %s75_s12 }
  0x47   :  { %s9535_s13 = scalar_lea.hbm %s10180_s3, 65536 }
  0x48   :  { %p9536_p4 = scmp.ne.s32.totalorder %s10180_s3, %s9535_s13  ;;  %p9539_p5 = scmp.lt.u32.totalorder %s9535_s13, %s10180_s3 }
  0x4a   :  { %p9541_p6 = pnand %p9539_p5, %p9536_p4 }
  0x4c   :  { %9544 = shalt.err (!%p9541_p6)
}
  0x4d   :  { %s9545_s1 = scalar_lea.vmem %s51_s29, 65536  ;;  %p9550_p8 = scmp.lt.s32.totalorder %s51_s29, %s51_s29 }
  0x4e   :  { %p9546_p7 = scmp.ne.s32.totalorder %s51_s29, %s9545_s1  ;;  %p9551_p9 = scmp.lt.s32.totalorder %s9545_s1, %s9545_s1 }
  0x50   :  { %p9552_p10 = por %p9551_p9, %p9550_p8 }
  0x52   :  { %p9553_p11 = pnand %p9552_p10, %p9546_p7 }
  0x54   :  { %9556 = shalt.err (!%p9553_p11)
}
  0x55   :  { %56 = dma.hbm_to_vmem [thread:$0]  %s10180_s3, 65536, %s51_s29, [#allocation5], %s9615_s7, %s9615_s7, %s9616_s23  }
  0x56   :  { %s9557_s22 = scalar_lea.hbm %s10183_s6, 16 }
  0x57   :  { %p9558_p12 = scmp.ne.s32.totalorder %s10183_s6, %s9557_s22  ;;  %p9561_p13 = scmp.lt.u32.totalorder %s9557_s22, %s10183_s6 }
  0x59   :  { %p9563_p0 = pnand %p9561_p13, %p9558_p12 }
  0x5b   :  { %9566 = shalt.err (!%p9563_p0)
}
  0x5c   :  { %s9567_s28 = scalar_lea.vmem %s76_s12, 16  ;;  %s9571_s30 = scalar_lea.vmem %s76_s12, 32 }
  0x5d   :  { %p9568_p1 = scmp.ne.s32.totalorder %s76_s12, %s9567_s28  ;;  %p9572_p2 = scmp.lt.s32.totalorder %s76_s12, %s76_s12 }
  0x5e   :  { %p9573_p3 = scmp.lt.s32.totalorder %s9571_s30, %s9567_s28 }
  0x60   :  { %p9574_p4 = por %p9573_p3, %p9572_p2 }
  0x62   :  { %p9575_p5 = pnand %p9574_p4, %p9568_p1 }
  0x64   :  { %9578 = shalt.err (!%p9575_p5)
}
  0x65   :  { %78 = dma.hbm_to_vmem [thread:$0]  %s10183_s6, 16, %s76_s12, [#allocation8]  }
  0x66   :  { %s9619_s29 = smov [#allocation12]   ;;  %s9579_s14 = scalar_lea.hbm %s10185_s8, 16 }
  0x67   :  { %s97_s4 = sshll.u32 %s9619_s29, 4  ;;  %p9580_p6 = scmp.ne.s32.totalorder %s10185_s8, %s9579_s14  ;;  %s98_s4 = int_to_ptr.vmem [resolvable:$true] %s97_s4 }
  0x68   :  { %p9583_p7 = scmp.lt.u32.totalorder %s9579_s14, %s10185_s8 }
  0x6a   :  { %p9585_p8 = pnand %p9583_p7, %p9580_p6 }
  0x6c   :  { %9588 = shalt.err (!%p9585_p8)
}
  0x6d   :  { %s9589_s16 = scalar_lea.vmem %s98_s4, 16  ;;  %s9593_s6 = scalar_lea.vmem %s98_s4, 32 }
  0x6e   :  { %p9590_p9 = scmp.ne.s32.totalorder %s98_s4, %s9589_s16  ;;  %p9594_p10 = scmp.lt.s32.totalorder %s98_s4, %s98_s4 }
  0x6f   :  { %p9595_p11 = scmp.lt.s32.totalorder %s9593_s6, %s9589_s16 }
  0x71   :  { %p9596_p12 = por %p9595_p11, %p9594_p10 }
  0x73   :  { %p9597_p13 = pnand %p9596_p12, %p9590_p9 }
  0x75   :  { %9600 = shalt.err (!%p9597_p13)
}
  0x76   :  { %100 = dma.hbm_to_vmem [thread:$0]  %s10185_s8, 16, %s98_s4, [#allocation11]  }
  0x77   :  { %9601 = dma.done.wait [#allocation3], 57344  }
  0x78   :  { %9602 = vsyncadd [#allocation3], 4294909952 }
  0x79   :  { %9603 = dma.done.wait [#allocation5], 65664  }
  0x7a   :  { %9604 = vsyncadd [#allocation5], 4294901632 }
  0x7b   :  { %9605 = dma.done.wait [#allocation8], 144  }
  0x7c   :  { %9606 = vsyncadd [#allocation8], 4294967152 }
  0x7d   :  { %9607 = dma.done.wait [#allocation11], 272  }
  0x7e   :  { %9608 = vsyncadd [#allocation11], 4294967024  ;;  %v139_v0 = vld [vmem:[#allocation2] sm:$0xff]  ;;  %v140_v2 = vld [vmem:[#allocation2 + $0x8] sm:$0xff]  ;;  %vm9622_vm0 = vmmov 0   ;;  %vm8026_vm3 = vcmask 523264  }
  0x7f   :  { %v143_v1 = vld [vmem:[#allocation2 + $0x20] sm:$0xff]  ;;  %v144_v4 = vld [vmem:[#allocation2 + $0x28] sm:$0xff]  ;;  %vm8063_vm4 = vcmask 261120  }
  0x80   :  { %v8121_v3 = vcombine.high %v139_v0, %v143_v1  ;;  %v8120_v5 = vcombine.low %v139_v0, %v143_v1  ;;  %v147_v6 = vld [vmem:[#allocation2 + $0x40] sm:$0xff]  ;;  %v8123_v8 = vcombine.high %v140_v2, %v144_v4  ;;  %v8122_v9 = vcombine.low %v140_v2, %v144_v4  ;;  %v148_v11 = vld [vmem:[#allocation2 + $0x48] sm:$0xff] }
  0x81   :  { %v151_v7 = vld [vmem:[#allocation2 + $0x60] sm:$0xff]  ;;  %v152_v12 = vld [vmem:[#allocation2 + $0x68] sm:$0xff] }
  0x82   :  { %v8129_v10 = vcombine.high %v147_v6, %v151_v7  ;;  %v155_v13 = vld [vmem:[#allocation2 + $0x80] sm:$0xff]  ;;  %2869 = vmatprep.subr.bf16.mxu0 %v8121_v3  ;;  %v8131_v14 = vcombine.high %v148_v11, %v152_v12  ;;  %v156_v16 = vld [vmem:[#allocation2 + $0x88] sm:$0xff]  ;;  %3033 = vmatprep.subr.bf16.mxu1 %v8123_v8  ;;  %v8128_v18 = vcombine.low %v147_v6, %v151_v7 }
  0x83   :  { %v159_v15 = vld [vmem:[#allocation2 + $0xa0] sm:$0xff]  ;;  %v160_v17 = vld [vmem:[#allocation2 + $0xa8] sm:$0xff]  ;;  %2870 = vmatpush1.bf16.msra.mxu0 %v8120_v5  ;;  %3034 = vmatpush1.bf16.msra.mxu1 %v8122_v9  ;;  %v8130_v19 = vcombine.low %v148_v11, %v152_v12 }
  0x84   :  { %2871 = vmatprep.subr.bf16.mxu0 %v8129_v10  ;;  %v8137_v20 = vcombine.high %v155_v13, %v159_v15  ;;  %3035 = vmatprep.subr.bf16.mxu1 %v8131_v14  ;;  %v8139_v21 = vcombine.high %v156_v16, %v160_v17  ;;  %v163_v22 = vld [vmem:[#allocation2 + $0xc0] sm:$0xff]  ;;  %v164_v24 = vld [vmem:[#allocation2 + $0xc8] sm:$0xff]  ;;  %v8136_v26 = vcombine.low %v155_v13, %v159_v15 }
  0x85   :  { %v167_v23 = vld [vmem:[#allocation2 + $0xe0] sm:$0xff]  ;;  %v168_v25 = vld [vmem:[#allocation2 + $0xe8] sm:$0xff]  ;;  %v8138_v27 = vcombine.low %v156_v16, %v160_v17 }
  0x86   :  { %v8145_v28 = vcombine.high %v163_v22, %v167_v23  ;;  %v8147_v29 = vcombine.high %v164_v24, %v168_v25  ;;  %v171_v30 = vld [vmem:[#allocation2 + $0x100] sm:$0xff]  ;;  %v172_v32 = vld [vmem:[#allocation2 + $0x108] sm:$0xff]  ;;  %v8144_v34 = vcombine.low %v163_v22, %v167_v23  ;;  %v8146_v35 = vcombine.low %v164_v24, %v168_v25 }
  0x87   :  { %2872 = vmatpush1.bf16.msra.mxu0 %v8128_v18  ;;  %3036 = vmatpush1.bf16.msra.mxu1 %v8130_v19  ;;  %v175_v31 = vld [vmem:[#allocation2 + $0x120] sm:$0xff]  ;;  %v176_v33 = vld [vmem:[#allocation2 + $0x128] sm:$0xff] }
  0x88   :  { %2873 = vmatprep.subr.bf16.mxu0 %v8137_v20  ;;  %3037 = vmatprep.subr.bf16.mxu1 %v8139_v21  ;;  %v8153_v36 = vcombine.high %v171_v30, %v175_v31  ;;  %v8155_v37 = vcombine.high %v172_v32, %v176_v33  ;;  %v179_v38 = vld [vmem:[#allocation2 + $0x140] sm:$0xff]  ;;  %v180_v40 = vld [vmem:[#allocation2 + $0x148] sm:$0xff]  ;;  %v8152_v42 = vcombine.low %v171_v30, %v175_v31 }
  0x89   :  { %v183_v39 = vld [vmem:[#allocation2 + $0x160] sm:$0xff]  ;;  %v184_v41 = vld [vmem:[#allocation2 + $0x168] sm:$0xff]  ;;  %v8154_v43 = vcombine.low %v172_v32, %v176_v33 }
  0x8a   :  { %v8161_v44 = vcombine.high %v179_v38, %v183_v39  ;;  %v8163_v45 = vcombine.high %v180_v40, %v184_v41  ;;  %v187_v46 = vld [vmem:[#allocation2 + $0x180] sm:$0xff]  ;;  %v188_v48 = vld [vmem:[#allocation2 + $0x188] sm:$0xff]  ;;  %v8160_v50 = vcombine.low %v179_v38, %v183_v39  ;;  %v8162_v51 = vcombine.low %v180_v40, %v184_v41 }
  0x8b   :  { %2874 = vmatpush1.bf16.msra.mxu0 %v8136_v26  ;;  %3038 = vmatpush1.bf16.msra.mxu1 %v8138_v27  ;;  %v191_v47 = vld [vmem:[#allocation2 + $0x1a0] sm:$0xff]  ;;  %v192_v49 = vld [vmem:[#allocation2 + $0x1a8] sm:$0xff] }
  0x8c   :  { %2875 = vmatprep.subr.bf16.mxu0 %v8145_v28  ;;  %3039 = vmatprep.subr.bf16.mxu1 %v8147_v29  ;;  %v8169_v52 = vcombine.high %v187_v46, %v191_v47  ;;  %v126_v53 = vld [vmem:[%s10177_s0 + $0x8] sm:$0xff]  ;;  %v8171_v54 = vcombine.high %v188_v48, %v192_v49  ;;  %v195_v55 = vld [vmem:[#allocation2 + $0x1c0] sm:$0xff]  ;;  %v8168_v60 = vcombine.low %v187_v46, %v191_v47 }
  0x8d   :  { %v199_v56 = vld [vmem:[#allocation2 + $0x1e0] sm:$0xff]  ;;  %v9773_v57 = vpack.c.bf16 %v126_v53, %v126_v53  ;;  %v196_v58 = vld [vmem:[#allocation2 + $0x1c8] sm:$0xff]  ;;  %v8170_v61 = vcombine.low %v188_v48, %v192_v49 }
  0x8e   :  { %v200_v59 = vld [vmem:[#allocation2 + $0x1e8] sm:$0xff]  ;;  %v8177_v62 = vcombine.high %v195_v55, %v199_v56  ;;  %v203_v0 = vld [vmem:[#allocation2 + $0x200] sm:$0xff]  ;;  %v8176_v4 = vcombine.low %v195_v55, %v199_v56 }
  0x8f   :  { %2876 = vmatpush1.bf16.msra.mxu0 %v8144_v34  ;;  %3040 = vmatpush1.bf16.msra.mxu1 %v8146_v35  ;;  %v8179_v63 = vcombine.high %v196_v58, %v200_v59  ;;  %v207_v1 = vld [vmem:[#allocation2 + $0x220] sm:$0xff]  ;;  %v204_v2 = vld [vmem:[#allocation2 + $0x208] sm:$0xff]  ;;  %v8178_v5 = vcombine.low %v196_v58, %v200_v59 }
  0x90   :  { %2877 = vmatprep.subr.bf16.mxu0 %v8153_v36  ;;  %3041 = vmatprep.subr.bf16.mxu1 %v8155_v37  ;;  %v208_v3 = vld [vmem:[#allocation2 + $0x228] sm:$0xff]  ;;  %v8185_v6 = vcombine.high %v203_v0, %v207_v1  ;;  %v211_v8 = vld [vmem:[#allocation2 + $0x240] sm:$0xff]  ;;  %v8184_v12 = vcombine.low %v203_v0, %v207_v1 }
  0x91   :  { %2901 = vmatprep.mubr.bf16.mxu0 %v9773_v57  ;;  %3065 = vmatprep.mubr.bf16.mxu1 %v9773_v57  ;;  %v8187_v7 = vcombine.high %v204_v2, %v208_v3  ;;  %v215_v9 = vld [vmem:[#allocation2 + $0x260] sm:$0xff]  ;;  %v212_v10 = vld [vmem:[#allocation2 + $0x248] sm:$0xff]  ;;  %v8186_v13 = vcombine.low %v204_v2, %v208_v3 }
  0x92   :  { %v216_v11 = vld [vmem:[#allocation2 + $0x268] sm:$0xff]  ;;  %v8193_v14 = vcombine.high %v211_v8, %v215_v9  ;;  %v219_v16 = vld [vmem:[#allocation2 + $0x280] sm:$0xff]  ;;  %v8192_v20 = vcombine.low %v211_v8, %v215_v9 }
  0x93   :  { %2878 = vmatpush1.bf16.msra.mxu0 %v8152_v42  ;;  %3042 = vmatpush1.bf16.msra.mxu1 %v8154_v43  ;;  %v8195_v15 = vcombine.high %v212_v10, %v216_v11  ;;  %v223_v17 = vld [vmem:[#allocation2 + $0x2a0] sm:$0xff]  ;;  %v220_v18 = vld [vmem:[#allocation2 + $0x288] sm:$0xff]  ;;  %v8194_v21 = vcombine.low %v212_v10, %v216_v11 }
  0x94   :  { %2879 = vmatprep.subr.bf16.mxu0 %v8161_v44  ;;  %3043 = vmatprep.subr.bf16.mxu1 %v8163_v45  ;;  %v224_v19 = vld [vmem:[#allocation2 + $0x2a8] sm:$0xff]  ;;  %v8201_v22 = vcombine.high %v219_v16, %v223_v17  ;;  %v227_v24 = vld [vmem:[#allocation2 + $0x2c0] sm:$0xff]  ;;  %v8200_v28 = vcombine.low %v219_v16, %v223_v17 }
  0x95   :  { %v8203_v23 = vcombine.high %v220_v18, %v224_v19  ;;  %v231_v25 = vld [vmem:[#allocation2 + $0x2e0] sm:$0xff]  ;;  %v228_v26 = vld [vmem:[#allocation2 + $0x2c8] sm:$0xff]  ;;  %v8202_v29 = vcombine.low %v220_v18, %v224_v19 }
  0x96   :  { %v232_v27 = vld [vmem:[#allocation2 + $0x2e8] sm:$0xff]  ;;  %v8209_v30 = vcombine.high %v227_v24, %v231_v25  ;;  %v235_v32 = vld [vmem:[#allocation2 + $0x300] sm:$0xff]  ;;  %v8208_v36 = vcombine.low %v227_v24, %v231_v25 }
  0x97   :  { %2880 = vmatpush1.bf16.msra.mxu0 %v8160_v50  ;;  %3044 = vmatpush1.bf16.msra.mxu1 %v8162_v51  ;;  %v8211_v31 = vcombine.high %v228_v26, %v232_v27  ;;  %v239_v33 = vld [vmem:[#allocation2 + $0x320] sm:$0xff]  ;;  %v236_v34 = vld [vmem:[#allocation2 + $0x308] sm:$0xff]  ;;  %v8210_v37 = vcombine.low %v228_v26, %v232_v27 }
  0x98   :  { %2881 = vmatprep.subr.bf16.mxu0 %v8169_v52  ;;  %3045 = vmatprep.subr.bf16.mxu1 %v8171_v54  ;;  %v240_v35 = vld [vmem:[#allocation2 + $0x328] sm:$0xff]  ;;  %v8217_v38 = vcombine.high %v235_v32, %v239_v33  ;;  %v243_v40 = vld [vmem:[#allocation2 + $0x340] sm:$0xff]  ;;  %v8216_v44 = vcombine.low %v235_v32, %v239_v33 }
  0x99   :  { %v8219_v39 = vcombine.high %v236_v34, %v240_v35  ;;  %v247_v41 = vld [vmem:[#allocation2 + $0x360] sm:$0xff]  ;;  %v244_v42 = vld [vmem:[#allocation2 + $0x348] sm:$0xff]  ;;  %v8218_v45 = vcombine.low %v236_v34, %v240_v35 }
  0x9a   :  { %v248_v43 = vld [vmem:[#allocation2 + $0x368] sm:$0xff]  ;;  %v8225_v46 = vcombine.high %v243_v40, %v247_v41  ;;  %v251_v48 = vld [vmem:[#allocation2 + $0x380] sm:$0xff]  ;;  %v8224_v52 = vcombine.low %v243_v40, %v247_v41 }
  0x9b   :  { %2882 = vmatpush1.bf16.msra.mxu0 %v8168_v60  ;;  %3046 = vmatpush1.bf16.msra.mxu1 %v8170_v61  ;;  %v8227_v47 = vcombine.high %v244_v42, %v248_v43  ;;  %v255_v49 = vld [vmem:[#allocation2 + $0x3a0] sm:$0xff]  ;;  %v252_v50 = vld [vmem:[#allocation2 + $0x388] sm:$0xff]  ;;  %v8226_v53 = vcombine.low %v244_v42, %v248_v43 }
  0x9c   :  { %2883 = vmatprep.subr.bf16.mxu0 %v8177_v62  ;;  %3047 = vmatprep.subr.bf16.mxu1 %v8179_v63  ;;  %v256_v51 = vld [vmem:[#allocation2 + $0x3a8] sm:$0xff]  ;;  %v8233_v54 = vcombine.high %v251_v48, %v255_v49  ;;  %v259_v56 = vld [vmem:[#allocation2 + $0x3c0] sm:$0xff]  ;;  %v8232_v61 = vcombine.low %v251_v48, %v255_v49 }
  0x9d   :  { %v8235_v55 = vcombine.high %v252_v50, %v256_v51  ;;  %v263_v58 = vld [vmem:[#allocation2 + $0x3e0] sm:$0xff]  ;;  %v260_v59 = vld [vmem:[#allocation2 + $0x3c8] sm:$0xff]  ;;  %v8234_v62 = vcombine.low %v252_v50, %v256_v51 }
  0x9e   :  { %v264_v60 = vld [vmem:[#allocation2 + $0x3e8] sm:$0xff]  ;;  %v8241_v63 = vcombine.high %v259_v56, %v263_v58  ;;  %v267_v1 = vld [vmem:[#allocation2 + $0x400] sm:$0xff] }
  0x9f   :  { %2884 = vmatpush1.bf16.msra.mxu0 %v8176_v4  ;;  %3048 = vmatpush1.bf16.msra.mxu1 %v8178_v5  ;;  %v8243_v0 = vcombine.high %v260_v59, %v264_v60  ;;  %v271_v2 = vld [vmem:[#allocation2 + $0x420] sm:$0xff]  ;;  %v268_v3 = vld [vmem:[#allocation2 + $0x408] sm:$0xff]  ;;  %v8240_v5 = vcombine.low %v259_v56, %v263_v58 }
  0xa0   :  { %2885 = vmatprep.subr.bf16.mxu0 %v8185_v6  ;;  %3049 = vmatprep.subr.bf16.mxu1 %v8187_v7  ;;  %v272_v4 = vld [vmem:[#allocation2 + $0x428] sm:$0xff]  ;;  %v125_v6 = vld [vmem:[%s10177_s0] sm:$0xff]  ;;  %v8242_v7 = vcombine.low %v260_v59, %v264_v60  ;;  %v8249_v8 = vcombine.high %v267_v1, %v271_v2  ;;  %v8248_v16 = vcombine.low %v267_v1, %v271_v2 }
  0xa1   :  { %v8251_v9 = vcombine.high %v268_v3, %v272_v4  ;;  %v275_v10 = vld [vmem:[#allocation2 + $0x440] sm:$0xff]  ;;  %v8250_v17 = vcombine.low %v268_v3, %v272_v4  ;;  %v288_v24 = vld [vmem:[#allocation2 + $0x4a8] sm:$0xff] }
  0xa2   :  { %v279_v11 = vld [vmem:[#allocation2 + $0x460] sm:$0xff]  ;;  %v296_v32 = vld [vmem:[#allocation2 + $0x4e8] sm:$0xff] }
  0xa3   :  { %2886 = vmatpush1.bf16.msra.mxu0 %v8184_v12  ;;  %3050 = vmatpush1.bf16.msra.mxu1 %v8186_v13  ;;  %v9780_v12 = vpack.c.bf16 %v125_v6, %v125_v6  ;;  %v276_v13 = vld [vmem:[#allocation2 + $0x448] sm:$0xff]  ;;  %v8257_v18 = vcombine.high %v275_v10, %v279_v11  ;;  %v8256_v25 = vcombine.low %v275_v10, %v279_v11  ;;  %v335_v6 = vld [vmem:[#allocation2 + $0x620] sm:$0xff] }
  0xa4   :  { %2887 = vmatprep.subr.bf16.mxu0 %v8193_v14  ;;  %3051 = vmatprep.subr.bf16.mxu1 %v8195_v15  ;;  %v280_v14 = vld [vmem:[#allocation2 + $0x468] sm:$0xff]  ;;  %v128_v15 = vld [vmem:[%s10177_s0 + $0x18] sm:$0xff] }
  0xa5   :  { %v8259_v19 = vcombine.high %v276_v13, %v280_v14  ;;  %v8258_v26 = vcombine.low %v276_v13, %v280_v14  ;;  %v304_v40 = vld [vmem:[#allocation2 + $0x528] sm:$0xff]  ;;  %v339_v14 = vld [vmem:[#allocation2 + $0x640] sm:$0xff] }
  0xa6   :  { %v312_v48 = vld [vmem:[#allocation2 + $0x568] sm:$0xff] }
  0xa7   :  { %2888 = vmatpush1.bf16.msra.mxu0 %v8192_v20  ;;  %3052 = vmatpush1.bf16.msra.mxu1 %v8194_v21  ;;  %v283_v20 = vld [vmem:[#allocation2 + $0x480] sm:$0xff]  ;;  %v320_v56 = vld [vmem:[#allocation2 + $0x5a8] sm:$0xff] }
  0xa8   :  { %2889 = vmatprep.subr.bf16.mxu0 %v8201_v22  ;;  %3053 = vmatprep.subr.bf16.mxu1 %v8203_v23  ;;  %v287_v21 = vld [vmem:[#allocation2 + $0x4a0] sm:$0xff]  ;;  %v284_v22 = vld [vmem:[#allocation2 + $0x488] sm:$0xff]  ;;  %v9785_v23 = vpack.c.bf16 %v128_v15, %v128_v15 }
  0xa9   :  { %v8265_v27 = vcombine.high %v283_v20, %v287_v21  ;;  %v8264_v33 = vcombine.low %v283_v20, %v287_v21  ;;  %v8266_v34 = vcombine.low %v284_v22, %v288_v24  ;;  %v328_v1 = vld [vmem:[#allocation2 + $0x5e8] sm:$0xff]  ;;  %v343_v15 = vld [vmem:[#allocation2 + $0x660] sm:$0xff] }
  0xaa   :  { %v8321_v21 = vcombine.high %v339_v14, %v343_v15 }
  0xab   :  { %2890 = vmatpush1.bf16.msra.mxu0 %v8200_v28  ;;  %3054 = vmatpush1.bf16.msra.mxu1 %v8202_v29  ;;  %v291_v28 = vld [vmem:[#allocation2 + $0x4c0] sm:$0xff] }
  0xac   :  { %2891 = vmatprep.subr.bf16.mxu0 %v8209_v30  ;;  %3055 = vmatprep.subr.bf16.mxu1 %v8211_v31  ;;  %v295_v29 = vld [vmem:[#allocation2 + $0x4e0] sm:$0xff]  ;;  %v292_v30 = vld [vmem:[#allocation2 + $0x4c8] sm:$0xff]  ;;  %v8267_v31 = vcombine.high %v284_v22, %v288_v24 }
  0xad   :  { %v8273_v35 = vcombine.high %v291_v28, %v295_v29  ;;  %v8272_v41 = vcombine.low %v291_v28, %v295_v29  ;;  %v8274_v42 = vcombine.low %v292_v30, %v296_v32  ;;  %v347_v22 = vld [vmem:[#allocation2 + $0x680] sm:$0xff]  ;;  %v8320_v28 = vcombine.low %v339_v14, %v343_v15  ;;  %v127_v14 = vld [vmem:[%s10177_s0 + $0x10] sm:$0xff] }
  0xae   :  { %v351_v24 = vld [vmem:[#allocation2 + $0x6a0] sm:$0xff] }
  0xaf   :  { %2892 = vmatpush1.bf16.msra.mxu0 %v8208_v36  ;;  %3056 = vmatpush1.bf16.msra.mxu1 %v8210_v37  ;;  %v299_v36 = vld [vmem:[#allocation2 + $0x500] sm:$0xff] }
  0xb0   :  { %2893 = vmatprep.subr.bf16.mxu0 %v8217_v38  ;;  %3057 = vmatprep.subr.bf16.mxu1 %v8219_v39  ;;  %v303_v37 = vld [vmem:[#allocation2 + $0x520] sm:$0xff]  ;;  %v300_v38 = vld [vmem:[#allocation2 + $0x508] sm:$0xff]  ;;  %v8275_v39 = vcombine.high %v292_v30, %v296_v32  ;;  %v8329_v30 = vcombine.high %v347_v22, %v351_v24 }
  0xb1   :  { %v8281_v43 = vcombine.high %v299_v36, %v303_v37  ;;  %v8280_v49 = vcombine.low %v299_v36, %v303_v37  ;;  %v8282_v50 = vcombine.low %v300_v38, %v304_v40  ;;  %v359_v32 = vld [vmem:[#allocation2 + $0x6e0] sm:$0xff]  ;;  %v8328_v36 = vcombine.low %v347_v22, %v351_v24  ;;  %v130_v24 = vld [vmem:[%s10177_s0 + $0x28] sm:$0xff] }
  0xb3   :  { %2894 = vmatpush1.bf16.msra.mxu0 %v8216_v44  ;;  %3058 = vmatpush1.bf16.msra.mxu1 %v8218_v45  ;;  %v307_v44 = vld [vmem:[#allocation2 + $0x540] sm:$0xff] }
  0xb4   :  { %2895 = vmatprep.subr.bf16.mxu0 %v8225_v46  ;;  %3059 = vmatprep.subr.bf16.mxu1 %v8227_v47  ;;  %v311_v45 = vld [vmem:[#allocation2 + $0x560] sm:$0xff]  ;;  %v308_v46 = vld [vmem:[#allocation2 + $0x548] sm:$0xff]  ;;  %v8283_v47 = vcombine.high %v300_v38, %v304_v40 }
  0xb5   :  { %v8289_v51 = vcombine.high %v307_v44, %v311_v45  ;;  %v8288_v58 = vcombine.low %v307_v44, %v311_v45  ;;  %v8290_v59 = vcombine.low %v308_v46, %v312_v48  ;;  %v367_v40 = vld [vmem:[#allocation2 + $0x720] sm:$0xff] }
  0xb7   :  { %2896 = vmatpush1.bf16.msra.mxu0 %v8224_v52  ;;  %3060 = vmatpush1.bf16.msra.mxu1 %v8226_v53  ;;  %v315_v52 = vld [vmem:[#allocation2 + $0x580] sm:$0xff] }
  0xb8   :  { %2897 = vmatprep.subr.bf16.mxu0 %v8233_v54  ;;  %3061 = vmatprep.subr.bf16.mxu1 %v8235_v55  ;;  %v319_v53 = vld [vmem:[#allocation2 + $0x5a0] sm:$0xff]  ;;  %v316_v54 = vld [vmem:[#allocation2 + $0x588] sm:$0xff]  ;;  %v8291_v55 = vcombine.high %v308_v46, %v312_v48 }
  0xb9   :  { %v8297_v60 = vcombine.high %v315_v52, %v319_v53  ;;  %v8296_v2 = vcombine.low %v315_v52, %v319_v53  ;;  %v8298_v3 = vcombine.low %v316_v54, %v320_v56  ;;  %v375_v48 = vld [vmem:[#allocation2 + $0x760] sm:$0xff] }
  0xbb   :  { %2898 = vmatpush1.bf16.msra.mxu0 %v8232_v61  ;;  %3062 = vmatpush1.bf16.msra.mxu1 %v8234_v62  ;;  %v323_v61 = vld [vmem:[#allocation2 + $0x5c0] sm:$0xff] }
  0xbc   :  { %2899 = vmatprep.subr.bf16.mxu0 %v8241_v63  ;;  %3063 = vmatprep.subr.bf16.mxu1 %v8243_v0  ;;  %v327_v62 = vld [vmem:[#allocation2 + $0x5e0] sm:$0xff]  ;;  %v324_v63 = vld [vmem:[#allocation2 + $0x5c8] sm:$0xff]  ;;  %v8299_v0 = vcombine.high %v316_v54, %v320_v56 }
  0xbd   :  { %v8305_v4 = vcombine.high %v323_v61, %v327_v62  ;;  %v8304_v10 = vcombine.low %v323_v61, %v327_v62  ;;  %v8306_v11 = vcombine.low %v324_v63, %v328_v1  ;;  %v383_v56 = vld [vmem:[#allocation2 + $0x7a0] sm:$0xff] }
  0xbf   :  { %2900 = vmatpush1.bf16.msra.mxu0 %v8240_v5  ;;  %3064 = vmatpush1.bf16.msra.mxu1 %v8242_v7  ;;  %v331_v5 = vld [vmem:[#allocation2 + $0x600] sm:$0xff]  ;;  %v332_v7 = vld [vmem:[#allocation2 + $0x608] sm:$0xff] }
  0xc0   :  { %2910 = vmatprep.subr.bf16.mxu0 %v8249_v8  ;;  %3074 = vmatprep.subr.bf16.mxu1 %v8251_v9  ;;  %v8307_v8 = vcombine.high %v324_v63, %v328_v1  ;;  %v336_v9 = vld [vmem:[#allocation2 + $0x628] sm:$0xff]  ;;  %v8313_v13 = vcombine.high %v331_v5, %v335_v6  ;;  %v391_v1 = vld [vmem:[#allocation2 + $0x7e0] sm:$0xff] }
  0xc1   :  { %v8314_v20 = vcombine.low %v332_v7, %v336_v9 }
  0xc2   :  { %2902 = vmatmul.mubr.bf16.vlgmr.msra.gmra.mrb[0].mxu0 %v9780_v12  ;;  %3066 = vmatmul.mubr.bf16.vlgmr.msra.gmra.mrb[0].mxu1 %v9780_v12 }
  0xc3   :  { %2911 = vmatpush1.bf16.msra.mxu0 %v8248_v16  ;;  %3075 = vmatpush1.bf16.msra.mxu1 %v8250_v17  ;;  %v340_v16 = vld [vmem:[#allocation2 + $0x648] sm:$0xff]  ;;  %v8315_v17 = vcombine.high %v332_v7, %v336_v9  ;;  %v399_v9 = vld [vmem:[#allocation2 + $0x820] sm:$0xff] }
  0xc4   :  { %2912 = vmatprep.subr.bf16.mxu0 %v8257_v18  ;;  %3076 = vmatprep.subr.bf16.mxu1 %v8259_v19  ;;  %v344_v18 = vld [vmem:[#allocation2 + $0x668] sm:$0xff]  ;;  %v8312_v19 = vcombine.low %v331_v5, %v335_v6  ;;  %v395_v6 = vld [vmem:[#allocation2 + $0x800] sm:$0xff] }
  0xc5   :  { %2942 = vmatprep.mubr.bf16.mxu0 %v9785_v23  ;;  %3106 = vmatprep.mubr.bf16.mxu1 %v9785_v23  ;;  %v8322_v29 = vcombine.low %v340_v16, %v344_v18 }
  0xc7   :  { %2913 = vmatpush1.bf16.msra.mxu0 %v8256_v25  ;;  %3077 = vmatpush1.bf16.msra.mxu1 %v8258_v26  ;;  %v8323_v25 = vcombine.high %v340_v16, %v344_v18  ;;  %v348_v26 = vld [vmem:[#allocation2 + $0x688] sm:$0xff]  ;;  %v403_v16 = vld [vmem:[#allocation2 + $0x840] sm:$0xff]  ;;  %v8377_v18 = vcombine.high %v395_v6, %v399_v9 }
  0xc8   :  { %2914 = vmatprep.subr.bf16.mxu0 %v8265_v27  ;;  %3078 = vmatprep.subr.bf16.mxu1 %v8267_v31  ;;  %v352_v27 = vld [vmem:[#allocation2 + $0x6a8] sm:$0xff]  ;;  %v355_v31 = vld [vmem:[#allocation2 + $0x6c0] sm:$0xff] }
  0xc9   :  { %v8330_v37 = vcombine.low %v348_v26, %v352_v27  ;;  %v8337_v38 = vcombine.high %v355_v31, %v359_v32  ;;  %v8336_v44 = vcombine.low %v355_v31, %v359_v32  ;;  %v412_v31 = vld [vmem:[#allocation2 + $0x888] sm:$0xff] }
  0xcb   :  { %2915 = vmatpush1.bf16.msra.mxu0 %v8264_v33  ;;  %3079 = vmatpush1.bf16.msra.mxu1 %v8266_v34  ;;  %v356_v33 = vld [vmem:[#allocation2 + $0x6c8] sm:$0xff]  ;;  %v8331_v34 = vcombine.high %v348_v26, %v352_v27  ;;  %v8376_v26 = vcombine.low %v395_v6, %v399_v9  ;;  %v455_v9 = vld [vmem:[#allocation2 + $0x9e0] sm:$0xff] }
  0xcc   :  { %2916 = vmatprep.subr.bf16.mxu0 %v8273_v35  ;;  %3080 = vmatprep.subr.bf16.mxu1 %v8275_v39  ;;  %v360_v35 = vld [vmem:[#allocation2 + $0x6e8] sm:$0xff]  ;;  %v363_v39 = vld [vmem:[#allocation2 + $0x700] sm:$0xff] }
  0xcd   :  { %v8338_v45 = vcombine.low %v356_v33, %v360_v35  ;;  %v8345_v46 = vcombine.high %v363_v39, %v367_v40  ;;  %v8344_v52 = vcombine.low %v363_v39, %v367_v40  ;;  %v419_v39 = vld [vmem:[#allocation2 + $0x8c0] sm:$0xff] }
  0xce   :  { %v423_v40 = vld [vmem:[#allocation2 + $0x8e0] sm:$0xff] }
  0xcf   :  { %2917 = vmatpush1.bf16.msra.mxu0 %v8272_v41  ;;  %3081 = vmatpush1.bf16.msra.mxu1 %v8274_v42  ;;  %v364_v41 = vld [vmem:[#allocation2 + $0x708] sm:$0xff]  ;;  %v8339_v42 = vcombine.high %v356_v33, %v360_v35 }
  0xd0   :  { %2918 = vmatprep.subr.bf16.mxu0 %v8281_v43  ;;  %3082 = vmatprep.subr.bf16.mxu1 %v8283_v47  ;;  %v368_v43 = vld [vmem:[#allocation2 + $0x728] sm:$0xff]  ;;  %v371_v47 = vld [vmem:[#allocation2 + $0x740] sm:$0xff] }
  0xd1   :  { %v8346_v53 = vcombine.low %v364_v41, %v368_v43  ;;  %v8353_v54 = vcombine.high %v371_v47, %v375_v48  ;;  %v8352_v61 = vcombine.low %v371_v47, %v375_v48  ;;  %v416_v33 = vld [vmem:[#allocation2 + $0x8a8] sm:$0xff]  ;;  %v427_v47 = vld [vmem:[#allocation2 + $0x900] sm:$0xff] }
  0xd2   :  { %v431_v48 = vld [vmem:[#allocation2 + $0x920] sm:$0xff] }
  0xd3   :  { %2919 = vmatpush1.bf16.msra.mxu0 %v8280_v49  ;;  %3083 = vmatpush1.bf16.msra.mxu1 %v8282_v50  ;;  %v372_v49 = vld [vmem:[#allocation2 + $0x748] sm:$0xff]  ;;  %v8347_v50 = vcombine.high %v364_v41, %v368_v43 }
  0xd4   :  { %2920 = vmatprep.subr.bf16.mxu0 %v8289_v51  ;;  %3084 = vmatprep.subr.bf16.mxu1 %v8291_v55  ;;  %v376_v51 = vld [vmem:[#allocation2 + $0x768] sm:$0xff]  ;;  %v379_v55 = vld [vmem:[#allocation2 + $0x780] sm:$0xff] }
  0xd5   :  { %v8354_v62 = vcombine.low %v372_v49, %v376_v51  ;;  %v8361_v63 = vcombine.high %v379_v55, %v383_v56  ;;  %v8360_v5 = vcombine.low %v379_v55, %v383_v56  ;;  %v420_v41 = vld [vmem:[#allocation2 + $0x8c8] sm:$0xff]  ;;  %v435_v55 = vld [vmem:[#allocation2 + $0x940] sm:$0xff] }
  0xd6   :  { %v439_v56 = vld [vmem:[#allocation2 + $0x960] sm:$0xff] }
  0xd7   :  { %2921 = vmatpush1.bf16.msra.mxu0 %v8288_v58  ;;  %3085 = vmatpush1.bf16.msra.mxu1 %v8290_v59  ;;  %v380_v58 = vld [vmem:[#allocation2 + $0x788] sm:$0xff]  ;;  %v8355_v59 = vcombine.high %v372_v49, %v376_v51  ;;  %v8400_v51 = vcombine.low %v419_v39, %v423_v40 }
  0xd8   :  { %2922 = vmatprep.subr.bf16.mxu0 %v8297_v60  ;;  %3086 = vmatprep.subr.bf16.mxu1 %v8299_v0  ;;  %v384_v60 = vld [vmem:[#allocation2 + $0x7a8] sm:$0xff]  ;;  %v387_v0 = vld [vmem:[#allocation2 + $0x7c0] sm:$0xff] }
  0xd9   :  { %v8362_v7 = vcombine.low %v380_v58, %v384_v60  ;;  %v8368_v15 = vcombine.low %v387_v0, %v391_v1  ;;  %v428_v49 = vld [vmem:[#allocation2 + $0x908] sm:$0xff] }
  0xdb   :  { %2923 = vmatpush1.bf16.msra.mxu0 %v8296_v2  ;;  %3087 = vmatpush1.bf16.msra.mxu1 %v8298_v3  ;;  %v388_v2 = vld [vmem:[#allocation2 + $0x7c8] sm:$0xff]  ;;  %v8363_v3 = vcombine.high %v380_v58, %v384_v60  ;;  %v8408_v60 = vcombine.low %v427_v47, %v431_v48 }
  0xdc   :  { %2924 = vmatprep.subr.bf16.mxu0 %v8305_v4  ;;  %3088 = vmatprep.subr.bf16.mxu1 %v8307_v8  ;;  %v392_v4 = vld [vmem:[#allocation2 + $0x7e8] sm:$0xff]  ;;  %v8369_v8 = vcombine.high %v387_v0, %v391_v1  ;;  %v443_v0 = vld [vmem:[#allocation2 + $0x980] sm:$0xff] }
  0xdd   :  { %v436_v58 = vld [vmem:[#allocation2 + $0x948] sm:$0xff]  ;;  %v447_v1 = vld [vmem:[#allocation2 + $0x9a0] sm:$0xff] }
  0xde   :  { %v8425_v6 = vcombine.high %v443_v0, %v447_v1 }
  0xdf   :  { %2925 = vmatpush1.bf16.msra.mxu0 %v8304_v10  ;;  %3089 = vmatpush1.bf16.msra.mxu1 %v8306_v11  ;;  %v396_v10 = vld [vmem:[#allocation2 + $0x808] sm:$0xff] }
  0xe0   :  { %2926 = vmatprep.subr.bf16.mxu0 %v8313_v13  ;;  %3090 = vmatprep.subr.bf16.mxu1 %v8315_v17  ;;  %v400_v11 = vld [vmem:[#allocation2 + $0x828] sm:$0xff]  ;;  %v8371_v13 = vcombine.high %v388_v2, %v392_v4  ;;  %v8370_v17 = vcombine.low %v388_v2, %v392_v4  ;;  %v8416_v4 = vcombine.low %v435_v55, %v439_v56 }
  0xe1   :  { %v8379_v22 = vcombine.high %v396_v10, %v400_v11  ;;  %v8378_v27 = vcombine.low %v396_v10, %v400_v11  ;;  %v444_v2 = vld [vmem:[#allocation2 + $0x988] sm:$0xff] }
  0xe2   :  { %v452_v10 = vld [vmem:[#allocation2 + $0x9c8] sm:$0xff] }
  0xe3   :  { %2927 = vmatpush1.bf16.msra.mxu0 %v8312_v19  ;;  %3091 = vmatpush1.bf16.msra.mxu1 %v8314_v20  ;;  %v407_v19 = vld [vmem:[#allocation2 + $0x860] sm:$0xff]  ;;  %v404_v20 = vld [vmem:[#allocation2 + $0x848] sm:$0xff] }
  0xe4   :  { %2928 = vmatprep.subr.bf16.mxu0 %v8321_v21  ;;  %3092 = vmatprep.subr.bf16.mxu1 %v8323_v25  ;;  %v408_v21 = vld [vmem:[#allocation2 + $0x868] sm:$0xff]  ;;  %v9797_v25 = vpack.c.bf16 %v127_v14, %v127_v14  ;;  %v8384_v35 = vcombine.low %v403_v16, %v407_v19 }
  0xe5   :  { %v8387_v32 = vcombine.high %v404_v20, %v408_v21  ;;  %v456_v11 = vld [vmem:[#allocation2 + $0x9e8] sm:$0xff] }
  0xe7   :  { %2929 = vmatpush1.bf16.msra.mxu0 %v8320_v28  ;;  %3093 = vmatpush1.bf16.msra.mxu1 %v8322_v29  ;;  %v8385_v28 = vcombine.high %v403_v16, %v407_v19  ;;  %v411_v29 = vld [vmem:[#allocation2 + $0x880] sm:$0xff]  ;;  %v8435_v16 = vcombine.high %v452_v10, %v456_v11  ;;  %v460_v19 = vld [vmem:[#allocation2 + $0xa08] sm:$0xff] }
  0xe8   :  { %2930 = vmatprep.subr.bf16.mxu0 %v8329_v30  ;;  %3094 = vmatprep.subr.bf16.mxu1 %v8331_v34  ;;  %v415_v30 = vld [vmem:[#allocation2 + $0x8a0] sm:$0xff]  ;;  %v9799_v34 = vpack.c.bf16 %v130_v24, %v130_v24 }
  0xe9   :  { %v8392_v43 = vcombine.low %v411_v29, %v415_v30 }
  0xeb   :  { %2931 = vmatpush1.bf16.msra.mxu0 %v8328_v36  ;;  %3095 = vmatpush1.bf16.msra.mxu1 %v8330_v37  ;;  %v8386_v36 = vcombine.low %v404_v20, %v408_v21  ;;  %v8393_v37 = vcombine.high %v411_v29, %v415_v30  ;;  %v464_v20 = vld [vmem:[#allocation2 + $0xa28] sm:$0xff] }
  0xec   :  { %2932 = vmatprep.subr.bf16.mxu0 %v8337_v38  ;;  %3096 = vmatprep.subr.bf16.mxu1 %v8339_v42  ;;  %v8395_v38 = vcombine.high %v412_v31, %v416_v33  ;;  %v424_v42 = vld [vmem:[#allocation2 + $0x8e8] sm:$0xff] }
  0xed   :  { %v468_v29 = vld [vmem:[#allocation2 + $0xa48] sm:$0xff] }
  0xee   :  { %v472_v30 = vld [vmem:[#allocation2 + $0xa68] sm:$0xff] }
  0xef   :  { %2933 = vmatpush1.bf16.msra.mxu0 %v8336_v44  ;;  %3097 = vmatpush1.bf16.msra.mxu1 %v8338_v45  ;;  %v8394_v44 = vcombine.low %v412_v31, %v416_v33  ;;  %v8401_v45 = vcombine.high %v419_v39, %v423_v40  ;;  %v480_v39 = vld [vmem:[#allocation2 + $0xaa8] sm:$0xff] }
  0xf0   :  { %2934 = vmatprep.subr.bf16.mxu0 %v8345_v46  ;;  %3098 = vmatprep.subr.bf16.mxu1 %v8347_v50  ;;  %v8403_v46 = vcombine.high %v420_v41, %v424_v42  ;;  %v432_v50 = vld [vmem:[#allocation2 + $0x928] sm:$0xff] }
  0xf3   :  { %2935 = vmatpush1.bf16.msra.mxu0 %v8344_v52  ;;  %3099 = vmatpush1.bf16.msra.mxu1 %v8346_v53  ;;  %v8402_v52 = vcombine.low %v420_v41, %v424_v42  ;;  %v8409_v53 = vcombine.high %v427_v47, %v431_v48  ;;  %v8450_v41 = vcombine.low %v468_v29, %v472_v30  ;;  %v488_v47 = vld [vmem:[#allocation2 + $0xae8] sm:$0xff] }
  0xf4   :  { %2936 = vmatprep.subr.bf16.mxu0 %v8353_v54  ;;  %3100 = vmatprep.subr.bf16.mxu1 %v8355_v59  ;;  %v8411_v54 = vcombine.high %v428_v49, %v432_v50  ;;  %v440_v59 = vld [vmem:[#allocation2 + $0x968] sm:$0xff] }
  0xf7   :  { %2937 = vmatpush1.bf16.msra.mxu0 %v8352_v61  ;;  %3101 = vmatpush1.bf16.msra.mxu1 %v8354_v62  ;;  %v8410_v61 = vcombine.low %v428_v49, %v432_v50  ;;  %v8417_v62 = vcombine.high %v435_v55, %v439_v56  ;;  %v496_v55 = vld [vmem:[#allocation2 + $0xb28] sm:$0xff] }
  0xf8   :  { %2938 = vmatprep.subr.bf16.mxu0 %v8361_v63  ;;  %3102 = vmatprep.subr.bf16.mxu1 %v8363_v3  ;;  %v8419_v63 = vcombine.high %v436_v58, %v440_v59  ;;  %v448_v3 = vld [vmem:[#allocation2 + $0x9a8] sm:$0xff] }
  0xf9   :  { %v8426_v14 = vcombine.low %v444_v2, %v448_v3 }
  0xfb   :  { %2939 = vmatpush1.bf16.msra.mxu0 %v8360_v5  ;;  %3103 = vmatpush1.bf16.msra.mxu1 %v8362_v7  ;;  %v8418_v5 = vcombine.low %v436_v58, %v440_v59  ;;  %v8427_v7 = vcombine.high %v444_v2, %v448_v3 }
  0xfc   :  { %2940 = vmatprep.subr.bf16.mxu0 %v8369_v8  ;;  %3104 = vmatprep.subr.bf16.mxu1 %v8371_v13  ;;  %v451_v8 = vld [vmem:[#allocation2 + $0x9c0] sm:$0xff]  ;;  %v8424_v13 = vcombine.low %v443_v0, %v447_v1  ;;  %v504_v0 = vld [vmem:[#allocation2 + $0xb68] sm:$0xff] }
  0xfd   :  { %v8432_v21 = vcombine.low %v451_v8, %v455_v9 }
  0xff   :  { %2941 = vmatpush1.bf16.msra.mxu0 %v8368_v15  ;;  %3105 = vmatpush1.bf16.msra.mxu1 %v8370_v17  ;;  %v8433_v15 = vcombine.high %v451_v8, %v455_v9  ;;  %v459_v17 = vld [vmem:[#allocation2 + $0xa00] sm:$0xff]  ;;  %v512_v8 = vld [vmem:[#allocation2 + $0xba8] sm:$0xff] }
 0x100   :  { %2951 = vmatprep.subr.bf16.mxu0 %v8377_v18  ;;  %3115 = vmatprep.subr.bf16.mxu1 %v8379_v22  ;;  %v463_v18 = vld [vmem:[#allocation2 + $0xa20] sm:$0xff]  ;;  %v8434_v22 = vcombine.low %v452_v10, %v456_v11 }
 0x101   :  { %v8441_v24 = vcombine.high %v459_v17, %v463_v18  ;;  %v8440_v31 = vcombine.low %v459_v17, %v463_v18  ;;  %v520_v17 = vld [vmem:[#allocation2 + $0xbe8] sm:$0xff] }
 0x102   :  { %2943 = vmatmul.mubr.bf16.vlgmr.msra.gmra.mrb[0].mxu0 %v9797_v25  ;;  %3107 = vmatmul.mubr.bf16.vlgmr.msra.gmra.mrb[0].mxu1 %v9797_v25 }
 0x103   :  { %2952 = vmatpush1.bf16.msra.mxu0 %v8376_v26  ;;  %3116 = vmatpush1.bf16.msra.mxu1 %v8378_v27  ;;  %v8443_v26 = vcombine.high %v460_v19, %v464_v20  ;;  %v467_v27 = vld [vmem:[#allocation2 + $0xa40] sm:$0xff] }
 0x104   :  { %2953 = vmatprep.subr.bf16.mxu0 %v8385_v28  ;;  %3117 = vmatprep.subr.bf16.mxu1 %v8387_v32  ;;  %v471_v28 = vld [vmem:[#allocation2 + $0xa60] sm:$0xff]  ;;  %v8442_v32 = vcombine.low %v460_v19, %v464_v20 }
 0x105   :  { %2983 = vmatprep.mubr.bf16.mxu0 %v9799_v34  ;;  %3147 = vmatprep.mubr.bf16.mxu1 %v9799_v34  ;;  %v8449_v33 = vcombine.high %v467_v27, %v471_v28  ;;  %v8448_v40 = vcombine.low %v467_v27, %v471_v28  ;;  %v528_v27 = vld [vmem:[#allocation2 + $0xc28] sm:$0xff] }
 0x107   :  { %2954 = vmatpush1.bf16.msra.mxu0 %v8384_v35  ;;  %3118 = vmatpush1.bf16.msra.mxu1 %v8386_v36  ;;  %v8451_v35 = vcombine.high %v468_v29, %v472_v30  ;;  %v475_v36 = vld [vmem:[#allocation2 + $0xa80] sm:$0xff] }
 0x108   :  { %2955 = vmatprep.subr.bf16.mxu0 %v8393_v37  ;;  %3119 = vmatprep.subr.bf16.mxu1 %v8395_v38  ;;  %v479_v37 = vld [vmem:[#allocation2 + $0xaa0] sm:$0xff]  ;;  %v476_v38 = vld [vmem:[#allocation2 + $0xa88] sm:$0xff] }
 0x109   :  { %v8457_v42 = vcombine.high %v475_v36, %v479_v37  ;;  %v8456_v48 = vcombine.low %v475_v36, %v479_v37  ;;  %v8458_v49 = vcombine.low %v476_v38, %v480_v39  ;;  %v129_v29 = vld [vmem:[%s10177_s0 + $0x20] sm:$0xff]  ;;  %v532_v37 = vld [vmem:[#allocation2 + $0xc48] sm:$0xff] }
 0x10a   :  { %v9808_v36 = vpack.c.bf16 %v129_v29, %v129_v29 }
 0x10b   :  { %2956 = vmatpush1.bf16.msra.mxu0 %v8392_v43  ;;  %3120 = vmatpush1.bf16.msra.mxu1 %v8394_v44  ;;  %v8459_v43 = vcombine.high %v476_v38, %v480_v39  ;;  %v483_v44 = vld [vmem:[#allocation2 + $0xac0] sm:$0xff]  ;;  %v536_v38 = vld [vmem:[#allocation2 + $0xc68] sm:$0xff] }
 0x10c   :  { %2957 = vmatprep.subr.bf16.mxu0 %v8401_v45  ;;  %3121 = vmatprep.subr.bf16.mxu1 %v8403_v46  ;;  %v487_v45 = vld [vmem:[#allocation2 + $0xae0] sm:$0xff]  ;;  %v484_v46 = vld [vmem:[#allocation2 + $0xac8] sm:$0xff] }
 0x10d   :  { %v8465_v50 = vcombine.high %v483_v44, %v487_v45  ;;  %v8464_v56 = vcombine.low %v483_v44, %v487_v45  ;;  %v8466_v58 = vcombine.low %v484_v46, %v488_v47  ;;  %v543_v44 = vld [vmem:[#allocation2 + $0xca0] sm:$0xff]  ;;  %v540_v45 = vld [vmem:[#allocation2 + $0xc88] sm:$0xff] }
 0x10f   :  { %2958 = vmatpush1.bf16.msra.mxu0 %v8400_v51  ;;  %3122 = vmatpush1.bf16.msra.mxu1 %v8402_v52  ;;  %v8467_v51 = vcombine.high %v484_v46, %v488_v47  ;;  %v491_v52 = vld [vmem:[#allocation2 + $0xb00] sm:$0xff]  ;;  %v544_v46 = vld [vmem:[#allocation2 + $0xca8] sm:$0xff] }
 0x110   :  { %2959 = vmatprep.subr.bf16.mxu0 %v8409_v53  ;;  %3123 = vmatprep.subr.bf16.mxu1 %v8411_v54  ;;  %v495_v53 = vld [vmem:[#allocation2 + $0xb20] sm:$0xff]  ;;  %v492_v54 = vld [vmem:[#allocation2 + $0xb08] sm:$0xff] }
 0x111   :  { %v8473_v59 = vcombine.high %v491_v52, %v495_v53  ;;  %v8472_v1 = vcombine.low %v491_v52, %v495_v53  ;;  %v8474_v2 = vcombine.low %v492_v54, %v496_v55  ;;  %v551_v52 = vld [vmem:[#allocation2 + $0xce0] sm:$0xff]  ;;  %v9620_v53 = vmov 0  }
 0x113   :  { %2960 = vmatpush1.bf16.msra.mxu0 %v8408_v60  ;;  %3124 = vmatpush1.bf16.msra.mxu1 %v8410_v61  ;;  %v8475_v60 = vcombine.high %v492_v54, %v496_v55  ;;  %v499_v61 = vld [vmem:[#allocation2 + $0xb40] sm:$0xff]  ;;  %v548_v54 = vld [vmem:[#allocation2 + $0xcc8] sm:$0xff] }
 0x114   :  { %2961 = vmatprep.subr.bf16.mxu0 %v8417_v62  ;;  %3125 = vmatprep.subr.bf16.mxu1 %v8419_v63  ;;  %v503_v62 = vld [vmem:[#allocation2 + $0xb60] sm:$0xff]  ;;  %v500_v63 = vld [vmem:[#allocation2 + $0xb48] sm:$0xff] }
 0x115   :  { %v8481_v3 = vcombine.high %v499_v61, %v503_v62  ;;  %v8480_v9 = vcombine.low %v499_v61, %v503_v62  ;;  %v8482_v10 = vcombine.low %v500_v63, %v504_v0  ;;  %v552_v55 = vld [vmem:[#allocation2 + $0xce8] sm:$0xff]  ;;  %v555_v61 = vld [vmem:[#allocation2 + $0xd00] sm:$0xff] }
 0x116   :  { %v559_v62 = vld [vmem:[#allocation2 + $0xd20] sm:$0xff] }
 0x117   :  { %2962 = vmatpush1.bf16.msra.mxu0 %v8416_v4  ;;  %3126 = vmatpush1.bf16.msra.mxu1 %v8418_v5  ;;  %v8483_v4 = vcombine.high %v500_v63, %v504_v0  ;;  %v507_v5 = vld [vmem:[#allocation2 + $0xb80] sm:$0xff]  ;;  %v556_v63 = vld [vmem:[#allocation2 + $0xd08] sm:$0xff] }
 0x118   :  { %2963 = vmatprep.subr.bf16.mxu0 %v8425_v6  ;;  %3127 = vmatprep.subr.bf16.mxu1 %v8427_v7  ;;  %v511_v6 = vld [vmem:[#allocation2 + $0xba0] sm:$0xff]  ;;  %v508_v7 = vld [vmem:[#allocation2 + $0xb88] sm:$0xff] }
 0x119   :  { %v8489_v11 = vcombine.high %v507_v5, %v511_v6  ;;  %v8488_v18 = vcombine.low %v507_v5, %v511_v6  ;;  %v8490_v19 = vcombine.low %v508_v7, %v512_v8  ;;  %v560_v0 = vld [vmem:[#allocation2 + $0xd28] sm:$0xff]  ;;  %v563_v5 = vld [vmem:[#allocation2 + $0xd40] sm:$0xff] }
 0x11a   :  { %v567_v6 = vld [vmem:[#allocation2 + $0xd60] sm:$0xff] }
 0x11b   :  { %2964 = vmatpush1.bf16.msra.mxu0 %v8424_v13  ;;  %3128 = vmatpush1.bf16.msra.mxu1 %v8426_v14  ;;  %v8491_v13 = vcombine.high %v508_v7, %v512_v8  ;;  %v515_v14 = vld [vmem:[#allocation2 + $0xbc0] sm:$0xff]  ;;  %v564_v7 = vld [vmem:[#allocation2 + $0xd48] sm:$0xff] }
 0x11c   :  { %2965 = vmatprep.subr.bf16.mxu0 %v8433_v15  ;;  %3129 = vmatprep.subr.bf16.mxu1 %v8435_v16  ;;  %v519_v15 = vld [vmem:[#allocation2 + $0xbe0] sm:$0xff]  ;;  %v516_v16 = vld [vmem:[#allocation2 + $0xbc8] sm:$0xff] }
 0x11d   :  { %v8497_v20 = vcombine.high %v515_v14, %v519_v15  ;;  %v8496_v28 = vcombine.low %v515_v14, %v519_v15  ;;  %v8498_v30 = vcombine.low %v516_v16, %v520_v17  ;;  %v568_v8 = vld [vmem:[#allocation2 + $0xd68] sm:$0xff]  ;;  %v571_v14 = vld [vmem:[#allocation2 + $0xd80] sm:$0xff] }
 0x11e   :  { %v575_v15 = vld [vmem:[#allocation2 + $0xda0] sm:$0xff] }
 0x11f   :  { %2966 = vmatpush1.bf16.msra.mxu0 %v8432_v21  ;;  %3130 = vmatpush1.bf16.msra.mxu1 %v8434_v22  ;;  %v8499_v21 = vcombine.high %v516_v16, %v520_v17  ;;  %v523_v22 = vld [vmem:[#allocation2 + $0xc00] sm:$0xff]  ;;  %v572_v16 = vld [vmem:[#allocation2 + $0xd88] sm:$0xff] }
 0x120   :  { %2967 = vmatprep.subr.bf16.mxu0 %v8441_v24  ;;  %3131 = vmatprep.subr.bf16.mxu1 %v8443_v26  ;;  %v527_v24 = vld [vmem:[#allocation2 + $0xc20] sm:$0xff]  ;;  %v524_v26 = vld [vmem:[#allocation2 + $0xc08] sm:$0xff] }
 0x121   :  { %v8504_v39 = vcombine.low %v523_v22, %v527_v24  ;;  %v576_v17 = vld [vmem:[#allocation2 + $0xda8] sm:$0xff] }
 0x122   :  { %v8554_v29 = vcombine.low %v572_v16, %v576_v17 }
 0x123   :  { %2968 = vmatpush1.bf16.msra.mxu0 %v8440_v31  ;;  %3132 = vmatpush1.bf16.msra.mxu1 %v8442_v32  ;;  %v8505_v31 = vcombine.high %v523_v22, %v527_v24  ;;  %v8507_v32 = vcombine.high %v524_v26, %v528_v27  ;;  %v579_v22 = vld [vmem:[#allocation2 + $0xdc0] sm:$0xff] }
 0x124   :  { %2969 = vmatprep.subr.bf16.mxu0 %v8449_v33  ;;  %3133 = vmatprep.subr.bf16.mxu1 %v8451_v35  ;;  %v531_v33 = vld [vmem:[#allocation2 + $0xc40] sm:$0xff] }
 0x125   :  { %v535_v35 = vld [vmem:[#allocation2 + $0xc60] sm:$0xff] }
 0x126   :  { %v8512_v47 = vcombine.low %v531_v33, %v535_v35  ;;  %v583_v24 = vld [vmem:[#allocation2 + $0xde0] sm:$0xff] }
 0x127   :  { %2970 = vmatpush1.bf16.msra.mxu0 %v8448_v40  ;;  %3134 = vmatpush1.bf16.msra.mxu1 %v8450_v41  ;;  %v8506_v40 = vcombine.low %v524_v26, %v528_v27  ;;  %v8513_v41 = vcombine.high %v531_v33, %v535_v35  ;;  %v580_v26 = vld [vmem:[#allocation2 + $0xdc8] sm:$0xff]  ;;  %v145_v33 = vld [vmem:[#allocation2 + $0x30] sm:$0xff]  ;;  %v142_v35 = vld [vmem:[#allocation2 + $0x18] sm:$0xff] }
 0x128   :  { %2971 = vmatprep.subr.bf16.mxu0 %v8457_v42  ;;  %3135 = vmatprep.subr.bf16.mxu1 %v8459_v43  ;;  %v8515_v42 = vcombine.high %v532_v37, %v536_v38  ;;  %v539_v43 = vld [vmem:[#allocation2 + $0xc80] sm:$0xff]  ;;  %v584_v27 = vld [vmem:[#allocation2 + $0xde8] sm:$0xff] }
 0x12b   :  { %2972 = vmatpush1.bf16.msra.mxu0 %v8456_v48  ;;  %3136 = vmatpush1.bf16.msra.mxu1 %v8458_v49  ;;  %v8514_v48 = vcombine.low %v532_v37, %v536_v38  ;;  %v8521_v49 = vcombine.high %v539_v43, %v543_v44  ;;  %v146_v37 = vld [vmem:[#allocation2 + $0x38] sm:$0xff]  ;;  %v8560_v38 = vcombine.low %v579_v22, %v583_v24 }
 0x12c   :  { %2973 = vmatprep.subr.bf16.mxu0 %v8465_v50  ;;  %3137 = vmatprep.subr.bf16.mxu1 %v8467_v51  ;;  %v8523_v50 = vcombine.high %v540_v45, %v544_v46  ;;  %v547_v51 = vld [vmem:[#allocation2 + $0xcc0] sm:$0xff] }
 0x12f   :  { %2974 = vmatpush1.bf16.msra.mxu0 %v8464_v56  ;;  %3138 = vmatpush1.bf16.msra.mxu1 %v8466_v58  ;;  %v8520_v56 = vcombine.low %v539_v43, %v543_v44  ;;  %v8522_v58 = vcombine.low %v540_v45, %v544_v46  ;;  %v149_v43 = vld [vmem:[#allocation2 + $0x50] sm:$0xff]  ;;  %v150_v46 = vld [vmem:[#allocation2 + $0x58] sm:$0xff] }
 0x130   :  { %2975 = vmatprep.subr.bf16.mxu0 %v8473_v59  ;;  %3139 = vmatprep.subr.bf16.mxu1 %v8475_v60  ;;  %v8529_v59 = vcombine.high %v547_v51, %v551_v52  ;;  %v8531_v60 = vcombine.high %v548_v54, %v552_v55  ;;  %v153_v44 = vld [vmem:[#allocation2 + $0x70] sm:$0xff] }
 0x133   :  { %2976 = vmatpush1.bf16.msra.mxu0 %v8472_v1  ;;  %3140 = vmatpush1.bf16.msra.mxu1 %v8474_v2  ;;  %v8528_v1 = vcombine.low %v547_v51, %v551_v52  ;;  %v8530_v2 = vcombine.low %v548_v54, %v552_v55  ;;  %v157_v52 = vld [vmem:[#allocation2 + $0x90] sm:$0xff]  ;;  %v158_v55 = vld [vmem:[#allocation2 + $0x98] sm:$0xff] }
 0x134   :  { %2977 = vmatprep.subr.bf16.mxu0 %v8481_v3  ;;  %3141 = vmatprep.subr.bf16.mxu1 %v8483_v4  ;;  %v8537_v3 = vcombine.high %v555_v61, %v559_v62  ;;  %v8539_v4 = vcombine.high %v556_v63, %v560_v0  ;;  %v161_v54 = vld [vmem:[#allocation2 + $0xb0] sm:$0xff] }
 0x137   :  { %2978 = vmatpush1.bf16.msra.mxu0 %v8480_v9  ;;  %3142 = vmatpush1.bf16.msra.mxu1 %v8482_v10  ;;  %v8536_v9 = vcombine.low %v555_v61, %v559_v62  ;;  %v8538_v10 = vcombine.low %v556_v63, %v560_v0  ;;  %v165_v62 = vld [vmem:[#allocation2 + $0xd0] sm:$0xff]  ;;  %v166_v0 = vld [vmem:[#allocation2 + $0xd8] sm:$0xff] }
 0x138   :  { %2979 = vmatprep.subr.bf16.mxu0 %v8489_v11  ;;  %3143 = vmatprep.subr.bf16.mxu1 %v8491_v13  ;;  %v8545_v11 = vcombine.high %v563_v5, %v567_v6  ;;  %v8547_v13 = vcombine.high %v564_v7, %v568_v8  ;;  %v169_v63 = vld [vmem:[#allocation2 + $0xf0] sm:$0xff] }
 0x13b   :  { %2980 = vmatpush1.bf16.msra.mxu0 %v8488_v18  ;;  %3144 = vmatpush1.bf16.msra.mxu1 %v8490_v19  ;;  %v8544_v18 = vcombine.low %v563_v5, %v567_v6  ;;  %v8546_v19 = vcombine.low %v564_v7, %v568_v8  ;;  %v173_v6 = vld [vmem:[#allocation2 + $0x110] sm:$0xff]  ;;  %v174_v8 = vld [vmem:[#allocation2 + $0x118] sm:$0xff] }
 0x13c   :  { %2981 = vmatprep.subr.bf16.mxu0 %v8497_v20  ;;  %3145 = vmatprep.subr.bf16.mxu1 %v8499_v21  ;;  %v8553_v20 = vcombine.high %v571_v14, %v575_v15  ;;  %v8555_v21 = vcombine.high %v572_v16, %v576_v17  ;;  %v177_v7 = vld [vmem:[#allocation2 + $0x130] sm:$0xff]  ;;  %v182_v16 = vld [vmem:[#allocation2 + $0x158] sm:$0xff] }
 0x13d   :  { %v186_v17 = vld [vmem:[#allocation2 + $0x178] sm:$0xff] }
 0x13f   :  { %2982 = vmatpush1.bf16.msra.mxu0 %v8496_v28  ;;  %3146 = vmatpush1.bf16.msra.mxu1 %v8498_v30  ;;  %v8552_v28 = vcombine.low %v571_v14, %v575_v15  ;;  %v8561_v30 = vcombine.high %v579_v22, %v583_v24  ;;  %v181_v14 = vld [vmem:[#allocation2 + $0x150] sm:$0xff] }
 0x140   :  { %2992 = vmatprep.subr.bf16.mxu0 %v8505_v31  ;;  %3156 = vmatprep.subr.bf16.mxu1 %v8507_v32  ;;  %v8563_v31 = vcombine.high %v580_v26, %v584_v27  ;;  %v141_v32 = vld [vmem:[#allocation2 + $0x10] sm:$0xff] }
 0x141   :  { %v185_v15 = vld [vmem:[#allocation2 + $0x170] sm:$0xff] }
 0x142   :  { %2984 = vmatmul.mubr.bf16.vlgmr.msra.gmra.mrb[0].mxu0 %v9808_v36  ;;  %3148 = vmatmul.mubr.bf16.vlgmr.msra.gmra.mrb[0].mxu1 %v9808_v36  ;;  %v189_v22 = vld [vmem:[#allocation2 + $0x190] sm:$0xff] }
 0x143   :  { %2993 = vmatpush1.bf16.msra.mxu0 %v8504_v39  ;;  %3157 = vmatpush1.bf16.msra.mxu1 %v8506_v40  ;;  %v131_v39 = vld [vmem:[%s10177_s0 + $0x30] sm:$0xff]  ;;  %v8562_v40 = vcombine.low %v580_v26, %v584_v27  ;;  %v190_v26 = vld [vmem:[#allocation2 + $0x198] sm:$0xff] }
 0x144   :  { %2994 = vmatprep.subr.bf16.mxu0 %v8513_v41  ;;  %3158 = vmatprep.subr.bf16.mxu1 %v8515_v42  ;;  %v8125_v41 = vcombine.high %v141_v32, %v145_v33  ;;  %v8127_v42 = vcombine.high %v142_v35, %v146_v37  ;;  %v9817_v45 = vpack.c.bf16 %v131_v39, %v131_v39  ;;  %v193_v24 = vld [vmem:[#allocation2 + $0x1b0] sm:$0xff]  ;;  %v194_v27 = vld [vmem:[#allocation2 + $0x1b8] sm:$0xff] }
 0x145   :  { %3024 = vmatprep.mubr.bf16.mxu0 %v9620_v53  ;;  %3188 = vmatprep.mubr.bf16.mxu1 %v9620_v53  ;;  %v8174_v39 = vcombine.low %v190_v26, %v194_v27 }
 0x147   :  { %2995 = vmatpush1.bf16.msra.mxu0 %v8512_v47  ;;  %3159 = vmatpush1.bf16.msra.mxu1 %v8514_v48  ;;  %v154_v47 = vld [vmem:[#allocation2 + $0x78] sm:$0xff]  ;;  %v8124_v48 = vcombine.low %v141_v32, %v145_v33  ;;  %v197_v32 = vld [vmem:[#allocation2 + $0x1d0] sm:$0xff] }
 0x148   :  { %2996 = vmatprep.subr.bf16.mxu0 %v8521_v49  ;;  %3160 = vmatprep.subr.bf16.mxu1 %v8523_v50  ;;  %v8126_v49 = vcombine.low %v142_v35, %v146_v37  ;;  %v8133_v50 = vcombine.high %v149_v43, %v153_v44  ;;  %v8135_v51 = vcombine.high %v150_v46, %v154_v47  ;;  %v201_v33 = vld [vmem:[#allocation2 + $0x1f0] sm:$0xff]  ;;  %v198_v35 = vld [vmem:[#allocation2 + $0x1d8] sm:$0xff] }
 0x149   :  { %v202_v37 = vld [vmem:[#allocation2 + $0x1f8] sm:$0xff] }
 0x14b   :  { %2997 = vmatpush1.bf16.msra.mxu0 %v8520_v56  ;;  %3161 = vmatpush1.bf16.msra.mxu1 %v8522_v58  ;;  %v162_v56 = vld [vmem:[#allocation2 + $0xb8] sm:$0xff]  ;;  %v8132_v58 = vcombine.low %v149_v43, %v153_v44  ;;  %v209_v43 = vld [vmem:[#allocation2 + $0x230] sm:$0xff] }
 0x14c   :  { %2998 = vmatprep.subr.bf16.mxu0 %v8529_v59  ;;  %3162 = vmatprep.subr.bf16.mxu1 %v8531_v60  ;;  %v8134_v59 = vcombine.low %v150_v46, %v154_v47  ;;  %v8141_v60 = vcombine.high %v157_v52, %v161_v54  ;;  %v8143_v61 = vcombine.high %v158_v55, %v162_v56  ;;  %v206_v44 = vld [vmem:[#allocation2 + $0x218] sm:$0xff] }
 0x14d   :  { %v210_v46 = vld [vmem:[#allocation2 + $0x238] sm:$0xff]  ;;  %v8180_v47 = vcombine.low %v197_v32, %v201_v33 }
 0x14f   :  { %2999 = vmatpush1.bf16.msra.mxu0 %v8528_v1  ;;  %3163 = vmatpush1.bf16.msra.mxu1 %v8530_v2  ;;  %v170_v1 = vld [vmem:[#allocation2 + $0xf8] sm:$0xff]  ;;  %v8140_v2 = vcombine.low %v157_v52, %v161_v54  ;;  %v217_v52 = vld [vmem:[#allocation2 + $0x270] sm:$0xff] }
 0x150   :  { %3000 = vmatprep.subr.bf16.mxu0 %v8537_v3  ;;  %3164 = vmatprep.subr.bf16.mxu1 %v8539_v4  ;;  %v8142_v3 = vcombine.low %v158_v55, %v162_v56  ;;  %v8149_v4 = vcombine.high %v165_v62, %v169_v63  ;;  %v8151_v5 = vcombine.high %v166_v0, %v170_v1  ;;  %v214_v54 = vld [vmem:[#allocation2 + $0x258] sm:$0xff] }
 0x151   :  { %v218_v55 = vld [vmem:[#allocation2 + $0x278] sm:$0xff] }
 0x153   :  { %3001 = vmatpush1.bf16.msra.mxu0 %v8536_v9  ;;  %3165 = vmatpush1.bf16.msra.mxu1 %v8538_v10  ;;  %v178_v9 = vld [vmem:[#allocation2 + $0x138] sm:$0xff]  ;;  %v8148_v10 = vcombine.low %v165_v62, %v169_v63  ;;  %v225_v62 = vld [vmem:[#allocation2 + $0x2b0] sm:$0xff] }
 0x154   :  { %3002 = vmatprep.subr.bf16.mxu0 %v8545_v11  ;;  %3166 = vmatprep.subr.bf16.mxu1 %v8547_v13  ;;  %v8150_v11 = vcombine.low %v166_v0, %v170_v1  ;;  %v8157_v13 = vcombine.high %v173_v6, %v177_v7  ;;  %v222_v63 = vld [vmem:[#allocation2 + $0x298] sm:$0xff] }
 0x155   :  { %v226_v0 = vld [vmem:[#allocation2 + $0x2b8] sm:$0xff] }
 0x157   :  { %3003 = vmatpush1.bf16.msra.mxu0 %v8544_v18  ;;  %3167 = vmatpush1.bf16.msra.mxu1 %v8546_v19  ;;  %v8156_v18 = vcombine.low %v173_v6, %v177_v7  ;;  %v8158_v19 = vcombine.low %v174_v8, %v178_v9  ;;  %v233_v6 = vld [vmem:[#allocation2 + $0x2f0] sm:$0xff]  ;;  %v230_v7 = vld [vmem:[#allocation2 + $0x2d8] sm:$0xff] }
 0x158   :  { %3004 = vmatprep.subr.bf16.mxu0 %v8553_v20  ;;  %3168 = vmatprep.subr.bf16.mxu1 %v8555_v21  ;;  %v8165_v20 = vcombine.high %v181_v14, %v185_v15  ;;  %v8167_v21 = vcombine.high %v182_v16, %v186_v17 }
 0x15b   :  { %3005 = vmatpush1.bf16.msra.mxu0 %v8552_v28  ;;  %3169 = vmatpush1.bf16.msra.mxu1 %v8554_v29  ;;  %v8164_v28 = vcombine.low %v181_v14, %v185_v15  ;;  %v8166_v29 = vcombine.low %v182_v16, %v186_v17  ;;  %v241_v14 = vld [vmem:[#allocation2 + $0x330] sm:$0xff]  ;;  %v238_v15 = vld [vmem:[#allocation2 + $0x318] sm:$0xff] }
 0x15c   :  { %3006 = vmatprep.subr.bf16.mxu0 %v8561_v30  ;;  %3170 = vmatprep.subr.bf16.mxu1 %v8563_v31  ;;  %v8173_v30 = vcombine.high %v189_v22, %v193_v24  ;;  %v8175_v31 = vcombine.high %v190_v26, %v194_v27  ;;  %v242_v16 = vld [vmem:[#allocation2 + $0x338] sm:$0xff] }
 0x15d   :  { %v250_v26 = vld [vmem:[#allocation2 + $0x378] sm:$0xff] }
 0x15f   :  { %3007 = vmatpush1.bf16.msra.mxu0 %v8560_v38  ;;  %3171 = vmatpush1.bf16.msra.mxu1 %v8562_v40  ;;  %v8172_v38 = vcombine.low %v189_v22, %v193_v24  ;;  %v8181_v40 = vcombine.high %v197_v32, %v201_v33  ;;  %v249_v22 = vld [vmem:[#allocation2 + $0x370] sm:$0xff]  ;;  %v246_v24 = vld [vmem:[#allocation2 + $0x358] sm:$0xff] }
 0x160   :  { %3197 = vmatprep.subr.bf16.mxu0 %v8125_v41  ;;  %3361 = vmatprep.subr.bf16.mxu1 %v8127_v42  ;;  %v8183_v41 = vcombine.high %v198_v35, %v202_v37  ;;  %v205_v42 = vld [vmem:[#allocation2 + $0x210] sm:$0xff]  ;;  %v254_v33 = vld [vmem:[#allocation2 + $0x398] sm:$0xff] }
 0x161   :  { %v8188_v56 = vcombine.low %v205_v42, %v209_v43  ;;  %v257_v32 = vld [vmem:[#allocation2 + $0x3b0] sm:$0xff] }
 0x162   :  { %3025 = vmatmul.mubr.bf16.vlgmr.msra.gmra.mrb[0].mxu0 %v9817_v45  ;;  %3189 = vmatmul.mubr.bf16.vlgmr.msra.gmra.mrb[0].mxu1 %v9817_v45 }
 0x163   :  { %3198 = vmatpush1.bf16.msra.mxu0 %v8124_v48  ;;  %3362 = vmatpush1.bf16.msra.mxu1 %v8126_v49  ;;  %v8182_v48 = vcombine.low %v198_v35, %v202_v37  ;;  %v8189_v49 = vcombine.high %v205_v42, %v209_v43  ;;  %v258_v35 = vld [vmem:[#allocation2 + $0x3b8] sm:$0xff]  ;;  %v265_v42 = vld [vmem:[#allocation2 + $0x3f0] sm:$0xff] }
 0x164   :  { %3199 = vmatprep.subr.bf16.mxu0 %v8133_v50  ;;  %3363 = vmatprep.subr.bf16.mxu1 %v8135_v51  ;;  %v8191_v50 = vcombine.high %v206_v44, %v210_v46  ;;  %v213_v51 = vld [vmem:[#allocation2 + $0x250] sm:$0xff]  ;;  %v262_v43 = vld [vmem:[#allocation2 + $0x3d8] sm:$0xff] }
 0x165   :  { %3229 = vmatprep.mubr.bf16.mxu0 %v9773_v57  ;;  %3393 = vmatprep.mubr.bf16.mxu1 %v9773_v57  ;;  %v8159_v57 = vcombine.high %v174_v8, %v178_v9  ;;  %v8196_v1 = vcombine.low %v213_v51, %v217_v52  ;;  %v234_v8 = vld [vmem:[#allocation2 + $0x2f8] sm:$0xff] }
 0x167   :  { %3200 = vmatpush1.bf16.msra.mxu0 %v8132_v58  ;;  %3364 = vmatpush1.bf16.msra.mxu1 %v8134_v59  ;;  %v8190_v58 = vcombine.low %v206_v44, %v210_v46  ;;  %v8197_v59 = vcombine.high %v213_v51, %v217_v52  ;;  %v266_v44 = vld [vmem:[#allocation2 + $0x3f8] sm:$0xff]  ;;  %v273_v51 = vld [vmem:[#allocation2 + $0x430] sm:$0xff] }
 0x168   :  { %3201 = vmatprep.subr.bf16.mxu0 %v8141_v60  ;;  %3365 = vmatprep.subr.bf16.mxu1 %v8143_v61  ;;  %v8199_v60 = vcombine.high %v214_v54, %v218_v55  ;;  %v221_v61 = vld [vmem:[#allocation2 + $0x290] sm:$0xff]  ;;  %v270_v52 = vld [vmem:[#allocation2 + $0x418] sm:$0xff] }
 0x169   :  { %v8204_v9 = vcombine.low %v221_v61, %v225_v62 }
 0x16b   :  { %3202 = vmatpush1.bf16.msra.mxu0 %v8140_v2  ;;  %3366 = vmatpush1.bf16.msra.mxu1 %v8142_v3  ;;  %v8198_v2 = vcombine.low %v214_v54, %v218_v55  ;;  %v8205_v3 = vcombine.high %v221_v61, %v225_v62  ;;  %v274_v54 = vld [vmem:[#allocation2 + $0x438] sm:$0xff]  ;;  %v281_v61 = vld [vmem:[#allocation2 + $0x470] sm:$0xff] }
 0x16c   :  { %3203 = vmatprep.subr.bf16.mxu0 %v8149_v4  ;;  %3367 = vmatprep.subr.bf16.mxu1 %v8151_v5  ;;  %v8207_v4 = vcombine.high %v222_v63, %v226_v0  ;;  %v229_v5 = vld [vmem:[#allocation2 + $0x2d0] sm:$0xff]  ;;  %v278_v62 = vld [vmem:[#allocation2 + $0x458] sm:$0xff] }
 0x16d   :  { %v8212_v17 = vcombine.low %v229_v5, %v233_v6 }
 0x16f   :  { %3204 = vmatpush1.bf16.msra.mxu0 %v8148_v10  ;;  %3368 = vmatpush1.bf16.msra.mxu1 %v8150_v11  ;;  %v8206_v10 = vcombine.low %v222_v63, %v226_v0  ;;  %v8213_v11 = vcombine.high %v229_v5, %v233_v6  ;;  %v282_v63 = vld [vmem:[#allocation2 + $0x478] sm:$0xff]  ;;  %v289_v5 = vld [vmem:[#allocation2 + $0x4b0] sm:$0xff] }
 0x170   :  { %3205 = vmatprep.subr.bf16.mxu0 %v8157_v13  ;;  %3369 = vmatprep.subr.bf16.mxu1 %v8159_v57  ;;  %v8215_v13 = vcombine.high %v230_v7, %v234_v8  ;;  %v237_v57 = vld [vmem:[#allocation2 + $0x310] sm:$0xff]  ;;  %v286_v6 = vld [vmem:[#allocation2 + $0x498] sm:$0xff] }
 0x171   :  { %v8220_v27 = vcombine.low %v237_v57, %v241_v14 }
 0x173   :  { %3206 = vmatpush1.bf16.msra.mxu0 %v8156_v18  ;;  %3370 = vmatpush1.bf16.msra.mxu1 %v8158_v19  ;;  %v8214_v18 = vcombine.low %v230_v7, %v234_v8  ;;  %v8221_v19 = vcombine.high %v237_v57, %v241_v14  ;;  %v290_v7 = vld [vmem:[#allocation2 + $0x4b8] sm:$0xff]  ;;  %v297_v57 = vld [vmem:[#allocation2 + $0x4f0] sm:$0xff] }
 0x174   :  { %3207 = vmatprep.subr.bf16.mxu0 %v8165_v20  ;;  %3371 = vmatprep.subr.bf16.mxu1 %v8167_v21  ;;  %v8223_v20 = vcombine.high %v238_v15, %v242_v16  ;;  %v245_v21 = vld [vmem:[#allocation2 + $0x350] sm:$0xff]  ;;  %v294_v14 = vld [vmem:[#allocation2 + $0x4d8] sm:$0xff] }
 0x175   :  { %v8228_v37 = vcombine.low %v245_v21, %v249_v22 }
 0x177   :  { %3208 = vmatpush1.bf16.msra.mxu0 %v8164_v28  ;;  %3372 = vmatpush1.bf16.msra.mxu1 %v8166_v29  ;;  %v8222_v28 = vcombine.low %v238_v15, %v242_v16  ;;  %v8229_v29 = vcombine.high %v245_v21, %v249_v22  ;;  %v298_v15 = vld [vmem:[#allocation2 + $0x4f8] sm:$0xff] }
 0x178   :  { %3209 = vmatprep.subr.bf16.mxu0 %v8173_v30  ;;  %3373 = vmatprep.subr.bf16.mxu1 %v8175_v31  ;;  %v8231_v30 = vcombine.high %v246_v24, %v250_v26  ;;  %v253_v31 = vld [vmem:[#allocation2 + $0x390] sm:$0xff]  ;;  %v302_v21 = vld [vmem:[#allocation2 + $0x518] sm:$0xff] }
 0x179   :  { %v8236_v46 = vcombine.low %v253_v31, %v257_v32  ;;  %v306_v22 = vld [vmem:[#allocation2 + $0x538] sm:$0xff] }
 0x17b   :  { %3210 = vmatpush1.bf16.msra.mxu0 %v8172_v38  ;;  %3374 = vmatpush1.bf16.msra.mxu1 %v8174_v39  ;;  %v8230_v38 = vcombine.low %v246_v24, %v250_v26  ;;  %v8237_v39 = vcombine.high %v253_v31, %v257_v32  ;;  %v8278_v26 = vcombine.low %v294_v14, %v298_v15  ;;  %v314_v31 = vld [vmem:[#allocation2 + $0x578] sm:$0xff] }
 0x17c   :  { %3211 = vmatprep.subr.bf16.mxu0 %v8181_v40  ;;  %3375 = vmatprep.subr.bf16.mxu1 %v8183_v41  ;;  %v8239_v40 = vcombine.high %v254_v33, %v258_v35  ;;  %v261_v41 = vld [vmem:[#allocation2 + $0x3d0] sm:$0xff] }
 0x17d   :  { %v8244_v55 = vcombine.low %v261_v41, %v265_v42 }
 0x17f   :  { %3212 = vmatpush1.bf16.msra.mxu0 %v8180_v47  ;;  %3376 = vmatpush1.bf16.msra.mxu1 %v8182_v48  ;;  %v8238_v47 = vcombine.low %v254_v33, %v258_v35  ;;  %v8245_v48 = vcombine.high %v261_v41, %v265_v42  ;;  %v8286_v33 = vcombine.low %v302_v21, %v306_v22  ;;  %v322_v41 = vld [vmem:[#allocation2 + $0x5b8] sm:$0xff] }
 0x180   :  { %3213 = vmatprep.subr.bf16.mxu0 %v8189_v49  ;;  %3377 = vmatprep.subr.bf16.mxu1 %v8191_v50  ;;  %v8247_v49 = vcombine.high %v262_v43, %v266_v44  ;;  %v269_v50 = vld [vmem:[#allocation2 + $0x410] sm:$0xff] }
 0x181   :  { %v8252_v0 = vcombine.low %v269_v50, %v273_v51 }
 0x183   :  { %3214 = vmatpush1.bf16.msra.mxu0 %v8188_v56  ;;  %3378 = vmatpush1.bf16.msra.mxu1 %v8190_v58  ;;  %v8246_v56 = vcombine.low %v262_v43, %v266_v44  ;;  %v8253_v58 = vcombine.high %v269_v50, %v273_v51  ;;  %v330_v50 = vld [vmem:[#allocation2 + $0x5f8] sm:$0xff] }
 0x184   :  { %3215 = vmatprep.subr.bf16.mxu0 %v8197_v59  ;;  %3379 = vmatprep.subr.bf16.mxu1 %v8199_v60  ;;  %v8255_v59 = vcombine.high %v270_v52, %v274_v54  ;;  %v277_v60 = vld [vmem:[#allocation2 + $0x450] sm:$0xff] }
 0x185   :  { %v8260_v8 = vcombine.low %v277_v60, %v281_v61 }
 0x187   :  { %3216 = vmatpush1.bf16.msra.mxu0 %v8196_v1  ;;  %3380 = vmatpush1.bf16.msra.mxu1 %v8198_v2  ;;  %v8254_v1 = vcombine.low %v270_v52, %v274_v54  ;;  %v8261_v2 = vcombine.high %v277_v60, %v281_v61  ;;  %v338_v60 = vld [vmem:[#allocation2 + $0x638] sm:$0xff] }
 0x188   :  { %3217 = vmatprep.subr.bf16.mxu0 %v8205_v3  ;;  %3381 = vmatprep.subr.bf16.mxu1 %v8207_v4  ;;  %v8263_v3 = vcombine.high %v278_v62, %v282_v63  ;;  %v285_v4 = vld [vmem:[#allocation2 + $0x490] sm:$0xff] }
 0x189   :  { %v8268_v16 = vcombine.low %v285_v4, %v289_v5 }
 0x18b   :  { %3218 = vmatpush1.bf16.msra.mxu0 %v8204_v9  ;;  %3382 = vmatpush1.bf16.msra.mxu1 %v8206_v10  ;;  %v8262_v9 = vcombine.low %v278_v62, %v282_v63  ;;  %v8269_v10 = vcombine.high %v285_v4, %v289_v5  ;;  %v346_v4 = vld [vmem:[#allocation2 + $0x678] sm:$0xff] }
 0x18c   :  { %3219 = vmatprep.subr.bf16.mxu0 %v8213_v11  ;;  %3383 = vmatprep.subr.bf16.mxu1 %v8215_v13  ;;  %v8271_v11 = vcombine.high %v286_v6, %v290_v7  ;;  %v293_v13 = vld [vmem:[#allocation2 + $0x4d0] sm:$0xff] }
 0x18d   :  { %v8276_v24 = vcombine.low %v293_v13, %v297_v57 }
 0x18f   :  { %3220 = vmatpush1.bf16.msra.mxu0 %v8212_v17  ;;  %3384 = vmatpush1.bf16.msra.mxu1 %v8214_v18  ;;  %v8277_v17 = vcombine.high %v293_v13, %v297_v57  ;;  %v8279_v18 = vcombine.high %v294_v14, %v298_v15  ;;  %v354_v13 = vld [vmem:[#allocation2 + $0x6b8] sm:$0xff] }
 0x190   :  { %3221 = vmatprep.subr.bf16.mxu0 %v8221_v19  ;;  %3385 = vmatprep.subr.bf16.mxu1 %v8223_v20  ;;  %v301_v19 = vld [vmem:[#allocation2 + $0x510] sm:$0xff] }
 0x191   :  { %v305_v20 = vld [vmem:[#allocation2 + $0x530] sm:$0xff] }
 0x192   :  { %v8284_v32 = vcombine.low %v301_v19, %v305_v20 }
 0x193   :  { %3222 = vmatpush1.bf16.msra.mxu0 %v8220_v27  ;;  %3386 = vmatpush1.bf16.msra.mxu1 %v8222_v28  ;;  %v8285_v27 = vcombine.high %v301_v19, %v305_v20  ;;  %v309_v28 = vld [vmem:[#allocation2 + $0x550] sm:$0xff]  ;;  %v362_v19 = vld [vmem:[#allocation2 + $0x6f8] sm:$0xff] }
 0x194   :  { %3223 = vmatprep.subr.bf16.mxu0 %v8229_v29  ;;  %3387 = vmatprep.subr.bf16.mxu1 %v8231_v30  ;;  %v313_v29 = vld [vmem:[#allocation2 + $0x570] sm:$0xff]  ;;  %v310_v30 = vld [vmem:[#allocation2 + $0x558] sm:$0xff] }
 0x195   :  { %v8293_v35 = vcombine.high %v309_v28, %v313_v29  ;;  %v8292_v42 = vcombine.low %v309_v28, %v313_v29  ;;  %v8294_v43 = vcombine.low %v310_v30, %v314_v31  ;;  %v370_v28 = vld [vmem:[#allocation2 + $0x738] sm:$0xff] }
 0x197   :  { %3224 = vmatpush1.bf16.msra.mxu0 %v8228_v37  ;;  %3388 = vmatpush1.bf16.msra.mxu1 %v8230_v38  ;;  %v8295_v37 = vcombine.high %v310_v30, %v314_v31  ;;  %v317_v38 = vld [vmem:[#allocation2 + $0x590] sm:$0xff] }
 0x198   :  { %3225 = vmatprep.subr.bf16.mxu0 %v8237_v39  ;;  %3389 = vmatprep.subr.bf16.mxu1 %v8239_v40  ;;  %v321_v39 = vld [vmem:[#allocation2 + $0x5b0] sm:$0xff]  ;;  %v318_v40 = vld [vmem:[#allocation2 + $0x598] sm:$0xff] }
 0x199   :  { %v8301_v44 = vcombine.high %v317_v38, %v321_v39  ;;  %v8300_v51 = vcombine.low %v317_v38, %v321_v39  ;;  %v8302_v52 = vcombine.low %v318_v40, %v322_v41  ;;  %v378_v38 = vld [vmem:[#allocation2 + $0x778] sm:$0xff] }
 0x19b   :  { %3226 = vmatpush1.bf16.msra.mxu0 %v8236_v46  ;;  %3390 = vmatpush1.bf16.msra.mxu1 %v8238_v47  ;;  %v8303_v46 = vcombine.high %v318_v40, %v322_v41  ;;  %v325_v47 = vld [vmem:[#allocation2 + $0x5d0] sm:$0xff] }
 0x19c   :  { %3227 = vmatprep.subr.bf16.mxu0 %v8245_v48  ;;  %3391 = vmatprep.subr.bf16.mxu1 %v8247_v49  ;;  %v329_v48 = vld [vmem:[#allocation2 + $0x5f0] sm:$0xff]  ;;  %v326_v49 = vld [vmem:[#allocation2 + $0x5d8] sm:$0xff] }
 0x19d   :  { %v8309_v54 = vcombine.high %v325_v47, %v329_v48  ;;  %v8308_v61 = vcombine.low %v325_v47, %v329_v48  ;;  %v8310_v62 = vcombine.low %v326_v49, %v330_v50  ;;  %v386_v47 = vld [vmem:[#allocation2 + $0x7b8] sm:$0xff] }
 0x19f   :  { %3228 = vmatpush1.bf16.msra.mxu0 %v8244_v55  ;;  %3392 = vmatpush1.bf16.msra.mxu1 %v8246_v56  ;;  %v8311_v55 = vcombine.high %v326_v49, %v330_v50  ;;  %v333_v56 = vld [vmem:[#allocation2 + $0x610] sm:$0xff] }
 0x1a0   :  { %3238 = vmatprep.subr.bf16.mxu0 %v8253_v58  ;;  %3402 = vmatprep.subr.bf16.mxu1 %v8255_v59  ;;  %v337_v58 = vld [vmem:[#allocation2 + $0x630] sm:$0xff]  ;;  %v334_v59 = vld [vmem:[#allocation2 + $0x618] sm:$0xff] }
 0x1a1   :  { %v8317_v63 = vcombine.high %v333_v56, %v337_v58  ;;  %v8316_v5 = vcombine.low %v333_v56, %v337_v58  ;;  %v394_v56 = vld [vmem:[#allocation2 + $0x7f8] sm:$0xff] }
 0x1a2   :  { %3230 = vmatmul.mubr.bf16.vlgmr.msra.gmra.mrb[4].mxu0 %v9780_v12  ;;  %3394 = vmatmul.mubr.bf16.vlgmr.msra.gmra.mrb[4].mxu1 %v9780_v12  ;;  %v8270_v12 = vcombine.low %v286_v6, %v290_v7  ;;  %v8318_v6 = vcombine.low %v334_v59, %v338_v60 }
 0x1a3   :  { %3239 = vmatpush1.bf16.msra.mxu0 %v8252_v0  ;;  %3403 = vmatpush1.bf16.msra.mxu1 %v8254_v1  ;;  %v8319_v0 = vcombine.high %v334_v59, %v338_v60  ;;  %v341_v1 = vld [vmem:[#allocation2 + $0x650] sm:$0xff] }
 0x1a4   :  { %3240 = vmatprep.subr.bf16.mxu0 %v8261_v2  ;;  %3404 = vmatprep.subr.bf16.mxu1 %v8263_v3  ;;  %v345_v2 = vld [vmem:[#allocation2 + $0x670] sm:$0xff]  ;;  %v342_v3 = vld [vmem:[#allocation2 + $0x658] sm:$0xff] }
 0x1a5   :  { %3270 = vmatprep.mubr.bf16.mxu0 %v9785_v23  ;;  %3434 = vmatprep.mubr.bf16.mxu1 %v9785_v23  ;;  %v8287_v23 = vcombine.high %v302_v21, %v306_v22  ;;  %v8325_v7 = vcombine.high %v341_v1, %v345_v2  ;;  %v8324_v57 = vcombine.low %v341_v1, %v345_v2  ;;  %v402_v1 = vld [vmem:[#allocation2 + $0x838] sm:$0xff] }
 0x1a6   :  { %v8326_v14 = vcombine.low %v342_v3, %v346_v4 }
 0x1a7   :  { %3241 = vmatpush1.bf16.msra.mxu0 %v8260_v8  ;;  %3405 = vmatpush1.bf16.msra.mxu1 %v8262_v9  ;;  %v8327_v8 = vcombine.high %v342_v3, %v346_v4  ;;  %v349_v9 = vld [vmem:[#allocation2 + $0x690] sm:$0xff] }
 0x1a8   :  { %3242 = vmatprep.subr.bf16.mxu0 %v8269_v10  ;;  %3406 = vmatprep.subr.bf16.mxu1 %v8271_v11  ;;  %v353_v10 = vld [vmem:[#allocation2 + $0x6b0] sm:$0xff]  ;;  %v350_v11 = vld [vmem:[#allocation2 + $0x698] sm:$0xff] }
 0x1a9   :  { %v8333_v15 = vcombine.high %v349_v9, %v353_v10  ;;  %v8332_v20 = vcombine.low %v349_v9, %v353_v10  ;;  %v8334_v21 = vcombine.low %v350_v11, %v354_v13  ;;  %v410_v9 = vld [vmem:[#allocation2 + $0x878] sm:$0xff] }
 0x1ab   :  { %3243 = vmatpush1.bf16.msra.mxu0 %v8268_v16  ;;  %3407 = vmatpush1.bf16.msra.mxu1 %v8270_v12  ;;  %v8335_v16 = vcombine.high %v350_v11, %v354_v13  ;;  %v357_v12 = vld [vmem:[#allocation2 + $0x6d0] sm:$0xff] }
 0x1ac   :  { %3244 = vmatprep.subr.bf16.mxu0 %v8277_v17  ;;  %3408 = vmatprep.subr.bf16.mxu1 %v8279_v18  ;;  %v361_v17 = vld [vmem:[#allocation2 + $0x6f0] sm:$0xff]  ;;  %v358_v18 = vld [vmem:[#allocation2 + $0x6d8] sm:$0xff] }
 0x1ad   :  { %v8341_v22 = vcombine.high %v357_v12, %v361_v17  ;;  %v8340_v29 = vcombine.low %v357_v12, %v361_v17  ;;  %v8342_v30 = vcombine.low %v358_v18, %v362_v19  ;;  %v418_v12 = vld [vmem:[#allocation2 + $0x8b8] sm:$0xff] }
 0x1af   :  { %3245 = vmatpush1.bf16.msra.mxu0 %v8276_v24  ;;  %3409 = vmatpush1.bf16.msra.mxu1 %v8278_v26  ;;  %v8343_v24 = vcombine.high %v358_v18, %v362_v19  ;;  %v365_v26 = vld [vmem:[#allocation2 + $0x710] sm:$0xff] }
 0x1b0   :  { %3246 = vmatprep.subr.bf16.mxu0 %v8285_v27  ;;  %3410 = vmatprep.subr.bf16.mxu1 %v8287_v23  ;;  %v369_v27 = vld [vmem:[#allocation2 + $0x730] sm:$0xff]  ;;  %v366_v23 = vld [vmem:[#allocation2 + $0x718] sm:$0xff] }
 0x1b1   :  { %v8349_v31 = vcombine.high %v365_v26, %v369_v27  ;;  %v8348_v39 = vcombine.low %v365_v26, %v369_v27  ;;  %v8350_v40 = vcombine.low %v366_v23, %v370_v28  ;;  %v426_v26 = vld [vmem:[#allocation2 + $0x8f8] sm:$0xff] }
 0x1b3   :  { %3247 = vmatpush1.bf16.msra.mxu0 %v8284_v32  ;;  %3411 = vmatpush1.bf16.msra.mxu1 %v8286_v33  ;;  %v8351_v32 = vcombine.high %v366_v23, %v370_v28  ;;  %v373_v33 = vld [vmem:[#allocation2 + $0x750] sm:$0xff] }
 0x1b4   :  { %3248 = vmatprep.subr.bf16.mxu0 %v8293_v35  ;;  %3412 = vmatprep.subr.bf16.mxu1 %v8295_v37  ;;  %v377_v35 = vld [vmem:[#allocation2 + $0x770] sm:$0xff]  ;;  %v374_v37 = vld [vmem:[#allocation2 + $0x758] sm:$0xff] }
 0x1b5   :  { %v8357_v41 = vcombine.high %v373_v33, %v377_v35  ;;  %v8356_v48 = vcombine.low %v373_v33, %v377_v35  ;;  %v8358_v49 = vcombine.low %v374_v37, %v378_v38 }
 0x1b7   :  { %3249 = vmatpush1.bf16.msra.mxu0 %v8292_v42  ;;  %3413 = vmatpush1.bf16.msra.mxu1 %v8294_v43  ;;  %v8359_v42 = vcombine.high %v374_v37, %v378_v38  ;;  %v381_v43 = vld [vmem:[#allocation2 + $0x790] sm:$0xff] }
 0x1b8   :  { %3250 = vmatprep.subr.bf16.mxu0 %v8301_v44  ;;  %3414 = vmatprep.subr.bf16.mxu1 %v8303_v46  ;;  %v385_v44 = vld [vmem:[#allocation2 + $0x7b0] sm:$0xff]  ;;  %v382_v46 = vld [vmem:[#allocation2 + $0x798] sm:$0xff] }
 0x1b9   :  { %v8365_v50 = vcombine.high %v381_v43, %v385_v44  ;;  %v8364_v58 = vcombine.low %v381_v43, %v385_v44  ;;  %v8366_v59 = vcombine.low %v382_v46, %v386_v47  ;;  %v437_v38 = vld [vmem:[#allocation2 + $0x950] sm:$0xff] }
 0x1bb   :  { %3251 = vmatpush1.bf16.msra.mxu0 %v8300_v51  ;;  %3415 = vmatpush1.bf16.msra.mxu1 %v8302_v52  ;;  %v8367_v51 = vcombine.high %v382_v46, %v386_v47  ;;  %v389_v52 = vld [vmem:[#allocation2 + $0x7d0] sm:$0xff] }
 0x1bc   :  { %3252 = vmatprep.subr.bf16.mxu0 %v8309_v54  ;;  %3416 = vmatprep.subr.bf16.mxu1 %v8311_v55  ;;  %v393_v54 = vld [vmem:[#allocation2 + $0x7f0] sm:$0xff]  ;;  %v390_v55 = vld [vmem:[#allocation2 + $0x7d8] sm:$0xff] }
 0x1bd   :  { %v8373_v60 = vcombine.high %v389_v52, %v393_v54  ;;  %v8372_v2 = vcombine.low %v389_v52, %v393_v54  ;;  %v8374_v3 = vcombine.low %v390_v55, %v394_v56  ;;  %v445_v47 = vld [vmem:[#allocation2 + $0x990] sm:$0xff] }
 0x1bf   :  { %3253 = vmatpush1.bf16.msra.mxu0 %v8308_v61  ;;  %3417 = vmatpush1.bf16.msra.mxu1 %v8310_v62  ;;  %v8375_v61 = vcombine.high %v390_v55, %v394_v56  ;;  %v397_v62 = vld [vmem:[#allocation2 + $0x810] sm:$0xff] }
 0x1c0   :  { %3254 = vmatprep.subr.bf16.mxu0 %v8317_v63  ;;  %3418 = vmatprep.subr.bf16.mxu1 %v8319_v0  ;;  %v401_v63 = vld [vmem:[#allocation2 + $0x830] sm:$0xff]  ;;  %v398_v0 = vld [vmem:[#allocation2 + $0x818] sm:$0xff] }
 0x1c1   :  { %v8381_v4 = vcombine.high %v397_v62, %v401_v63  ;;  %v8380_v10 = vcombine.low %v397_v62, %v401_v63  ;;  %v8382_v11 = vcombine.low %v398_v0, %v402_v1  ;;  %v453_v56 = vld [vmem:[#allocation2 + $0x9d0] sm:$0xff] }
 0x1c3   :  { %3255 = vmatpush1.bf16.msra.mxu0 %v8316_v5  ;;  %3419 = vmatpush1.bf16.msra.mxu1 %v8318_v6  ;;  %v8383_v5 = vcombine.high %v398_v0, %v402_v1  ;;  %v405_v6 = vld [vmem:[#allocation2 + $0x850] sm:$0xff] }
 0x1c4   :  { %3256 = vmatprep.subr.bf16.mxu0 %v8325_v7  ;;  %3420 = vmatprep.subr.bf16.mxu1 %v8327_v8  ;;  %v409_v7 = vld [vmem:[#allocation2 + $0x870] sm:$0xff]  ;;  %v406_v8 = vld [vmem:[#allocation2 + $0x858] sm:$0xff] }
 0x1c5   :  { %v8389_v13 = vcombine.high %v405_v6, %v409_v7  ;;  %v8388_v17 = vcombine.low %v405_v6, %v409_v7  ;;  %v8390_v18 = vcombine.low %v406_v8, %v410_v9  ;;  %v461_v1 = vld [vmem:[#allocation2 + $0xa10] sm:$0xff] }
 0x1c7   :  { %3257 = vmatpush1.bf16.msra.mxu0 %v8324_v57  ;;  %3421 = vmatpush1.bf16.msra.mxu1 %v8326_v14  ;;  %v8391_v57 = vcombine.high %v406_v8, %v410_v9  ;;  %v413_v14 = vld [vmem:[#allocation2 + $0x890] sm:$0xff] }
 0x1c8   :  { %3258 = vmatprep.subr.bf16.mxu0 %v8333_v15  ;;  %3422 = vmatprep.subr.bf16.mxu1 %v8335_v16  ;;  %v417_v15 = vld [vmem:[#allocation2 + $0x8b0] sm:$0xff]  ;;  %v414_v16 = vld [vmem:[#allocation2 + $0x898] sm:$0xff] }
 0x1c9   :  { %v8397_v19 = vcombine.high %v413_v14, %v417_v15  ;;  %v8396_v27 = vcombine.low %v413_v14, %v417_v15  ;;  %v469_v9 = vld [vmem:[#allocation2 + $0xa50] sm:$0xff] }
 0x1cb   :  { %3259 = vmatpush1.bf16.msra.mxu0 %v8332_v20  ;;  %3423 = vmatpush1.bf16.msra.mxu1 %v8334_v21  ;;  %v8399_v20 = vcombine.high %v414_v16, %v418_v12  ;;  %v421_v21 = vld [vmem:[#allocation2 + $0x8d0] sm:$0xff] }
 0x1cc   :  { %3260 = vmatprep.subr.bf16.mxu0 %v8341_v22  ;;  %3424 = vmatprep.subr.bf16.mxu1 %v8343_v24  ;;  %v425_v22 = vld [vmem:[#allocation2 + $0x8f0] sm:$0xff]  ;;  %v422_v24 = vld [vmem:[#allocation2 + $0x8d8] sm:$0xff] }
 0x1cd   :  { %v8405_v23 = vcombine.high %v421_v21, %v425_v22  ;;  %v8407_v28 = vcombine.high %v422_v24, %v426_v26  ;;  %v8404_v33 = vcombine.low %v421_v21, %v425_v22  ;;  %v8406_v35 = vcombine.low %v422_v24, %v426_v26  ;;  %v485_v26 = vld [vmem:[#allocation2 + $0xad0] sm:$0xff] }
 0x1cf   :  { %3261 = vmatpush1.bf16.msra.mxu0 %v8340_v29  ;;  %3425 = vmatpush1.bf16.msra.mxu1 %v8342_v30  ;;  %v429_v29 = vld [vmem:[#allocation2 + $0x910] sm:$0xff] }
 0x1d0   :  { %3262 = vmatprep.subr.bf16.mxu0 %v8349_v31  ;;  %3426 = vmatprep.subr.bf16.mxu1 %v8351_v32  ;;  %v433_v30 = vld [vmem:[#allocation2 + $0x930] sm:$0xff]  ;;  %v430_v31 = vld [vmem:[#allocation2 + $0x918] sm:$0xff] }
 0x1d1   :  { %v434_v32 = vld [vmem:[#allocation2 + $0x938] sm:$0xff]  ;;  %v8413_v37 = vcombine.high %v429_v29, %v433_v30 }
 0x1d2   :  { %v8414_v43 = vcombine.low %v430_v31, %v434_v32 }
 0x1d3   :  { %3263 = vmatpush1.bf16.msra.mxu0 %v8348_v39  ;;  %3427 = vmatpush1.bf16.msra.mxu1 %v8350_v40  ;;  %v441_v39 = vld [vmem:[#allocation2 + $0x970] sm:$0xff]  ;;  %v438_v40 = vld [vmem:[#allocation2 + $0x958] sm:$0xff] }
 0x1d4   :  { %3264 = vmatprep.subr.bf16.mxu0 %v8357_v41  ;;  %3428 = vmatprep.subr.bf16.mxu1 %v8359_v42  ;;  %v442_v41 = vld [vmem:[#allocation2 + $0x978] sm:$0xff]  ;;  %v8412_v42 = vcombine.low %v429_v29, %v433_v30  ;;  %v8421_v44 = vcombine.high %v437_v38, %v441_v39 }
 0x1d5   :  { %v8423_v46 = vcombine.high %v438_v40, %v442_v41  ;;  %v8422_v52 = vcombine.low %v438_v40, %v442_v41  ;;  %v501_v41 = vld [vmem:[#allocation2 + $0xb50] sm:$0xff] }
 0x1d7   :  { %3265 = vmatpush1.bf16.msra.mxu0 %v8356_v48  ;;  %3429 = vmatpush1.bf16.msra.mxu1 %v8358_v49  ;;  %v449_v48 = vld [vmem:[#allocation2 + $0x9b0] sm:$0xff]  ;;  %v446_v49 = vld [vmem:[#allocation2 + $0x998] sm:$0xff] }
 0x1d8   :  { %3266 = vmatprep.subr.bf16.mxu0 %v8365_v50  ;;  %3430 = vmatprep.subr.bf16.mxu1 %v8367_v51  ;;  %v450_v50 = vld [vmem:[#allocation2 + $0x9b8] sm:$0xff]  ;;  %v8420_v51 = vcombine.low %v437_v38, %v441_v39  ;;  %v8429_v54 = vcombine.high %v445_v47, %v449_v48 }
 0x1d9   :  { %v8431_v55 = vcombine.high %v446_v49, %v450_v50  ;;  %v8430_v62 = vcombine.low %v446_v49, %v450_v50  ;;  %v509_v50 = vld [vmem:[#allocation2 + $0xb90] sm:$0xff] }
 0x1db   :  { %3267 = vmatpush1.bf16.msra.mxu0 %v8364_v58  ;;  %3431 = vmatpush1.bf16.msra.mxu1 %v8366_v59  ;;  %v457_v58 = vld [vmem:[#allocation2 + $0x9f0] sm:$0xff]  ;;  %v454_v59 = vld [vmem:[#allocation2 + $0x9d8] sm:$0xff] }
 0x1dc   :  { %3268 = vmatprep.subr.bf16.mxu0 %v8373_v60  ;;  %3432 = vmatprep.subr.bf16.mxu1 %v8375_v61  ;;  %v458_v60 = vld [vmem:[#allocation2 + $0x9f8] sm:$0xff]  ;;  %v8428_v61 = vcombine.low %v445_v47, %v449_v48  ;;  %v8437_v63 = vcombine.high %v453_v56, %v457_v58 }
 0x1dd   :  { %v8439_v0 = vcombine.high %v454_v59, %v458_v60  ;;  %v8438_v6 = vcombine.low %v454_v59, %v458_v60  ;;  %v517_v60 = vld [vmem:[#allocation2 + $0xbd0] sm:$0xff] }
 0x1df   :  { %3269 = vmatpush1.bf16.msra.mxu0 %v8372_v2  ;;  %3433 = vmatpush1.bf16.msra.mxu1 %v8374_v3  ;;  %v465_v2 = vld [vmem:[#allocation2 + $0xa30] sm:$0xff]  ;;  %v462_v3 = vld [vmem:[#allocation2 + $0xa18] sm:$0xff] }
 0x1e0   :  { %3279 = vmatprep.subr.bf16.mxu0 %v8381_v4  ;;  %3443 = vmatprep.subr.bf16.mxu1 %v8383_v5  ;;  %v466_v4 = vld [vmem:[#allocation2 + $0xa38] sm:$0xff]  ;;  %v8436_v5 = vcombine.low %v453_v56, %v457_v58  ;;  %v8445_v7 = vcombine.high %v461_v1, %v465_v2 }
 0x1e1   :  { %v8447_v8 = vcombine.high %v462_v3, %v466_v4  ;;  %v8446_v14 = vcombine.low %v462_v3, %v466_v4  ;;  %v525_v4 = vld [vmem:[#allocation2 + $0xc10] sm:$0xff] }
 0x1e2   :  { %3271 = vmatmul.mubr.bf16.vlgmr.msra.gmra.mrb[4].mxu0 %v9797_v25  ;;  %3435 = vmatmul.mubr.bf16.vlgmr.msra.gmra.mrb[4].mxu1 %v9797_v25  ;;  %v8398_v25 = vcombine.low %v414_v16, %v418_v12  ;;  %v477_v12 = vld [vmem:[#allocation2 + $0xa90] sm:$0xff] }
 0x1e3   :  { %3280 = vmatpush1.bf16.msra.mxu0 %v8380_v10  ;;  %3444 = vmatpush1.bf16.msra.mxu1 %v8382_v11  ;;  %v473_v10 = vld [vmem:[#allocation2 + $0xa70] sm:$0xff]  ;;  %v470_v11 = vld [vmem:[#allocation2 + $0xa58] sm:$0xff] }
 0x1e4   :  { %3281 = vmatprep.subr.bf16.mxu0 %v8389_v13  ;;  %3445 = vmatprep.subr.bf16.mxu1 %v8391_v57  ;;  %v474_v13 = vld [vmem:[#allocation2 + $0xa78] sm:$0xff]  ;;  %v8444_v57 = vcombine.low %v461_v1, %v465_v2  ;;  %v8453_v15 = vcombine.high %v469_v9, %v473_v10 }
 0x1e5   :  { %3311 = vmatprep.mubr.bf16.mxu0 %v9799_v34  ;;  %3475 = vmatprep.mubr.bf16.mxu1 %v9799_v34  ;;  %v8415_v34 = vcombine.high %v430_v31, %v434_v32  ;;  %v8455_v16 = vcombine.high %v470_v11, %v474_v13  ;;  %v8454_v21 = vcombine.low %v470_v11, %v474_v13  ;;  %v493_v32 = vld [vmem:[#allocation2 + $0xb10] sm:$0xff] }
 0x1e6   :  { %v533_v13 = vld [vmem:[#allocation2 + $0xc50] sm:$0xff] }
 0x1e7   :  { %3282 = vmatpush1.bf16.msra.mxu0 %v8388_v17  ;;  %3446 = vmatpush1.bf16.msra.mxu1 %v8390_v18  ;;  %v481_v17 = vld [vmem:[#allocation2 + $0xab0] sm:$0xff]  ;;  %v478_v18 = vld [vmem:[#allocation2 + $0xa98] sm:$0xff] }
 0x1e8   :  { %3283 = vmatprep.subr.bf16.mxu0 %v8397_v19  ;;  %3447 = vmatprep.subr.bf16.mxu1 %v8399_v20  ;;  %v482_v19 = vld [vmem:[#allocation2 + $0xab8] sm:$0xff]  ;;  %v8452_v20 = vcombine.low %v469_v9, %v473_v10  ;;  %v8461_v22 = vcombine.high %v477_v12, %v481_v17 }
 0x1e9   :  { %v8463_v24 = vcombine.high %v478_v18, %v482_v19  ;;  %v8462_v29 = vcombine.low %v478_v18, %v482_v19  ;;  %v541_v19 = vld [vmem:[#allocation2 + $0xc90] sm:$0xff] }
 0x1eb   :  { %3284 = vmatpush1.bf16.msra.mxu0 %v8396_v27  ;;  %3448 = vmatpush1.bf16.msra.mxu1 %v8398_v25  ;;  %v489_v27 = vld [vmem:[#allocation2 + $0xaf0] sm:$0xff]  ;;  %v486_v25 = vld [vmem:[#allocation2 + $0xad8] sm:$0xff] }
 0x1ec   :  { %3285 = vmatprep.subr.bf16.mxu0 %v8405_v23  ;;  %3449 = vmatprep.subr.bf16.mxu1 %v8407_v28  ;;  %v490_v23 = vld [vmem:[#allocation2 + $0xaf8] sm:$0xff]  ;;  %v8460_v28 = vcombine.low %v477_v12, %v481_v17  ;;  %v8469_v30 = vcombine.high %v485_v26, %v489_v27 }
 0x1ed   :  { %v8471_v31 = vcombine.high %v486_v25, %v490_v23  ;;  %v8470_v38 = vcombine.low %v486_v25, %v490_v23  ;;  %v549_v23 = vld [vmem:[#allocation2 + $0xcd0] sm:$0xff] }
 0x1ef   :  { %3286 = vmatpush1.bf16.msra.mxu0 %v8404_v33  ;;  %3450 = vmatpush1.bf16.msra.mxu1 %v8406_v35  ;;  %v497_v33 = vld [vmem:[#allocation2 + $0xb30] sm:$0xff]  ;;  %v494_v35 = vld [vmem:[#allocation2 + $0xb18] sm:$0xff] }
 0x1f0   :  { %3287 = vmatprep.subr.bf16.mxu0 %v8413_v37  ;;  %3451 = vmatprep.subr.bf16.mxu1 %v8415_v34  ;;  %v498_v37 = vld [vmem:[#allocation2 + $0xb38] sm:$0xff]  ;;  %v8468_v34 = vcombine.low %v485_v26, %v489_v27  ;;  %v8477_v39 = vcombine.high %v493_v32, %v497_v33 }
 0x1f1   :  { %v8479_v40 = vcombine.high %v494_v35, %v498_v37  ;;  %v8478_v47 = vcombine.low %v494_v35, %v498_v37  ;;  %v557_v35 = vld [vmem:[#allocation2 + $0xd10] sm:$0xff] }
 0x1f2   :  { %v561_v37 = vld [vmem:[#allocation2 + $0xd30] sm:$0xff] }
 0x1f3   :  { %3288 = vmatpush1.bf16.msra.mxu0 %v8412_v42  ;;  %3452 = vmatpush1.bf16.msra.mxu1 %v8414_v43  ;;  %v505_v42 = vld [vmem:[#allocation2 + $0xb70] sm:$0xff]  ;;  %v502_v43 = vld [vmem:[#allocation2 + $0xb58] sm:$0xff] }
 0x1f4   :  { %3289 = vmatprep.subr.bf16.mxu0 %v8421_v44  ;;  %3453 = vmatprep.subr.bf16.mxu1 %v8423_v46  ;;  %v506_v44 = vld [vmem:[#allocation2 + $0xb78] sm:$0xff]  ;;  %v8476_v46 = vcombine.low %v493_v32, %v497_v33  ;;  %v8485_v48 = vcombine.high %v501_v41, %v505_v42 }
 0x1f5   :  { %v8487_v49 = vcombine.high %v502_v43, %v506_v44  ;;  %v8486_v56 = vcombine.low %v502_v43, %v506_v44  ;;  %v565_v43 = vld [vmem:[#allocation2 + $0xd50] sm:$0xff] }
 0x1f6   :  { %v569_v44 = vld [vmem:[#allocation2 + $0xd70] sm:$0xff] }
 0x1f7   :  { %3290 = vmatpush1.bf16.msra.mxu0 %v8420_v51  ;;  %3454 = vmatpush1.bf16.msra.mxu1 %v8422_v52  ;;  %v513_v51 = vld [vmem:[#allocation2 + $0xbb0] sm:$0xff]  ;;  %v510_v52 = vld [vmem:[#allocation2 + $0xb98] sm:$0xff] }
 0x1f8   :  { %3291 = vmatprep.subr.bf16.mxu0 %v8429_v54  ;;  %3455 = vmatprep.subr.bf16.mxu1 %v8431_v55  ;;  %v514_v54 = vld [vmem:[#allocation2 + $0xbb8] sm:$0xff]  ;;  %v8484_v55 = vcombine.low %v501_v41, %v505_v42  ;;  %v8493_v58 = vcombine.high %v509_v50, %v513_v51  ;;  %v8541_v42 = vcombine.high %v557_v35, %v561_v37 }
 0x1f9   :  { %v8495_v59 = vcombine.high %v510_v52, %v514_v54  ;;  %v8494_v1 = vcombine.low %v510_v52, %v514_v54  ;;  %v573_v54 = vld [vmem:[#allocation2 + $0xd90] sm:$0xff] }
 0x1fb   :  { %3292 = vmatpush1.bf16.msra.mxu0 %v8428_v61  ;;  %3456 = vmatpush1.bf16.msra.mxu1 %v8430_v62  ;;  %v521_v61 = vld [vmem:[#allocation2 + $0xbf0] sm:$0xff]  ;;  %v518_v62 = vld [vmem:[#allocation2 + $0xbd8] sm:$0xff] }
 0x1fc   :  { %3293 = vmatprep.subr.bf16.mxu0 %v8437_v63  ;;  %3457 = vmatprep.subr.bf16.mxu1 %v8439_v0  ;;  %v522_v63 = vld [vmem:[#allocation2 + $0xbf8] sm:$0xff]  ;;  %v8492_v0 = vcombine.low %v509_v50, %v513_v51  ;;  %v8501_v2 = vcombine.high %v517_v60, %v521_v61  ;;  %v8549_v51 = vcombine.high %v565_v43, %v569_v44 }
 0x1fd   :  { %v8503_v3 = vcombine.high %v518_v62, %v522_v63  ;;  %v8502_v9 = vcombine.low %v518_v62, %v522_v63 }
 0x1ff   :  { %3294 = vmatpush1.bf16.msra.mxu0 %v8436_v5  ;;  %3458 = vmatpush1.bf16.msra.mxu1 %v8438_v6  ;;  %v529_v5 = vld [vmem:[#allocation2 + $0xc30] sm:$0xff]  ;;  %v526_v6 = vld [vmem:[#allocation2 + $0xc18] sm:$0xff] }
 0x200   :  { %3295 = vmatprep.subr.bf16.mxu0 %v8445_v7  ;;  %3459 = vmatprep.subr.bf16.mxu1 %v8447_v8  ;;  %v530_v7 = vld [vmem:[#allocation2 + $0xc38] sm:$0xff]  ;;  %v8500_v8 = vcombine.low %v517_v60, %v521_v61  ;;  %v8509_v10 = vcombine.high %v525_v4, %v529_v5  ;;  %v9839_v60 = vld [vmem:[#allocation4] sm:$0xff]  ;;  %v8548_v61 = vcombine.low %v565_v43, %v569_v44  ;;  %v3565_v44 = vld [vmem:[#allocation6 + $0xc0] sm:$0xff] }
 0x201   :  { %v8511_v11 = vcombine.high %v526_v6, %v530_v7  ;;  %v8510_v12 = vcombine.low %v526_v6, %v530_v7  ;;  %v582_v7 = vld [vmem:[#allocation2 + $0xdd8] sm:$0xff] }
 0x203   :  { %3296 = vmatpush1.bf16.msra.mxu0 %v8444_v57  ;;  %3460 = vmatpush1.bf16.msra.mxu1 %v8446_v14  ;;  %v537_v57 = vld [vmem:[#allocation2 + $0xc70] sm:$0xff]  ;;  %v534_v14 = vld [vmem:[#allocation2 + $0xc58] sm:$0xff] }
 0x204   :  { %3297 = vmatprep.subr.bf16.mxu0 %v8453_v15  ;;  %3461 = vmatprep.subr.bf16.mxu1 %v8455_v16  ;;  %v538_v15 = vld [vmem:[#allocation2 + $0xc78] sm:$0xff]  ;;  %v8508_v16 = vcombine.low %v525_v4, %v529_v5  ;;  %v8517_v17 = vcombine.high %v533_v13, %v537_v57 }
 0x205   :  { %v8519_v18 = vcombine.high %v534_v14, %v538_v15  ;;  %v8518_v26 = vcombine.low %v534_v14, %v538_v15 }
 0x207   :  { %3298 = vmatpush1.bf16.msra.mxu0 %v8452_v20  ;;  %3462 = vmatpush1.bf16.msra.mxu1 %v8454_v21  ;;  %v545_v20 = vld [vmem:[#allocation2 + $0xcb0] sm:$0xff]  ;;  %v542_v21 = vld [vmem:[#allocation2 + $0xc98] sm:$0xff] }
 0x208   :  { %3299 = vmatprep.subr.bf16.mxu0 %v8461_v22  ;;  %3463 = vmatprep.subr.bf16.mxu1 %v8463_v24  ;;  %v546_v22 = vld [vmem:[#allocation2 + $0xcb8] sm:$0xff]  ;;  %v8516_v24 = vcombine.low %v533_v13, %v537_v57  ;;  %v8525_v27 = vcombine.high %v541_v19, %v545_v20 }
 0x209   :  { %v8527_v25 = vcombine.high %v542_v21, %v546_v22 }
 0x20b   :  { %3300 = vmatpush1.bf16.msra.mxu0 %v8460_v28  ;;  %3464 = vmatpush1.bf16.msra.mxu1 %v8462_v29  ;;  %v553_v28 = vld [vmem:[#allocation2 + $0xcf0] sm:$0xff]  ;;  %v550_v29 = vld [vmem:[#allocation2 + $0xcd8] sm:$0xff] }
 0x20c   :  { %3301 = vmatprep.subr.bf16.mxu0 %v8469_v30  ;;  %3465 = vmatprep.subr.bf16.mxu1 %v8471_v31  ;;  %v554_v30 = vld [vmem:[#allocation2 + $0xcf8] sm:$0xff]  ;;  %v8524_v31 = vcombine.low %v541_v19, %v545_v20  ;;  %v8533_v32 = vcombine.high %v549_v23, %v553_v28  ;;  %v3542_v20 = vld [vmem:[#allocation6 + $0x8] sm:$0xff] }
 0x20d   :  { %v8535_v33 = vcombine.high %v550_v29, %v554_v30  ;;  %v8534_v41 = vcombine.low %v550_v29, %v554_v30  ;;  %v3550_v30 = vld [vmem:[#allocation6 + $0x48] sm:$0xff] }
 0x20f   :  { %3302 = vmatpush1.bf16.msra.mxu0 %v8468_v34  ;;  %3466 = vmatpush1.bf16.msra.mxu1 %v8470_v38  ;;  %v558_v34 = vld [vmem:[#allocation2 + $0xd18] sm:$0xff] }
 0x210   :  { %3303 = vmatprep.subr.bf16.mxu0 %v8477_v39  ;;  %3467 = vmatprep.subr.bf16.mxu1 %v8479_v40  ;;  %v562_v38 = vld [vmem:[#allocation2 + $0xd38] sm:$0xff]  ;;  %v589_v39 = vlaneseq  ;;  %v8532_v40 = vcombine.low %v549_v23, %v553_v28  ;;  %v3549_v23 = vld [vmem:[#allocation6 + $0x40] sm:$0xff] }
 0x211   :  { %v8542_v50 = vcombine.low %v558_v34, %v562_v38  ;;  %v3553_v28 = vld [vmem:[#allocation6 + $0x60] sm:$0xff] }
 0x213   :  { %3304 = vmatpush1.bf16.msra.mxu0 %v8476_v46  ;;  %3468 = vmatpush1.bf16.msra.mxu1 %v8478_v47  ;;  %v9836_v46 = vshrl.u32 %v589_v39, 7  ;;  %v566_v47 = vld [vmem:[#allocation2 + $0xd58] sm:$0xff] }
 0x214   :  { %3305 = vmatprep.subr.bf16.mxu0 %v8485_v48  ;;  %3469 = vmatprep.subr.bf16.mxu1 %v8487_v49  ;;  %v570_v48 = vld [vmem:[#allocation2 + $0xd78] sm:$0xff]  ;;  %v8540_v49 = vcombine.low %v557_v35, %v561_v37  ;;  %v3561_v35 = vld [vmem:[#allocation6 + $0xa0] sm:$0xff] }
 0x215   :  { %v8551_v52 = vcombine.high %v566_v47, %v570_v48  ;;  %v8550_v62 = vcombine.low %v566_v47, %v570_v48  ;;  %v3569_v47 = vld [vmem:[#allocation6 + $0xe0] sm:$0xff]  ;;  %v3566_v48 = vld [vmem:[#allocation6 + $0xc8] sm:$0xff] }
 0x217   :  { %3306 = vmatpush1.bf16.msra.mxu0 %v8484_v55  ;;  %3470 = vmatpush1.bf16.msra.mxu1 %v8486_v56  ;;  %v577_v55 = vld [vmem:[#allocation2 + $0xdb0] sm:$0xff]  ;;  %v595_v56 = vsub.s32 1, %v9836_v46 }
 0x218   :  { %3307 = vmatprep.subr.bf16.mxu0 %v8493_v58  ;;  %3471 = vmatprep.subr.bf16.mxu1 %v8495_v59  ;;  %v574_v58 = vld [vmem:[#allocation2 + $0xd98] sm:$0xff]  ;;  %v8557_v63 = vcombine.high %v573_v54, %v577_v55 }
 0x219   :  { %v578_v59 = vld [vmem:[#allocation2 + $0xdb8] sm:$0xff]  ;;  %v596_v5 = vrot.slane %v9839_v60, %v595_v56 }
 0x21a   :  { %v8558_v14 = vcombine.low %v574_v58, %v578_v59 }
 0x21b   :  { %3308 = vmatpush1.bf16.msra.mxu0 %v8492_v0  ;;  %3472 = vmatpush1.bf16.msra.mxu1 %v8494_v1  ;;  %v8559_v1 = vcombine.high %v574_v58, %v578_v59  ;;  %v3574_v58 = vld [vmem:[#allocation6 + $0x108] sm:$0xff] }
 0x21c   :  { %3309 = vmatprep.subr.bf16.mxu0 %v8501_v2  ;;  %3473 = vmatprep.subr.bf16.mxu1 %v8503_v3  ;;  %v581_v2 = vld [vmem:[#allocation2 + $0xdd0] sm:$0xff] }
 0x21d   :  { %v585_v3 = vld [vmem:[#allocation2 + $0xdf0] sm:$0xff] }
 0x21e   :  { %v8565_v15 = vcombine.high %v581_v2, %v585_v3  ;;  %v3578_v59 = vld [vmem:[#allocation6 + $0x128] sm:$0xff] }
 0x21f   :  { %3310 = vmatpush1.bf16.msra.mxu0 %v8500_v8  ;;  %3474 = vmatpush1.bf16.msra.mxu1 %v8502_v9  ;;  %v586_v8 = vld [vmem:[#allocation2 + $0xdf8] sm:$0xff] }
 0x220   :  { %3320 = vmatprep.subr.bf16.mxu0 %v8509_v10  ;;  %3484 = vmatprep.subr.bf16.mxu1 %v8511_v11  ;;  %v8556_v11 = vcombine.low %v573_v54, %v577_v55  ;;  %v3573_v54 = vld [vmem:[#allocation6 + $0x100] sm:$0xff] }
 0x221   :  { %v3577_v55 = vld [vmem:[#allocation6 + $0x120] sm:$0xff] }
 0x222   :  { %3312 = vmatmul.mubr.bf16.vlgmr.msra.gmra.mrb[4].mxu0 %v9808_v36  ;;  %3476 = vmatmul.mubr.bf16.vlgmr.msra.gmra.mrb[4].mxu1 %v9808_v36  ;;  %v8526_v36 = vcombine.low %v542_v21, %v546_v22  ;;  %v3546_v21 = vld [vmem:[#allocation6 + $0x28] sm:$0xff]  ;;  %v8564_v22 = vcombine.low %v581_v2, %v585_v3  ;;  %v3581_v2 = vld [vmem:[#allocation6 + $0x140] sm:$0xff] }
 0x223   :  { %3321 = vmatpush1.bf16.msra.mxu0 %v8508_v16  ;;  %3485 = vmatpush1.bf16.msra.mxu1 %v8510_v12  ;;  %v8567_v12 = vcombine.high %v582_v7, %v586_v8  ;;  %v3585_v3 = vld [vmem:[#allocation6 + $0x160] sm:$0xff] }
 0x224   :  { %3322 = vmatprep.subr.bf16.mxu0 %v8517_v17  ;;  %3486 = vmatprep.subr.bf16.mxu1 %v8519_v18  ;;  %v3541_v17 = vld [vmem:[#allocation6] sm:$0xff] }
 0x225   :  { %3352 = vmatprep.mubr.bf16.mxu0 %v9620_v53  ;;  %3516 = vmatprep.mubr.bf16.mxu1 %v9620_v53  ;;  %v8543_v53 = vcombine.high %v558_v34, %v562_v38  ;;  %v3545_v18 = vld [vmem:[#allocation6 + $0x20] sm:$0xff]  ;;  %v3558_v38 = vld [vmem:[#allocation6 + $0x88] sm:$0xff] }
 0x226   :  { %v8568_v29 = vcombine.low %v3541_v17, %v3545_v18 }
 0x227   :  { %3323 = vmatpush1.bf16.msra.mxu0 %v8516_v24  ;;  %3487 = vmatpush1.bf16.msra.mxu1 %v8518_v26  ;;  %v8566_v24 = vcombine.low %v582_v7, %v586_v8  ;;  %v8569_v26 = vcombine.high %v3541_v17, %v3545_v18  ;;  %v8600_v7 = vcombine.low %v3573_v54, %v3577_v55 }
 0x228   :  { %3324 = vmatprep.subr.bf16.mxu0 %v8525_v27  ;;  %3488 = vmatprep.subr.bf16.mxu1 %v8527_v25  ;;  %v8571_v27 = vcombine.high %v3542_v20, %v3546_v21  ;;  %v8602_v8 = vcombine.low %v3574_v58, %v3578_v59 }
 0x22b   :  { %3325 = vmatpush1.bf16.msra.mxu0 %v8524_v31  ;;  %3489 = vmatpush1.bf16.msra.mxu1 %v8526_v36  ;;  %v3554_v31 = vld [vmem:[#allocation6 + $0x68] sm:$0xff]  ;;  %v8570_v36 = vcombine.low %v3542_v20, %v3546_v21  ;;  %v3601_v20 = vld [vmem:[#allocation6 + $0x1e0] sm:$0xff] }
 0x22c   :  { %3326 = vmatprep.subr.bf16.mxu0 %v8533_v32  ;;  %3490 = vmatprep.subr.bf16.mxu1 %v8535_v33  ;;  %v8577_v32 = vcombine.high %v3549_v23, %v3553_v28  ;;  %v3557_v33 = vld [vmem:[#allocation6 + $0x80] sm:$0xff]  ;;  %v8579_v34 = vcombine.high %v3550_v30, %v3554_v31  ;;  %v3598_v21 = vld [vmem:[#allocation6 + $0x1c8] sm:$0xff] }
 0x22f   :  { %3327 = vmatpush1.bf16.msra.mxu0 %v8532_v40  ;;  %3491 = vmatpush1.bf16.msra.mxu1 %v8534_v41  ;;  %v3562_v40 = vld [vmem:[#allocation6 + $0xa8] sm:$0xff]  ;;  %v8576_v41 = vcombine.low %v3549_v23, %v3553_v28  ;;  %v3605_v23 = vld [vmem:[#allocation6 + $0x200] sm:$0xff] }
 0x230   :  { %3328 = vmatprep.subr.bf16.mxu0 %v8541_v42  ;;  %3492 = vmatprep.subr.bf16.mxu1 %v8543_v53  ;;  %v8578_v42 = vcombine.low %v3550_v30, %v3554_v31  ;;  %v8585_v53 = vcombine.high %v3557_v33, %v3561_v35  ;;  %v8587_v43 = vcombine.high %v3558_v38, %v3562_v40  ;;  %v3609_v28 = vld [vmem:[#allocation6 + $0x220] sm:$0xff]  ;;  %v3610_v30 = vld [vmem:[#allocation6 + $0x228] sm:$0xff] }
 0x233   :  { %3329 = vmatpush1.bf16.msra.mxu0 %v8540_v49  ;;  %3493 = vmatpush1.bf16.msra.mxu1 %v8542_v50  ;;  %v3570_v49 = vld [vmem:[#allocation6 + $0xe8] sm:$0xff]  ;;  %v8584_v50 = vcombine.low %v3557_v33, %v3561_v35  ;;  %v3613_v35 = vld [vmem:[#allocation6 + $0x240] sm:$0xff] }
 0x234   :  { %3330 = vmatprep.subr.bf16.mxu0 %v8549_v51  ;;  %3494 = vmatprep.subr.bf16.mxu1 %v8551_v52  ;;  %v8593_v51 = vcombine.high %v3565_v44, %v3569_v47  ;;  %v8595_v52 = vcombine.high %v3566_v48, %v3570_v49 }
 0x235   :  { %v9841_v0 = vpop.f32.mrb[0].mxu0  ;;  %v9843_v4 = vpop.f32.mrb[0].mxu1 }
 0x236   :  { %v3028_v6 = vpop.f32.mrb[1].mxu0  ;;  %v9848_v9 = vpop.f32.mrb[1].mxu1 }
 0x237   :  { %v3030_v10 = vpop.f32.mrb[2].mxu0  ;;  %3331 = vmatpush1.bf16.msra.mxu0 %v8548_v61  ;;  %v3194_v13 = vpop.f32.mrb[2].mxu1  ;;  %3495 = vmatpush1.bf16.msra.mxu1 %v8550_v62  ;;  %v9250_v19 = vadd.f32 %v3028_v6, %v596_v5  ;;  %v8592_v61 = vcombine.low %v3565_v44, %v3569_v47  ;;  %v8594_v62 = vcombine.low %v3566_v48, %v3570_v49  ;;  %v3582_v5 = vld [vmem:[#allocation6 + $0x148] sm:$0xff]  ;;  %v3621_v44 = vld [vmem:[#allocation6 + $0x280] sm:$0xff] }
 0x238   :  { %v3031_v57 = vpop.f32.mrb[3].mxu0  ;;  %3332 = vmatprep.subr.bf16.mxu0 %v8557_v63  ;;  %v3195_v16 = vpop.f32.mrb[3].mxu1  ;;  %3496 = vmatprep.subr.bf16.mxu1 %v8559_v1  ;;  %v8601_v63 = vcombine.high %v3573_v54, %v3577_v55  ;;  %v8603_v1 = vcombine.high %v3574_v58, %v3578_v59  ;;  %v3586_v6 = vld [vmem:[#allocation6 + $0x168] sm:$0xff]  ;;  %v8609_v10 = vcombine.high %v3581_v2, %v3585_v3  ;;  %v3589_v13 = vld [vmem:[#allocation6 + $0x180] sm:$0xff] }
 0x239   :  { %v3526_v25 = vmax.f32 %v9250_v19, 0.0  ;;  %v3593_v57 = vld [vmem:[#allocation6 + $0x1a0] sm:$0xff]  ;;  %v8608_v16 = vcombine.low %v3581_v2, %v3585_v3  ;;  %v3622_v48 = vld [vmem:[#allocation6 + $0x288] sm:$0xff] }
 0x23a   :  { %v8617_v17 = vcombine.high %v3589_v13, %v3593_v57  ;;  %v3597_v19 = vld [vmem:[#allocation6 + $0x1c0] sm:$0xff]  ;;  %v3626_v49 = vld [vmem:[#allocation6 + $0x2a8] sm:$0xff] }
 0x23b   :  { %3333 = vmatpush1.bf16.msra.mxu0 %v8556_v11  ;;  %3497 = vmatpush1.bf16.msra.mxu1 %v8558_v14  ;;  %v9850_v37 = vpack.c.bf16 %v3526_v25, %v3526_v25  ;;  %v8611_v11 = vcombine.high %v3582_v5, %v3586_v6  ;;  %v3590_v14 = vld [vmem:[#allocation6 + $0x188] sm:$0xff]  ;;  %v8624_v31 = vcombine.low %v3597_v19, %v3601_v20  ;;  %v3625_v47 = vld [vmem:[#allocation6 + $0x2a0] sm:$0xff] }
 0x23c   :  { %3334 = vmatprep.subr.bf16.mxu0 %v8565_v15  ;;  %3498 = vmatprep.subr.bf16.mxu1 %v8567_v12  ;;  %v3594_v15 = vld [vmem:[#allocation6 + $0x1a8] sm:$0xff]  ;;  %v8610_v12 = vcombine.low %v3582_v5, %v3586_v6  ;;  %v3629_v54 = vld [vmem:[#allocation6 + $0x2c0] sm:$0xff] }
 0x23d   :  { %v8619_v18 = vcombine.high %v3590_v14, %v3594_v15  ;;  %v3633_v55 = vld [vmem:[#allocation6 + $0x2e0] sm:$0xff]  ;;  %v3630_v58 = vld [vmem:[#allocation6 + $0x2c8] sm:$0xff] }
 0x23e   :  { %v3634_v59 = vld [vmem:[#allocation6 + $0x2e8] sm:$0xff]  ;;  %v3637_v2 = vld [vmem:[#allocation6 + $0x300] sm:$0xff] }
 0x23f   :  { %3335 = vmatpush1.bf16.msra.mxu0 %v8564_v22  ;;  %3499 = vmatpush1.bf16.msra.mxu1 %v8566_v24  ;;  %v3602_v22 = vld [vmem:[#allocation6 + $0x1e8] sm:$0xff]  ;;  %v8616_v24 = vcombine.low %v3589_v13, %v3593_v57  ;;  %v3641_v3 = vld [vmem:[#allocation6 + $0x320] sm:$0xff] }
 0x240   :  { %6655 = vmatprep.subr.bf16.mxu0 %v8569_v26  ;;  %6819 = vmatprep.subr.bf16.mxu1 %v8571_v27  ;;  %v8618_v26 = vcombine.low %v3590_v14, %v3594_v15  ;;  %v8625_v27 = vcombine.high %v3597_v19, %v3601_v20  ;;  %v8627_v25 = vcombine.high %v3598_v21, %v3602_v22  ;;  %v3638_v5 = vld [vmem:[#allocation6 + $0x308] sm:$0xff]  ;;  %v3645_v13 = vld [vmem:[#allocation6 + $0x340] sm:$0xff] }
 0x241   :  { %v3642_v6 = vld [vmem:[#allocation6 + $0x328] sm:$0xff]  ;;  %v3649_v57 = vld [vmem:[#allocation6 + $0x360] sm:$0xff] }
 0x242   :  { %3353 = vmatmul.mubr.bf16.vlgmr.msra.gmra.mrb[4].mxu0 %v9817_v45  ;;  %3517 = vmatmul.mubr.bf16.vlgmr.msra.gmra.mrb[4].mxu1 %v9817_v45  ;;  %v8586_v45 = vcombine.low %v3558_v38, %v3562_v40  ;;  %v3614_v38 = vld [vmem:[#allocation6 + $0x248] sm:$0xff]  ;;  %v3653_v20 = vld [vmem:[#allocation6 + $0x380] sm:$0xff] }
 0x243   :  { %6656 = vmatpush1.bf16.msra.mxu0 %v8568_v29  ;;  %6687 = vmatprep.mubr.bf16.mxu0 %v9850_v37  ;;  %v3606_v29 = vld [vmem:[#allocation6 + $0x208] sm:$0xff] }
 0x244   :  { %6820 = vmatpush1.bf16.msra.mxu1 %v8570_v36  ;;  %6851 = vmatprep.mubr.bf16.mxu1 %v9850_v37  ;;  %v8626_v36 = vcombine.low %v3598_v21, %v3602_v22  ;;  %v8635_v33 = vcombine.high %v3606_v29, %v3610_v30  ;;  %v3618_v40 = vld [vmem:[#allocation6 + $0x268] sm:$0xff]  ;;  %v3657_v21 = vld [vmem:[#allocation6 + $0x3a0] sm:$0xff]  ;;  %v603_v22 = vsub.s32 3, %v9836_v46 }
 0x245   :  { %6657 = vmatprep.subr.bf16.mxu0 %v8577_v32  ;;  %6821 = vmatprep.subr.bf16.mxu1 %v8579_v34  ;;  %v8633_v32 = vcombine.high %v3605_v23, %v3609_v28  ;;  %v3617_v34 = vld [vmem:[#allocation6 + $0x260] sm:$0xff]  ;;  %v3646_v14 = vld [vmem:[#allocation6 + $0x348] sm:$0xff] }
 0x246   :  { %v3650_v15 = vld [vmem:[#allocation6 + $0x368] sm:$0xff] }
 0x247   :  { %6658 = vmatpush1.bf16.msra.mxu0 %v8576_v41  ;;  %v8632_v41 = vcombine.low %v3605_v23, %v3609_v28  ;;  %v8675_v19 = vcombine.high %v3646_v14, %v3650_v15  ;;  %v8674_v23 = vcombine.low %v3646_v14, %v3650_v15  ;;  %v8681_v28 = vcombine.high %v3653_v20, %v3657_v21  ;;  %v3694_v14 = vld [vmem:[#allocation6 + $0x4c8] sm:$0xff] }
 0x248   :  { %6822 = vmatpush1.bf16.msra.mxu1 %v8578_v42  ;;  %6659 = vmatprep.subr.bf16.mxu0 %v8585_v53  ;;  %v8634_v42 = vcombine.low %v3606_v29, %v3610_v30  ;;  %v8641_v53 = vcombine.high %v3613_v35, %v3617_v34  ;;  %v3661_v30 = vld [vmem:[#allocation6 + $0x3c0] sm:$0xff]  ;;  %v3698_v15 = vld [vmem:[#allocation6 + $0x4e8] sm:$0xff] }
 0x249   :  { %6823 = vmatprep.subr.bf16.mxu1 %v8587_v43  ;;  %v8643_v43 = vcombine.high %v3614_v38, %v3618_v40 }
 0x24b   :  { %6660 = vmatpush1.bf16.msra.mxu0 %v8584_v50  ;;  %v8640_v50 = vcombine.low %v3613_v35, %v3617_v34  ;;  %v8680_v35 = vcombine.low %v3653_v20, %v3657_v21  ;;  %v3701_v20 = vld [vmem:[#allocation6 + $0x500] sm:$0xff] }
 0x24c   :  { %6824 = vmatpush1.bf16.msra.mxu1 %v8586_v45  ;;  %6661 = vmatprep.subr.bf16.mxu0 %v8593_v51  ;;  %v8642_v45 = vcombine.low %v3614_v38, %v3618_v40  ;;  %v8649_v51 = vcombine.high %v3621_v44, %v3625_v47  ;;  %v3705_v21 = vld [vmem:[#allocation6 + $0x520] sm:$0xff] }
 0x24d   :  { %6825 = vmatprep.subr.bf16.mxu1 %v8595_v52  ;;  %v8651_v52 = vcombine.high %v3622_v48, %v3626_v49 }
 0x24f   :  { %6662 = vmatpush1.bf16.msra.mxu0 %v8592_v61  ;;  %v8648_v61 = vcombine.low %v3621_v44, %v3625_v47  ;;  %v3670_v44 = vld [vmem:[#allocation6 + $0x408] sm:$0xff] }
 0x250   :  { %6826 = vmatpush1.bf16.msra.mxu1 %v8594_v62  ;;  %6663 = vmatprep.subr.bf16.mxu0 %v8601_v63  ;;  %v8650_v62 = vcombine.low %v3622_v48, %v3626_v49  ;;  %v8657_v63 = vcombine.high %v3629_v54, %v3633_v55  ;;  %v3674_v47 = vld [vmem:[#allocation6 + $0x428] sm:$0xff] }
 0x251   :  { %6827 = vmatprep.subr.bf16.mxu1 %v8603_v1  ;;  %v8659_v1 = vcombine.high %v3630_v58, %v3634_v59 }
 0x253   :  { %6664 = vmatpush1.bf16.msra.mxu0 %v8600_v7  ;;  %v8656_v7 = vcombine.low %v3629_v54, %v3633_v55  ;;  %v3681_v54 = vld [vmem:[#allocation6 + $0x460] sm:$0xff] }
 0x254   :  { %6828 = vmatpush1.bf16.msra.mxu1 %v8602_v8  ;;  %6665 = vmatprep.subr.bf16.mxu0 %v8609_v10  ;;  %v8658_v8 = vcombine.low %v3630_v58, %v3634_v59  ;;  %v8665_v10 = vcombine.high %v3637_v2, %v3641_v3  ;;  %v3678_v58 = vld [vmem:[#allocation6 + $0x448] sm:$0xff] }
 0x255   :  { %6829 = vmatprep.subr.bf16.mxu1 %v8611_v11  ;;  %v8667_v11 = vcombine.high %v3638_v5, %v3642_v6  ;;  %v3682_v59 = vld [vmem:[#allocation6 + $0x468] sm:$0xff] }
 0x257   :  { %6666 = vmatpush1.bf16.msra.mxu0 %v8608_v16  ;;  %v8664_v16 = vcombine.low %v3637_v2, %v3641_v3  ;;  %v8707_v3 = vcombine.high %v3678_v58, %v3682_v59 }
 0x258   :  { %6830 = vmatpush1.bf16.msra.mxu1 %v8610_v12  ;;  %6667 = vmatprep.subr.bf16.mxu0 %v8617_v17  ;;  %v591_v12 = vsub.s32 0, %v9836_v46  ;;  %v8666_v17 = vcombine.low %v3638_v5, %v3642_v6  ;;  %v3686_v5 = vld [vmem:[#allocation6 + $0x488] sm:$0xff] }
 0x259   :  { %6831 = vmatprep.subr.bf16.mxu1 %v8619_v18  ;;  %v8673_v18 = vcombine.high %v3645_v13, %v3649_v57  ;;  %v3690_v6 = vld [vmem:[#allocation6 + $0x4a8] sm:$0xff] }
 0x25b   :  { %6668 = vmatpush1.bf16.msra.mxu0 %v8616_v24  ;;  %v3654_v24 = vld [vmem:[#allocation6 + $0x388] sm:$0xff] }
 0x25c   :  { %6832 = vmatpush1.bf16.msra.mxu1 %v8618_v26  ;;  %6669 = vmatprep.subr.bf16.mxu0 %v8625_v27  ;;  %v3658_v26 = vld [vmem:[#allocation6 + $0x3a8] sm:$0xff]  ;;  %v8672_v27 = vcombine.low %v3645_v13, %v3649_v57  ;;  %v3693_v13 = vld [vmem:[#allocation6 + $0x4c0] sm:$0xff] }
 0x25d   :  { %6833 = vmatprep.subr.bf16.mxu1 %v8627_v25  ;;  %v592_v25 = vrot.slane %v9839_v60, %v591_v12  ;;  %v8683_v29 = vcombine.high %v3654_v24, %v3658_v26  ;;  %v8682_v38 = vcombine.low %v3654_v24, %v3658_v26  ;;  %v3697_v57 = vld [vmem:[#allocation6 + $0x4e0] sm:$0xff]  ;;  %v3702_v24 = vld [vmem:[#allocation6 + $0x508] sm:$0xff] }
 0x25e   :  { %v3706_v26 = vld [vmem:[#allocation6 + $0x528] sm:$0xff] }
 0x25f   :  { %6670 = vmatpush1.bf16.msra.mxu0 %v8624_v31  ;;  %v3665_v31 = vld [vmem:[#allocation6 + $0x3e0] sm:$0xff]  ;;  %v9249_v34 = vadd.f32 %v9841_v0, %v592_v25  ;;  %v8699_v0 = vcombine.high %v3670_v44, %v3674_v47  ;;  %v8722_v25 = vcombine.low %v3694_v14, %v3698_v15 }
 0x260   :  { %6834 = vmatpush1.bf16.msra.mxu1 %v8626_v36  ;;  %6671 = vmatprep.subr.bf16.mxu0 %v8633_v32  ;;  %v604_v36 = vrot.slane %v9839_v60, %v603_v22  ;;  %v3662_v32 = vld [vmem:[#allocation6 + $0x3c8] sm:$0xff]  ;;  %v8689_v40 = vcombine.high %v3661_v30, %v3665_v31  ;;  %v8688_v48 = vcombine.low %v3661_v30, %v3665_v31  ;;  %v3713_v30 = vld [vmem:[#allocation6 + $0x560] sm:$0xff] }
 0x261   :  { %6835 = vmatprep.subr.bf16.mxu1 %v8635_v33  ;;  %v3666_v33 = vld [vmem:[#allocation6 + $0x3e8] sm:$0xff]  ;;  %v3525_v49 = vmax.f32 %v9249_v34, 0.0 }
 0x262   :  { %v3710_v31 = vld [vmem:[#allocation6 + $0x548] sm:$0xff] }
 0x263   :  { %6672 = vmatpush1.bf16.msra.mxu0 %v8632_v41  ;;  %v8691_v41 = vcombine.high %v3662_v32, %v3666_v33 }
 0x264   :  { %6836 = vmatpush1.bf16.msra.mxu1 %v8634_v42  ;;  %6673 = vmatprep.subr.bf16.mxu0 %v8641_v53  ;;  %v3669_v42 = vld [vmem:[#allocation6 + $0x400] sm:$0xff] }
 0x265   :  { %6837 = vmatprep.subr.bf16.mxu1 %v8643_v43  ;;  %v3673_v53 = vld [vmem:[#allocation6 + $0x420] sm:$0xff]  ;;  %v9252_v43 = vadd.f32 %v9848_v9, %v604_v36  ;;  %v8698_v9 = vcombine.low %v3670_v44, %v3674_v47  ;;  %v3714_v36 = vld [vmem:[#allocation6 + $0x568] sm:$0xff] }
 0x266   :  { %v8696_v55 = vcombine.low %v3669_v42, %v3673_v53  ;;  %v8739_v34 = vcombine.high %v3710_v31, %v3714_v36 }
 0x267   :  { %6674 = vmatpush1.bf16.msra.mxu0 %v8640_v50  ;;  %v8690_v50 = vcombine.low %v3662_v32, %v3666_v33  ;;  %v8728_v32 = vcombine.low %v3701_v20, %v3705_v21  ;;  %v8730_v33 = vcombine.low %v3702_v24, %v3706_v26 }
 0x268   :  { %6838 = vmatpush1.bf16.msra.mxu1 %v8642_v45  ;;  %6675 = vmatprep.subr.bf16.mxu0 %v8649_v51  ;;  %v8697_v45 = vcombine.high %v3669_v42, %v3673_v53  ;;  %v3528_v51 = vmax.f32 %v9252_v43, 0.0  ;;  %v3722_v42 = vld [vmem:[#allocation6 + $0x5a8] sm:$0xff]  ;;  %v8738_v43 = vcombine.low %v3710_v31, %v3714_v36  ;;  %v3765_v31 = vld [vmem:[#allocation6 + $0x700] sm:$0xff] }
 0x269   :  { %6839 = vmatprep.subr.bf16.mxu1 %v8651_v52  ;;  %v3677_v52 = vld [vmem:[#allocation6 + $0x440] sm:$0xff] }
 0x26a   :  { %v9868_v2 = vpack.c.bf16 %v3528_v51, %v3528_v51  ;;  %v3769_v36 = vld [vmem:[#allocation6 + $0x720] sm:$0xff] }
 0x26b   :  { %6676 = vmatpush1.bf16.msra.mxu0 %v8648_v61  ;;  %v9866_v61 = vpack.c.bf16 %v3525_v49, %v3525_v49  ;;  %v3729_v49 = vld [vmem:[#allocation6 + $0x5e0] sm:$0xff] }
 0x26c   :  { %6840 = vmatpush1.bf16.msra.mxu1 %v8650_v62  ;;  %6677 = vmatprep.subr.bf16.mxu0 %v8657_v63  ;;  %v8705_v62 = vcombine.high %v3677_v52, %v3681_v54  ;;  %v3685_v63 = vld [vmem:[#allocation6 + $0x480] sm:$0xff] }
 0x26d   :  { %6841 = vmatprep.subr.bf16.mxu1 %v8659_v1  ;;  %v3689_v1 = vld [vmem:[#allocation6 + $0x4a0] sm:$0xff] }
 0x26f   :  { %6678 = vmatpush1.bf16.msra.mxu0 %v8656_v7  ;;  %v8704_v7 = vcombine.low %v3677_v52, %v3681_v54 }
 0x270   :  { %6842 = vmatpush1.bf16.msra.mxu1 %v8658_v8  ;;  %6679 = vmatprep.subr.bf16.mxu0 %v8665_v10  ;;  %v8706_v8 = vcombine.low %v3678_v58, %v3682_v59  ;;  %v8713_v10 = vcombine.high %v3685_v63, %v3689_v1  ;;  %v3737_v58 = vld [vmem:[#allocation6 + $0x620] sm:$0xff]  ;;  %v3734_v59 = vld [vmem:[#allocation6 + $0x608] sm:$0xff] }
 0x271   :  { %6843 = vmatprep.subr.bf16.mxu1 %v8667_v11  ;;  %v8715_v11 = vcombine.high %v3686_v5, %v3690_v6 }
 0x273   :  { %6680 = vmatpush1.bf16.msra.mxu0 %v8664_v16  ;;  %v8712_v16 = vcombine.low %v3685_v63, %v3689_v1 }
 0x274   :  { %6844 = vmatpush1.bf16.msra.mxu1 %v8666_v17  ;;  %6681 = vmatprep.subr.bf16.mxu0 %v8673_v18  ;;  %v8714_v17 = vcombine.low %v3686_v5, %v3690_v6  ;;  %v8721_v18 = vcombine.high %v3693_v13, %v3697_v57  ;;  %v3741_v5 = vld [vmem:[#allocation6 + $0x640] sm:$0xff] }
 0x275   :  { %6845 = vmatprep.subr.bf16.mxu1 %v8675_v19  ;;  %v8723_v19 = vcombine.high %v3694_v14, %v3698_v15  ;;  %v3745_v6 = vld [vmem:[#allocation6 + $0x660] sm:$0xff] }
 0x276   :  { %v3749_v14 = vld [vmem:[#allocation6 + $0x680] sm:$0xff] }
 0x277   :  { %6682 = vmatpush1.bf16.msra.mxu0 %v8672_v27  ;;  %v8720_v27 = vcombine.low %v3693_v13, %v3697_v57  ;;  %v8769_v13 = vcombine.high %v3741_v5, %v3745_v6  ;;  %v3753_v15 = vld [vmem:[#allocation6 + $0x6a0] sm:$0xff] }
 0x278   :  { %6846 = vmatpush1.bf16.msra.mxu1 %v8674_v23  ;;  %6683 = vmatprep.subr.bf16.mxu0 %v8681_v28  ;;  %v8729_v23 = vcombine.high %v3701_v20, %v3705_v21  ;;  %v8731_v28 = vcombine.high %v3702_v24, %v3706_v26  ;;  %v8777_v20 = vcombine.high %v3749_v14, %v3753_v15  ;;  %v3757_v24 = vld [vmem:[#allocation6 + $0x6c0] sm:$0xff] }
 0x279   :  { %6847 = vmatprep.subr.bf16.mxu1 %v8683_v29  ;;  %v3709_v29 = vld [vmem:[#allocation6 + $0x540] sm:$0xff] }
 0x27a   :  { %v8736_v53 = vcombine.low %v3709_v29, %v3713_v30  ;;  %v3761_v26 = vld [vmem:[#allocation6 + $0x6e0] sm:$0xff] }
 0x27b   :  { %6684 = vmatpush1.bf16.msra.mxu0 %v8680_v35  ;;  %v8737_v35 = vcombine.high %v3709_v29, %v3713_v30  ;;  %v8785_v29 = vcombine.high %v3757_v24, %v3761_v26 }
 0x27c   :  { %6848 = vmatpush1.bf16.msra.mxu1 %v8682_v38  ;;  %6685 = vmatprep.subr.bf16.mxu0 %v8689_v40  ;;  %v3717_v38 = vld [vmem:[#allocation6 + $0x580] sm:$0xff] }
 0x27d   :  { %6849 = vmatprep.subr.bf16.mxu1 %v8691_v41  ;;  %v3721_v40 = vld [vmem:[#allocation6 + $0x5a0] sm:$0xff]  ;;  %v3718_v41 = vld [vmem:[#allocation6 + $0x588] sm:$0xff] }
 0x27e   :  { %v8745_v44 = vcombine.high %v3717_v38, %v3721_v40  ;;  %v8747_v47 = vcombine.high %v3718_v41, %v3722_v42  ;;  %v8746_v51 = vcombine.low %v3718_v41, %v3722_v42  ;;  %v3773_v41 = vld [vmem:[#allocation6 + $0x740] sm:$0xff] }
 0x27f   :  { %6686 = vmatpush1.bf16.msra.mxu0 %v8688_v48  ;;  %v3725_v48 = vld [vmem:[#allocation6 + $0x5c0] sm:$0xff] }
 0x280   :  { %6850 = vmatpush1.bf16.msra.mxu1 %v8690_v50  ;;  %6696 = vmatprep.subr.bf16.mxu0 %v8697_v45  ;;  %v3726_v50 = vld [vmem:[#allocation6 + $0x5c8] sm:$0xff]  ;;  %v8753_v52 = vcombine.high %v3725_v48, %v3729_v49  ;;  %v3777_v42 = vld [vmem:[#allocation6 + $0x760] sm:$0xff] }
 0x281   :  { %6860 = vmatprep.subr.bf16.mxu1 %v8699_v0  ;;  %v3730_v45 = vld [vmem:[#allocation6 + $0x5e8] sm:$0xff]  ;;  %v8744_v0 = vcombine.low %v3717_v38, %v3721_v40  ;;  %v8793_v38 = vcombine.high %v3765_v31, %v3769_v36 }
 0x282   :  { %6688 = vmatmul.mubr.bf16.vlgmr.msra.gmra.mrb[8].mxu0 %v9866_v61  ;;  %v8755_v54 = vcombine.high %v3726_v50, %v3730_v45  ;;  %v8754_v63 = vcombine.low %v3726_v50, %v3730_v45  ;;  %v3781_v45 = vld [vmem:[#allocation6 + $0x780] sm:$0xff] }
 0x283   :  { %6852 = vmatmul.mubr.bf16.vlgmr.msra.gmra.mrb[8].mxu1 %v9866_v61  ;;  %6697 = vmatpush1.bf16.msra.mxu0 %v8696_v55  ;;  %v3733_v55 = vld [vmem:[#allocation6 + $0x600] sm:$0xff] }
 0x284   :  { %6728 = vmatprep.mubr.bf16.mxu0 %v9868_v2  ;;  %6861 = vmatpush1.bf16.msra.mxu1 %v8698_v9  ;;  %v3738_v9 = vld [vmem:[#allocation6 + $0x628] sm:$0xff]  ;;  %v8761_v1 = vcombine.high %v3733_v55, %v3737_v58 }
 0x285   :  { %6892 = vmatprep.mubr.bf16.mxu1 %v9868_v2  ;;  %6698 = vmatprep.subr.bf16.mxu0 %v8705_v62  ;;  %v8752_v62 = vcombine.low %v3725_v48, %v3729_v49  ;;  %v8801_v49 = vcombine.high %v3773_v41, %v3777_v42 }
 0x286   :  { %6862 = vmatprep.subr.bf16.mxu1 %v8707_v3  ;;  %v8763_v3 = vcombine.high %v3734_v59, %v3738_v9 }
 0x287   :  { %6699 = vmatpush1.bf16.msra.mxu0 %v8704_v7  ;;  %v3742_v7 = vld [vmem:[#allocation6 + $0x648] sm:$0xff] }
 0x288   :  { %6863 = vmatpush1.bf16.msra.mxu1 %v8706_v8  ;;  %6700 = vmatprep.subr.bf16.mxu0 %v8713_v10  ;;  %v3746_v8 = vld [vmem:[#allocation6 + $0x668] sm:$0xff]  ;;  %v8760_v10 = vcombine.low %v3733_v55, %v3737_v58 }
 0x289   :  { %6864 = vmatprep.subr.bf16.mxu1 %v8715_v11  ;;  %v8762_v11 = vcombine.low %v3734_v59, %v3738_v9  ;;  %v8771_v57 = vcombine.high %v3742_v7, %v3746_v8 }
 0x28b   :  { %6701 = vmatpush1.bf16.msra.mxu0 %v8712_v16  ;;  %v3750_v16 = vld [vmem:[#allocation6 + $0x688] sm:$0xff] }
 0x28c   :  { %6865 = vmatpush1.bf16.msra.mxu1 %v8714_v17  ;;  %6702 = vmatprep.subr.bf16.mxu0 %v8721_v18  ;;  %v3754_v17 = vld [vmem:[#allocation6 + $0x6a8] sm:$0xff]  ;;  %v8768_v18 = vcombine.low %v3741_v5, %v3745_v6 }
 0x28d   :  { %6866 = vmatprep.subr.bf16.mxu1 %v8723_v19  ;;  %v8770_v19 = vcombine.low %v3742_v7, %v3746_v8  ;;  %v8779_v21 = vcombine.high %v3750_v16, %v3754_v17 }
 0x28f   :  { %6703 = vmatpush1.bf16.msra.mxu0 %v8720_v27  ;;  %v3758_v27 = vld [vmem:[#allocation6 + $0x6c8] sm:$0xff] }
 0x290   :  { %6867 = vmatpush1.bf16.msra.mxu1 %v8722_v25  ;;  %6704 = vmatprep.subr.bf16.mxu0 %v8729_v23  ;;  %v3762_v25 = vld [vmem:[#allocation6 + $0x6e8] sm:$0xff]  ;;  %v8776_v23 = vcombine.low %v3749_v14, %v3753_v15 }
 0x291   :  { %6868 = vmatprep.subr.bf16.mxu1 %v8731_v28  ;;  %v8778_v28 = vcombine.low %v3750_v16, %v3754_v17  ;;  %v8787_v30 = vcombine.high %v3758_v27, %v3762_v25 }
 0x293   :  { %6705 = vmatpush1.bf16.msra.mxu0 %v8728_v32  ;;  %v3766_v32 = vld [vmem:[#allocation6 + $0x708] sm:$0xff] }
 0x294   :  { %6869 = vmatpush1.bf16.msra.mxu1 %v8730_v33  ;;  %6706 = vmatprep.subr.bf16.mxu0 %v8737_v35  ;;  %v3770_v33 = vld [vmem:[#allocation6 + $0x728] sm:$0xff]  ;;  %v8784_v35 = vcombine.low %v3757_v24, %v3761_v26 }
 0x295   :  { %6870 = vmatprep.subr.bf16.mxu1 %v8739_v34  ;;  %v8786_v34 = vcombine.low %v3758_v27, %v3762_v25  ;;  %v8795_v40 = vcombine.high %v3766_v32, %v3770_v33  ;;  %v8794_v48 = vcombine.low %v3766_v32, %v3770_v33 }
 0x297   :  { %6707 = vmatpush1.bf16.msra.mxu0 %v8736_v53  ;;  %v3774_v53 = vld [vmem:[#allocation6 + $0x748] sm:$0xff] }
 0x298   :  { %6871 = vmatpush1.bf16.msra.mxu1 %v8738_v43  ;;  %6708 = vmatprep.subr.bf16.mxu0 %v8745_v44  ;;  %v3778_v43 = vld [vmem:[#allocation6 + $0x768] sm:$0xff]  ;;  %v8792_v44 = vcombine.low %v3765_v31, %v3769_v36 }
 0x299   :  { %6872 = vmatprep.subr.bf16.mxu1 %v8747_v47  ;;  %v599_v47 = vsub.s32 2, %v9836_v46  ;;  %v8803_v50 = vcombine.high %v3774_v53, %v3778_v43  ;;  %v8802_v58 = vcombine.low %v3774_v53, %v3778_v43  ;;  %v3818_v31 = vld [vmem:[#allocation6 + $0x8a8] sm:$0xff] }
 0x29b   :  { %6709 = vmatpush1.bf16.msra.mxu0 %v8744_v0  ;;  %v3785_v0 = vld [vmem:[#allocation6 + $0x7a0] sm:$0xff]  ;;  %v600_v55 = vrot.slane %v9839_v60, %v599_v47 }
 0x29c   :  { %6873 = vmatpush1.bf16.msra.mxu1 %v8746_v51  ;;  %6710 = vmatprep.subr.bf16.mxu0 %v8753_v52  ;;  %v3782_v51 = vld [vmem:[#allocation6 + $0x788] sm:$0xff]  ;;  %v8809_v59 = vcombine.high %v3781_v45, %v3785_v0  ;;  %v8808_v5 = vcombine.low %v3781_v45, %v3785_v0 }
 0x29d   :  { %6874 = vmatprep.subr.bf16.mxu1 %v8755_v54  ;;  %v3786_v52 = vld [vmem:[#allocation6 + $0x7a8] sm:$0xff]  ;;  %v8800_v54 = vcombine.low %v3773_v41, %v3777_v42  ;;  %v9251_v6 = vadd.f32 %v9843_v4, %v600_v55  ;;  %v3805_v4 = vld [vmem:[#allocation6 + $0x840] sm:$0xff] }
 0x29e   :  { %v8811_v9 = vcombine.high %v3782_v51, %v3786_v52  ;;  %v8810_v7 = vcombine.low %v3782_v51, %v3786_v52  ;;  %v3826_v41 = vld [vmem:[#allocation6 + $0x8e8] sm:$0xff]  ;;  %v3837_v55 = vld [vmem:[#allocation6 + $0x940] sm:$0xff] }
 0x29f   :  { %6711 = vmatpush1.bf16.msra.mxu0 %v8752_v62  ;;  %v3789_v62 = vld [vmem:[#allocation6 + $0x7c0] sm:$0xff]  ;;  %v3527_v15 = vmax.f32 %v9251_v6, 0.0  ;;  %v3834_v45 = vld [vmem:[#allocation6 + $0x928] sm:$0xff] }
 0x2a0   :  { %6875 = vmatpush1.bf16.msra.mxu1 %v8754_v63  ;;  %6712 = vmatprep.subr.bf16.mxu0 %v8761_v1  ;;  %v3793_v63 = vld [vmem:[#allocation6 + $0x7e0] sm:$0xff]  ;;  %v3790_v1 = vld [vmem:[#allocation6 + $0x7c8] sm:$0xff] }
 0x2a1   :  { %6876 = vmatprep.subr.bf16.mxu1 %v8763_v3  ;;  %v3794_v3 = vld [vmem:[#allocation6 + $0x7e8] sm:$0xff]  ;;  %v8817_v8 = vcombine.high %v3789_v62, %v3793_v63  ;;  %v8816_v14 = vcombine.low %v3789_v62, %v3793_v63  ;;  %v9879_v26 = vpack.c.bf16 %v3527_v15, %v3527_v15  ;;  %v3849_v6 = vld [vmem:[#allocation6 + $0x9a0] sm:$0xff] }
 0x2a2   :  { %v8819_v60 = vcombine.high %v3790_v1, %v3794_v3  ;;  %v8818_v16 = vcombine.low %v3790_v1, %v3794_v3  ;;  %v3854_v15 = vld [vmem:[#allocation6 + $0x9c8] sm:$0xff] }
 0x2a3   :  { %6713 = vmatpush1.bf16.msra.mxu0 %v8760_v10  ;;  %v3797_v10 = vld [vmem:[#allocation6 + $0x800] sm:$0xff] }
 0x2a4   :  { %6877 = vmatpush1.bf16.msra.mxu1 %v8762_v11  ;;  %6714 = vmatprep.subr.bf16.mxu0 %v8769_v13  ;;  %v3801_v11 = vld [vmem:[#allocation6 + $0x820] sm:$0xff]  ;;  %v3798_v13 = vld [vmem:[#allocation6 + $0x808] sm:$0xff] }
 0x2a5   :  { %6878 = vmatprep.subr.bf16.mxu1 %v8771_v57  ;;  %v3802_v57 = vld [vmem:[#allocation6 + $0x828] sm:$0xff]  ;;  %v8825_v17 = vcombine.high %v3797_v10, %v3801_v11  ;;  %v8824_v24 = vcombine.low %v3797_v10, %v3801_v11 }
 0x2a6   :  { %v8826_v27 = vcombine.low %v3798_v13, %v3802_v57 }
 0x2a7   :  { %6715 = vmatpush1.bf16.msra.mxu0 %v8768_v18  ;;  %v8827_v18 = vcombine.high %v3798_v13, %v3802_v57  ;;  %v3853_v57 = vld [vmem:[#allocation6 + $0x9c0] sm:$0xff] }
 0x2a8   :  { %6879 = vmatpush1.bf16.msra.mxu1 %v8770_v19  ;;  %6716 = vmatprep.subr.bf16.mxu0 %v8777_v20  ;;  %v3809_v19 = vld [vmem:[#allocation6 + $0x860] sm:$0xff]  ;;  %v3806_v20 = vld [vmem:[#allocation6 + $0x848] sm:$0xff] }
 0x2a9   :  { %6880 = vmatprep.subr.bf16.mxu1 %v8779_v21  ;;  %v3810_v21 = vld [vmem:[#allocation6 + $0x868] sm:$0xff]  ;;  %v8833_v25 = vcombine.high %v3805_v4, %v3809_v19  ;;  %v8832_v36 = vcombine.low %v3805_v4, %v3809_v19 }
 0x2aa   :  { %v8834_v32 = vcombine.low %v3806_v20, %v3810_v21 }
 0x2ab   :  { %6717 = vmatpush1.bf16.msra.mxu0 %v8776_v23  ;;  %v8835_v23 = vcombine.high %v3806_v20, %v3810_v21  ;;  %v3861_v20 = vld [vmem:[#allocation6 + $0xa00] sm:$0xff] }
 0x2ac   :  { %6881 = vmatpush1.bf16.msra.mxu1 %v8778_v28  ;;  %6718 = vmatprep.subr.bf16.mxu0 %v8785_v29  ;;  %v3813_v28 = vld [vmem:[#allocation6 + $0x880] sm:$0xff] }
 0x2ad   :  { %6882 = vmatprep.subr.bf16.mxu1 %v8787_v30  ;;  %v3817_v29 = vld [vmem:[#allocation6 + $0x8a0] sm:$0xff]  ;;  %v3814_v30 = vld [vmem:[#allocation6 + $0x888] sm:$0xff] }
 0x2ae   :  { %v8841_v33 = vcombine.high %v3813_v28, %v3817_v29  ;;  %v8840_v42 = vcombine.low %v3813_v28, %v3817_v29  ;;  %v8842_v53 = vcombine.low %v3814_v30, %v3818_v31  ;;  %v3865_v21 = vld [vmem:[#allocation6 + $0xa20] sm:$0xff] }
 0x2af   :  { %6719 = vmatpush1.bf16.msra.mxu0 %v8784_v35  ;;  %v8843_v35 = vcombine.high %v3814_v30, %v3818_v31  ;;  %v8889_v28 = vcombine.high %v3861_v20, %v3865_v21  ;;  %v3869_v30 = vld [vmem:[#allocation6 + $0xa40] sm:$0xff] }
 0x2b0   :  { %6883 = vmatpush1.bf16.msra.mxu1 %v8786_v34  ;;  %6720 = vmatprep.subr.bf16.mxu0 %v8793_v38  ;;  %v3821_v34 = vld [vmem:[#allocation6 + $0x8c0] sm:$0xff] }
 0x2b1   :  { %6884 = vmatprep.subr.bf16.mxu1 %v8795_v40  ;;  %v3825_v38 = vld [vmem:[#allocation6 + $0x8e0] sm:$0xff]  ;;  %v3822_v40 = vld [vmem:[#allocation6 + $0x8c8] sm:$0xff] }
 0x2b2   :  { %v8849_v43 = vcombine.high %v3821_v34, %v3825_v38  ;;  %v8848_v0 = vcombine.low %v3821_v34, %v3825_v38  ;;  %v8850_v51 = vcombine.low %v3822_v40, %v3826_v41  ;;  %v3873_v31 = vld [vmem:[#allocation6 + $0xa60] sm:$0xff] }
 0x2b3   :  { %6721 = vmatpush1.bf16.msra.mxu0 %v8792_v44  ;;  %v8851_v44 = vcombine.high %v3822_v40, %v3826_v41  ;;  %v8897_v34 = vcombine.high %v3869_v30, %v3873_v31  ;;  %v3877_v40 = vld [vmem:[#allocation6 + $0xa80] sm:$0xff] }
 0x2b4   :  { %6885 = vmatpush1.bf16.msra.mxu1 %v8794_v48  ;;  %6722 = vmatprep.subr.bf16.mxu0 %v8801_v49  ;;  %v3829_v48 = vld [vmem:[#allocation6 + $0x900] sm:$0xff] }
 0x2b5   :  { %6886 = vmatprep.subr.bf16.mxu1 %v8803_v50  ;;  %v3833_v49 = vld [vmem:[#allocation6 + $0x920] sm:$0xff]  ;;  %v3830_v50 = vld [vmem:[#allocation6 + $0x908] sm:$0xff] }
 0x2b6   :  { %v8857_v52 = vcombine.high %v3829_v48, %v3833_v49  ;;  %v8856_v62 = vcombine.low %v3829_v48, %v3833_v49  ;;  %v8858_v63 = vcombine.low %v3830_v50, %v3834_v45  ;;  %v3881_v41 = vld [vmem:[#allocation6 + $0xaa0] sm:$0xff] }
 0x2b7   :  { %6723 = vmatpush1.bf16.msra.mxu0 %v8800_v54  ;;  %v8859_v54 = vcombine.high %v3830_v50, %v3834_v45  ;;  %v8905_v48 = vcombine.high %v3877_v40, %v3881_v41  ;;  %v3885_v50 = vld [vmem:[#allocation6 + $0xac0] sm:$0xff] }
 0x2b8   :  { %6887 = vmatpush1.bf16.msra.mxu1 %v8802_v58  ;;  %6724 = vmatprep.subr.bf16.mxu0 %v8809_v59  ;;  %v3841_v58 = vld [vmem:[#allocation6 + $0x960] sm:$0xff]  ;;  %v3838_v59 = vld [vmem:[#allocation6 + $0x948] sm:$0xff] }
 0x2b9   :  { %6888 = vmatprep.subr.bf16.mxu1 %v8811_v9  ;;  %v3842_v9 = vld [vmem:[#allocation6 + $0x968] sm:$0xff]  ;;  %v8865_v1 = vcombine.high %v3837_v55, %v3841_v58  ;;  %v3889_v45 = vld [vmem:[#allocation6 + $0xae0] sm:$0xff] }
 0x2ba   :  { %v8867_v3 = vcombine.high %v3838_v59, %v3842_v9  ;;  %v8866_v10 = vcombine.low %v3838_v59, %v3842_v9  ;;  %v3893_v59 = vld [vmem:[#allocation6 + $0xb00] sm:$0xff] }
 0x2bb   :  { %6725 = vmatpush1.bf16.msra.mxu0 %v8808_v5  ;;  %v3845_v5 = vld [vmem:[#allocation6 + $0x980] sm:$0xff] }
 0x2bc   :  { %6889 = vmatpush1.bf16.msra.mxu1 %v8810_v7  ;;  %6726 = vmatprep.subr.bf16.mxu0 %v8817_v8  ;;  %v3846_v7 = vld [vmem:[#allocation6 + $0x988] sm:$0xff]  ;;  %v8873_v11 = vcombine.high %v3845_v5, %v3849_v6  ;;  %v3897_v9 = vld [vmem:[#allocation6 + $0xb20] sm:$0xff] }
 0x2bd   :  { %6890 = vmatprep.subr.bf16.mxu1 %v8819_v60  ;;  %v3850_v8 = vld [vmem:[#allocation6 + $0x9a8] sm:$0xff]  ;;  %v8864_v60 = vcombine.low %v3837_v55, %v3841_v58  ;;  %v8913_v55 = vcombine.high %v3885_v50, %v3889_v45 }
 0x2be   :  { %v8875_v13 = vcombine.high %v3846_v7, %v3850_v8 }
 0x2bf   :  { %6727 = vmatpush1.bf16.msra.mxu0 %v8816_v14  ;;  %v3857_v14 = vld [vmem:[#allocation6 + $0x9e0] sm:$0xff] }
 0x2c0   :  { %6891 = vmatpush1.bf16.msra.mxu1 %v8818_v16  ;;  %6737 = vmatprep.subr.bf16.mxu0 %v8825_v17  ;;  %v3858_v16 = vld [vmem:[#allocation6 + $0x9e8] sm:$0xff]  ;;  %v8872_v17 = vcombine.low %v3845_v5, %v3849_v6  ;;  %v8881_v4 = vcombine.high %v3853_v57, %v3857_v14  ;;  %v8921_v5 = vcombine.high %v3893_v59, %v3897_v9 }
 0x2c1   :  { %6901 = vmatprep.subr.bf16.mxu1 %v8827_v18  ;;  %v8874_v18 = vcombine.low %v3846_v7, %v3850_v8  ;;  %v8883_v19 = vcombine.high %v3854_v15, %v3858_v16  ;;  %v3901_v7 = vld [vmem:[#allocation6 + $0xb40] sm:$0xff] }
 0x2c2   :  { %6729 = vmatmul.mubr.bf16.vlgmr.msra.gmra.mrb[8].mxu0 %v9879_v26  ;;  %v3905_v8 = vld [vmem:[#allocation6 + $0xb60] sm:$0xff] }
 0x2c3   :  { %6893 = vmatmul.mubr.bf16.vlgmr.msra.gmra.mrb[8].mxu1 %v9879_v26  ;;  %6738 = vmatpush1.bf16.msra.mxu0 %v8824_v24  ;;  %v3862_v24 = vld [vmem:[#allocation6 + $0xa08] sm:$0xff] }
 0x2c4   :  { %6902 = vmatpush1.bf16.msra.mxu1 %v8826_v27  ;;  %6739 = vmatprep.subr.bf16.mxu0 %v8833_v25  ;;  %v3866_v27 = vld [vmem:[#allocation6 + $0xa28] sm:$0xff]  ;;  %v8880_v25 = vcombine.low %v3853_v57, %v3857_v14  ;;  %v8929_v57 = vcombine.high %v3901_v7, %v3905_v8 }
 0x2c5   :  { %6903 = vmatprep.subr.bf16.mxu1 %v8835_v23  ;;  %v8882_v23 = vcombine.low %v3854_v15, %v3858_v16  ;;  %v8891_v29 = vcombine.high %v3862_v24, %v3866_v27  ;;  %v3909_v15 = vld [vmem:[#allocation6 + $0xb80] sm:$0xff] }
 0x2c6   :  { %v3913_v16 = vld [vmem:[#allocation6 + $0xba0] sm:$0xff] }
 0x2c7   :  { %6740 = vmatpush1.bf16.msra.mxu0 %v8832_v36  ;;  %v3870_v36 = vld [vmem:[#allocation6 + $0xa48] sm:$0xff] }
 0x2c8   :  { %6904 = vmatpush1.bf16.msra.mxu1 %v8834_v32  ;;  %6741 = vmatprep.subr.bf16.mxu0 %v8841_v33  ;;  %v3874_v32 = vld [vmem:[#allocation6 + $0xa68] sm:$0xff]  ;;  %v8888_v33 = vcombine.low %v3861_v20, %v3865_v21  ;;  %v8937_v20 = vcombine.high %v3909_v15, %v3913_v16 }
 0x2c9   :  { %6905 = vmatprep.subr.bf16.mxu1 %v8843_v35  ;;  %v8890_v35 = vcombine.low %v3862_v24, %v3866_v27  ;;  %v8899_v38 = vcombine.high %v3870_v36, %v3874_v32  ;;  %v3917_v24 = vld [vmem:[#allocation6 + $0xbc0] sm:$0xff] }
 0x2ca   :  { %v3921_v27 = vld [vmem:[#allocation6 + $0xbe0] sm:$0xff] }
 0x2cb   :  { %6742 = vmatpush1.bf16.msra.mxu0 %v8840_v42  ;;  %v3878_v42 = vld [vmem:[#allocation6 + $0xa88] sm:$0xff] }
 0x2cc   :  { %6906 = vmatpush1.bf16.msra.mxu1 %v8842_v53  ;;  %6743 = vmatprep.subr.bf16.mxu0 %v8849_v43  ;;  %v3882_v53 = vld [vmem:[#allocation6 + $0xaa8] sm:$0xff]  ;;  %v8896_v43 = vcombine.low %v3869_v30, %v3873_v31  ;;  %v8945_v30 = vcombine.high %v3917_v24, %v3921_v27 }
 0x2cd   :  { %6907 = vmatprep.subr.bf16.mxu1 %v8851_v44  ;;  %v8898_v44 = vcombine.low %v3870_v36, %v3874_v32  ;;  %v8907_v49 = vcombine.high %v3878_v42, %v3882_v53  ;;  %v3925_v36 = vld [vmem:[#allocation6 + $0xc00] sm:$0xff] }
 0x2ce   :  { %v3929_v32 = vld [vmem:[#allocation6 + $0xc20] sm:$0xff] }
 0x2cf   :  { %6744 = vmatpush1.bf16.msra.mxu0 %v8848_v0  ;;  %v3886_v0 = vld [vmem:[#allocation6 + $0xac8] sm:$0xff] }
 0x2d0   :  { %6908 = vmatpush1.bf16.msra.mxu1 %v8850_v51  ;;  %6745 = vmatprep.subr.bf16.mxu0 %v8857_v52  ;;  %v3890_v51 = vld [vmem:[#allocation6 + $0xae8] sm:$0xff]  ;;  %v8904_v52 = vcombine.low %v3877_v40, %v3881_v41  ;;  %v8953_v40 = vcombine.high %v3925_v36, %v3929_v32 }
 0x2d1   :  { %6909 = vmatprep.subr.bf16.mxu1 %v8859_v54  ;;  %v8906_v54 = vcombine.low %v3878_v42, %v3882_v53  ;;  %v8915_v58 = vcombine.high %v3886_v0, %v3890_v51  ;;  %v607_v42 = vsub.s32 4, %v9836_v46  ;;  %v611_v53 = vsub.s32 5, %v9836_v46 }
 0x2d3   :  { %6746 = vmatpush1.bf16.msra.mxu0 %v8856_v62  ;;  %v3894_v62 = vld [vmem:[#allocation6 + $0xb08] sm:$0xff] }
 0x2d4   :  { %6910 = vmatpush1.bf16.msra.mxu1 %v8858_v63  ;;  %6747 = vmatprep.subr.bf16.mxu0 %v8865_v1  ;;  %v3898_v63 = vld [vmem:[#allocation6 + $0xb28] sm:$0xff]  ;;  %v8912_v1 = vcombine.low %v3885_v50, %v3889_v45 }
 0x2d5   :  { %6911 = vmatprep.subr.bf16.mxu1 %v8867_v3  ;;  %v8914_v3 = vcombine.low %v3886_v0, %v3890_v51  ;;  %v8923_v6 = vcombine.high %v3894_v62, %v3898_v63 }
 0x2d7   :  { %6748 = vmatpush1.bf16.msra.mxu0 %v8864_v60  ;;  %v3902_v60 = vld [vmem:[#allocation6 + $0xb48] sm:$0xff] }
 0x2d8   :  { %6912 = vmatpush1.bf16.msra.mxu1 %v8866_v10  ;;  %6749 = vmatprep.subr.bf16.mxu0 %v8873_v11  ;;  %v3906_v10 = vld [vmem:[#allocation6 + $0xb68] sm:$0xff]  ;;  %v8920_v11 = vcombine.low %v3893_v59, %v3897_v9 }
 0x2d9   :  { %6913 = vmatprep.subr.bf16.mxu1 %v8875_v13  ;;  %v8922_v13 = vcombine.low %v3894_v62, %v3898_v63  ;;  %v8931_v14 = vcombine.high %v3902_v60, %v3906_v10 }
 0x2db   :  { %6750 = vmatpush1.bf16.msra.mxu0 %v8872_v17  ;;  %v3910_v17 = vld [vmem:[#allocation6 + $0xb88] sm:$0xff] }
 0x2dc   :  { %6914 = vmatpush1.bf16.msra.mxu1 %v8874_v18  ;;  %6751 = vmatprep.subr.bf16.mxu0 %v8881_v4  ;;  %v3914_v18 = vld [vmem:[#allocation6 + $0xba8] sm:$0xff]  ;;  %v8928_v4 = vcombine.low %v3901_v7, %v3905_v8  ;;  %v3937_v7 = vld [vmem:[#allocation6 + $0xc60] sm:$0xff] }
 0x2dd   :  { %6915 = vmatprep.subr.bf16.mxu1 %v8883_v19  ;;  %v8930_v19 = vcombine.low %v3902_v60, %v3906_v10  ;;  %v8939_v21 = vcombine.high %v3910_v17, %v3914_v18  ;;  %v3934_v8 = vld [vmem:[#allocation6 + $0xc48] sm:$0xff] }
 0x2de   :  { %v3938_v60 = vld [vmem:[#allocation6 + $0xc68] sm:$0xff] }
 0x2df   :  { %6752 = vmatpush1.bf16.msra.mxu0 %v8880_v25  ;;  %v3918_v25 = vld [vmem:[#allocation6 + $0xbc8] sm:$0xff] }
 0x2e0   :  { %6916 = vmatpush1.bf16.msra.mxu1 %v8882_v23  ;;  %6753 = vmatprep.subr.bf16.mxu0 %v8889_v28  ;;  %v3922_v23 = vld [vmem:[#allocation6 + $0xbe8] sm:$0xff]  ;;  %v8936_v28 = vcombine.low %v3909_v15, %v3913_v16  ;;  %v8963_v16 = vcombine.high %v3934_v8, %v3938_v60 }
 0x2e1   :  { %6917 = vmatprep.subr.bf16.mxu1 %v8891_v29  ;;  %v8938_v29 = vcombine.low %v3910_v17, %v3914_v18  ;;  %v8947_v31 = vcombine.high %v3918_v25, %v3922_v23  ;;  %v3945_v17 = vld [vmem:[#allocation6 + $0xca0] sm:$0xff]  ;;  %v3942_v18 = vld [vmem:[#allocation6 + $0xc88] sm:$0xff] }
 0x2e3   :  { %6754 = vmatpush1.bf16.msra.mxu0 %v8888_v33  ;;  %v3926_v33 = vld [vmem:[#allocation6 + $0xc08] sm:$0xff] }
 0x2e4   :  { %6918 = vmatpush1.bf16.msra.mxu1 %v8890_v35  ;;  %6755 = vmatprep.subr.bf16.mxu0 %v8897_v34  ;;  %v3930_v35 = vld [vmem:[#allocation6 + $0xc28] sm:$0xff]  ;;  %v8944_v34 = vcombine.low %v3917_v24, %v3921_v27 }
 0x2e5   :  { %6919 = vmatprep.subr.bf16.mxu1 %v8899_v38  ;;  %v8946_v38 = vcombine.low %v3918_v25, %v3922_v23  ;;  %v8955_v41 = vcombine.high %v3926_v33, %v3930_v35  ;;  %v3949_v25 = vld [vmem:[#allocation6 + $0xcc0] sm:$0xff] }
 0x2e6   :  { %v3953_v23 = vld [vmem:[#allocation6 + $0xce0] sm:$0xff] }
 0x2e7   :  { %6756 = vmatpush1.bf16.msra.mxu0 %v8896_v43  ;;  %v619_v43 = vsub.s32 7, %v9836_v46 }
 0x2e8   :  { %6920 = vmatpush1.bf16.msra.mxu1 %v8898_v44  ;;  %6757 = vmatprep.subr.bf16.mxu0 %v8905_v48  ;;  %v9886_v44 = vld [vmem:[#allocation4] sm:$0xff] }
 0x2e9   :  { %6921 = vmatprep.subr.bf16.mxu1 %v8907_v49  ;;  %v608_v48 = vrot.slane %v9886_v44, %v607_v42  ;;  %v612_v49 = vrot.slane %v9886_v44, %v611_v53  ;;  %v620_v50 = vrot.slane %v9886_v44, %v619_v43 }
 0x2eb   :  { %6758 = vmatpush1.bf16.msra.mxu0 %v8904_v52 }
 0x2ec   :  { %6922 = vmatpush1.bf16.msra.mxu1 %v8906_v54  ;;  %6759 = vmatprep.subr.bf16.mxu0 %v8913_v55 }
 0x2ed   :  { %6923 = vmatprep.subr.bf16.mxu1 %v8915_v58 }
 0x2ef   :  { %6760 = vmatpush1.bf16.msra.mxu0 %v8912_v1 }
 0x2f0   :  { %6924 = vmatpush1.bf16.msra.mxu1 %v8914_v3  ;;  %6761 = vmatprep.subr.bf16.mxu0 %v8921_v5  ;;  %v3933_v5 = vld [vmem:[#allocation6 + $0xc40] sm:$0xff] }
 0x2f1   :  { %6925 = vmatprep.subr.bf16.mxu1 %v8923_v6  ;;  %v8961_v15 = vcombine.high %v3933_v5, %v3937_v7 }
 0x2f3   :  { %6762 = vmatpush1.bf16.msra.mxu0 %v8920_v11  ;;  %v8952_v11 = vcombine.low %v3925_v36, %v3929_v32  ;;  %v8977_v36 = vcombine.high %v3949_v25, %v3953_v23 }
 0x2f4   :  { %6926 = vmatpush1.bf16.msra.mxu1 %v8922_v13  ;;  %6763 = vmatprep.subr.bf16.mxu0 %v8929_v57  ;;  %v8954_v13 = vcombine.low %v3926_v33, %v3930_v35  ;;  %v3957_v33 = vld [vmem:[#allocation6 + $0xd00] sm:$0xff] }
 0x2f5   :  { %6927 = vmatprep.subr.bf16.mxu1 %v8931_v14  ;;  %v3941_v14 = vld [vmem:[#allocation6 + $0xc80] sm:$0xff] }
 0x2f6   :  { %v8969_v24 = vcombine.high %v3941_v14, %v3945_v17  ;;  %v3961_v35 = vld [vmem:[#allocation6 + $0xd20] sm:$0xff] }
 0x2f7   :  { %6764 = vmatpush1.bf16.msra.mxu0 %v8928_v4  ;;  %v3946_v4 = vld [vmem:[#allocation6 + $0xca8] sm:$0xff] }
 0x2f8   :  { %6928 = vmatpush1.bf16.msra.mxu1 %v8930_v19  ;;  %6765 = vmatprep.subr.bf16.mxu0 %v8937_v20  ;;  %v8960_v20 = vcombine.low %v3933_v5, %v3937_v7  ;;  %v8971_v27 = vcombine.high %v3942_v18, %v3946_v4 }
 0x2f9   :  { %6929 = vmatprep.subr.bf16.mxu1 %v8939_v21  ;;  %v8962_v21 = vcombine.low %v3934_v8, %v3938_v60  ;;  %v3981_v8 = vld [vmem:[#allocation6 + $0xdc0] sm:$0xff] }
 0x2fa   :  { %v3985_v60 = vld [vmem:[#allocation6 + $0xde0] sm:$0xff] }
 0x2fb   :  { %6766 = vmatpush1.bf16.msra.mxu0 %v8936_v28  ;;  %v3950_v28 = vld [vmem:[#allocation6 + $0xcc8] sm:$0xff] }
 0x2fc   :  { %6930 = vmatpush1.bf16.msra.mxu1 %v8938_v29  ;;  %6767 = vmatprep.subr.bf16.mxu0 %v8945_v30  ;;  %v3954_v29 = vld [vmem:[#allocation6 + $0xce8] sm:$0xff]  ;;  %v8968_v30 = vcombine.low %v3941_v14, %v3945_v17 }
 0x2fd   :  { %6931 = vmatprep.subr.bf16.mxu1 %v8947_v31  ;;  %v8970_v31 = vcombine.low %v3942_v18, %v3946_v4  ;;  %v8979_v32 = vcombine.high %v3950_v28, %v3954_v29  ;;  %v3989_v18 = vld [vmem:[#allocation6 + $0xe00] sm:$0xff] }
 0x2fe   :  { %v3993_v4 = vld [vmem:[#allocation6 + $0xe20] sm:$0xff] }
 0x2ff   :  { %6768 = vmatpush1.bf16.msra.mxu0 %v8944_v34  ;;  %v3958_v34 = vld [vmem:[#allocation6 + $0xd08] sm:$0xff] }
 0x300   :  { %6932 = vmatpush1.bf16.msra.mxu1 %v8946_v38  ;;  %6778 = vmatprep.subr.bf16.mxu0 %v8953_v40  ;;  %v3962_v38 = vld [vmem:[#allocation6 + $0xd28] sm:$0xff]  ;;  %v8976_v40 = vcombine.low %v3949_v25, %v3953_v23  ;;  %v9017_v25 = vcombine.high %v3989_v18, %v3993_v4 }
 0x301   :  { %6942 = vmatprep.subr.bf16.mxu1 %v8955_v41  ;;  %v8978_v41 = vcombine.low %v3950_v28, %v3954_v29  ;;  %v3997_v28 = vld [vmem:[#allocation6 + $0xe40] sm:$0xff] }
 0x302   :  { %v4001_v29 = vld [vmem:[#allocation6 + $0xe60] sm:$0xff] }
 0x315   :  { %v3354_v45 = vpop.f32.mrb[4].mxu0  ;;  %v9897_v51 = vpop.f32.mrb[4].mxu1 }
 0x316   :  { %v9253_v0 = vadd.f32 %v3354_v45, %v608_v48  ;;  %v3356_v52 = vpop.f32.mrb[5].mxu0  ;;  %v3520_v55 = vpop.f32.mrb[5].mxu1  ;;  %v8985_v48 = vcombine.high %v3957_v33, %v3961_v35  ;;  %v3969_v45 = vld [vmem:[#allocation6 + $0xd60] sm:$0xff] }
 0x317   :  { %v9254_v54 = vadd.f32 %v3356_v52, %v612_v49  ;;  %v3358_v58 = vpop.f32.mrb[6].mxu0  ;;  %v9256_v9 = vadd.f32 %v3520_v55, %v620_v50  ;;  %v3522_v62 = vpop.f32.mrb[6].mxu1  ;;  %v8987_v49 = vcombine.high %v3958_v34, %v3962_v38  ;;  %v3965_v50 = vld [vmem:[#allocation6 + $0xd40] sm:$0xff]  ;;  %v3970_v52 = vld [vmem:[#allocation6 + $0xd68] sm:$0xff]  ;;  %v8986_v55 = vcombine.low %v3958_v34, %v3962_v38 }
 0x318   :  { %v3529_v59 = vmax.f32 %v9253_v0, 0.0  ;;  %v3359_v63 = vpop.f32.mrb[7].mxu0  ;;  %v3523_v3 = vpop.f32.mrb[7].mxu1  ;;  %v3966_v0 = vld [vmem:[#allocation6 + $0xd48] sm:$0xff]  ;;  %v8993_v58 = vcombine.high %v3965_v50, %v3969_v45  ;;  %v3977_v62 = vld [vmem:[#allocation6 + $0xda0] sm:$0xff] }
 0x319   :  { %v3530_v1 = vmax.f32 %v9254_v54, 0.0  ;;  %v3532_v6 = vmax.f32 %v9256_v9, 0.0  ;;  %v8984_v54 = vcombine.low %v3957_v33, %v3961_v35  ;;  %v3973_v9 = vld [vmem:[#allocation6 + $0xd80] sm:$0xff]  ;;  %v3974_v63 = vld [vmem:[#allocation6 + $0xd88] sm:$0xff]  ;;  %v8992_v3 = vcombine.low %v3965_v50, %v3969_v45 }
 0x31a   :  { %v9901_v57 = vpack.c.bf16 %v3529_v59, %v3529_v59  ;;  %v8995_v59 = vcombine.high %v3966_v0, %v3970_v52  ;;  %v8994_v5 = vcombine.low %v3966_v0, %v3970_v52  ;;  %v9000_v14 = vcombine.low %v3973_v9, %v3977_v62  ;;  %v4005_v34 = vld [vmem:[#allocation6 + $0xe80] sm:$0xff] }
 0x31b   :  { %v9899_v10 = vpack.c.bf16 %v3530_v1, %v3530_v1  ;;  %v9905_v19 = vpack.c.bf16 %v3532_v6, %v3532_v6  ;;  %v3978_v1 = vld [vmem:[#allocation6 + $0xda8] sm:$0xff]  ;;  %v9001_v6 = vcombine.high %v3973_v9, %v3977_v62  ;;  %v9025_v33 = vcombine.high %v3997_v28, %v4001_v29  ;;  %v4009_v38 = vld [vmem:[#allocation6 + $0xea0] sm:$0xff] }
 0x31c   :  { %v9003_v7 = vcombine.high %v3974_v63, %v3978_v1  ;;  %v9033_v50 = vcombine.high %v4005_v34, %v4009_v38  ;;  %v4013_v0 = vld [vmem:[#allocation6 + $0xec0] sm:$0xff] }
 0x31d   :  { %6769 = vmatprep.mubr.bf16.mxu0 %v9899_v10  ;;  %6933 = vmatprep.mubr.bf16.mxu1 %v9899_v10  ;;  %v4017_v52 = vld [vmem:[#allocation6 + $0xee0] sm:$0xff] }
 0x31e   :  { %6770 = vmatmul.mubr.bf16.vlgmr.msra.gmra.mrb[8].mxu0 %v9901_v57  ;;  %6934 = vmatmul.mubr.bf16.vlgmr.msra.gmra.mrb[8].mxu1 %v9901_v57  ;;  %v9041_v9 = vcombine.high %v4013_v0, %v4017_v52 }
 0x31f   :  { %6779 = vmatpush1.bf16.msra.mxu0 %v8952_v11  ;;  %6943 = vmatpush1.bf16.msra.mxu1 %v8954_v13  ;;  %v3982_v11 = vld [vmem:[#allocation6 + $0xdc8] sm:$0xff] }
 0x320   :  { %6810 = vmatprep.mubr.bf16.mxu0 %v9905_v19  ;;  %6974 = vmatprep.mubr.bf16.mxu1 %v9905_v19  ;;  %v3986_v13 = vld [vmem:[#allocation6 + $0xde8] sm:$0xff] }
 0x321   :  { %6780 = vmatprep.subr.bf16.mxu0 %v8961_v15  ;;  %6944 = vmatprep.subr.bf16.mxu1 %v8963_v16  ;;  %v9002_v15 = vcombine.low %v3974_v63, %v3978_v1  ;;  %v9009_v16 = vcombine.high %v3981_v8, %v3985_v60  ;;  %v9011_v17 = vcombine.high %v3982_v11, %v3986_v13  ;;  %v4021_v63 = vld [vmem:[#allocation6 + $0xf00] sm:$0xff] }
 0x322   :  { %v4025_v1 = vld [vmem:[#allocation6 + $0xf20] sm:$0xff] }
 0x323   :  { %6781 = vmatpush1.bf16.msra.mxu0 %v8960_v20  ;;  %6945 = vmatpush1.bf16.msra.mxu1 %v8962_v21  ;;  %v3990_v20 = vld [vmem:[#allocation6 + $0xe08] sm:$0xff] }
 0x324   :  { %6782 = vmatprep.subr.bf16.mxu0 %v8969_v24  ;;  %6946 = vmatprep.subr.bf16.mxu1 %v8971_v27  ;;  %v3994_v21 = vld [vmem:[#allocation6 + $0xe28] sm:$0xff]  ;;  %v9008_v24 = vcombine.low %v3981_v8, %v3985_v60  ;;  %v9010_v27 = vcombine.low %v3982_v11, %v3986_v13  ;;  %v9049_v8 = vcombine.high %v4021_v63, %v4025_v1  ;;  %v4029_v11 = vld [vmem:[#allocation6 + $0xf40] sm:$0xff] }
 0x325   :  { %v9019_v23 = vcombine.high %v3990_v20, %v3994_v21  ;;  %v4033_v13 = vld [vmem:[#allocation6 + $0xf60] sm:$0xff] }
 0x327   :  { %6783 = vmatpush1.bf16.msra.mxu0 %v8968_v30  ;;  %6947 = vmatpush1.bf16.msra.mxu1 %v8970_v31  ;;  %v3998_v30 = vld [vmem:[#allocation6 + $0xe48] sm:$0xff] }
 0x328   :  { %6784 = vmatprep.subr.bf16.mxu0 %v8977_v36  ;;  %6948 = vmatprep.subr.bf16.mxu1 %v8979_v32  ;;  %v4002_v31 = vld [vmem:[#allocation6 + $0xe68] sm:$0xff]  ;;  %v9016_v36 = vcombine.low %v3989_v18, %v3993_v4  ;;  %v9018_v32 = vcombine.low %v3990_v20, %v3994_v21  ;;  %v615_v18 = vsub.s32 6, %v9836_v46  ;;  %v9057_v4 = vcombine.high %v4029_v11, %v4033_v13  ;;  %v4037_v21 = vld [vmem:[#allocation6 + $0xf80] sm:$0xff] }
 0x329   :  { %v9027_v35 = vcombine.high %v3998_v30, %v4002_v31 }
 0x32b   :  { %6785 = vmatpush1.bf16.msra.mxu0 %v8976_v40  ;;  %6949 = vmatpush1.bf16.msra.mxu1 %v8978_v41  ;;  %v4006_v40 = vld [vmem:[#allocation6 + $0xe88] sm:$0xff] }
 0x32c   :  { %6786 = vmatprep.subr.bf16.mxu0 %v8985_v48  ;;  %6950 = vmatprep.subr.bf16.mxu1 %v8987_v49  ;;  %v4010_v41 = vld [vmem:[#allocation6 + $0xea8] sm:$0xff]  ;;  %v9024_v48 = vcombine.low %v3997_v28, %v4001_v29  ;;  %v9026_v49 = vcombine.low %v3998_v30, %v4002_v31  ;;  %v616_v29 = vrot.slane %v9886_v44, %v615_v18  ;;  %v3547_v44 = vld [vmem:[#allocation6 + $0x30] sm:$0xff] }
 0x32d   :  { %v9035_v45 = vcombine.high %v4006_v40, %v4010_v41 }
 0x32f   :  { %6787 = vmatpush1.bf16.msra.mxu0 %v8984_v54  ;;  %6951 = vmatpush1.bf16.msra.mxu1 %v8986_v55  ;;  %v4014_v54 = vld [vmem:[#allocation6 + $0xec8] sm:$0xff] }
 0x330   :  { %6788 = vmatprep.subr.bf16.mxu0 %v8993_v58  ;;  %6952 = vmatprep.subr.bf16.mxu1 %v8995_v59  ;;  %v4018_v55 = vld [vmem:[#allocation6 + $0xee8] sm:$0xff]  ;;  %v9032_v58 = vcombine.low %v4005_v34, %v4009_v38  ;;  %v9034_v59 = vcombine.low %v4006_v40, %v4010_v41  ;;  %v9255_v40 = vadd.f32 %v9897_v51, %v616_v29  ;;  %v3552_v51 = vld [vmem:[#allocation6 + $0x58] sm:$0xff]  ;;  %v3579_v29 = vld [vmem:[#allocation6 + $0x130] sm:$0xff] }
 0x331   :  { %v9043_v62 = vcombine.high %v4014_v54, %v4018_v55 }
 0x333   :  { %6789 = vmatpush1.bf16.msra.mxu0 %v8992_v3  ;;  %6953 = vmatpush1.bf16.msra.mxu1 %v8994_v5  ;;  %v4022_v3 = vld [vmem:[#allocation6 + $0xf08] sm:$0xff] }
 0x334   :  { %6790 = vmatprep.subr.bf16.mxu0 %v9001_v6  ;;  %6954 = vmatprep.subr.bf16.mxu1 %v9003_v7  ;;  %v4026_v5 = vld [vmem:[#allocation6 + $0xf28] sm:$0xff]  ;;  %v9040_v6 = vcombine.low %v4013_v0, %v4017_v52  ;;  %v9042_v7 = vcombine.low %v4014_v54, %v4018_v55  ;;  %v3531_v54 = vmax.f32 %v9255_v40, 0.0  ;;  %v3588_v40 = vld [vmem:[#allocation6 + $0x178] sm:$0xff] }
 0x335   :  { %v9051_v60 = vcombine.high %v4022_v3, %v4026_v5 }
 0x337   :  { %6791 = vmatpush1.bf16.msra.mxu0 %v9000_v14  ;;  %6955 = vmatpush1.bf16.msra.mxu1 %v9002_v15  ;;  %v4030_v14 = vld [vmem:[#allocation6 + $0xf48] sm:$0xff] }
 0x338   :  { %6792 = vmatprep.subr.bf16.mxu0 %v9009_v16  ;;  %6956 = vmatprep.subr.bf16.mxu1 %v9011_v17  ;;  %v4034_v15 = vld [vmem:[#allocation6 + $0xf68] sm:$0xff]  ;;  %v9048_v16 = vcombine.low %v4021_v63, %v4025_v1  ;;  %v9050_v17 = vcombine.low %v4022_v3, %v4026_v5  ;;  %v9916_v1 = vpack.c.bf16 %v3531_v54, %v3531_v54 }
 0x339   :  { %v9059_v20 = vcombine.high %v4030_v14, %v4034_v15  ;;  %v9058_v28 = vcombine.low %v4030_v14, %v4034_v15 }
 0x33b   :  { %6793 = vmatpush1.bf16.msra.mxu0 %v9008_v24  ;;  %6957 = vmatpush1.bf16.msra.mxu1 %v9010_v27  ;;  %v4041_v24 = vld [vmem:[#allocation6 + $0xfa0] sm:$0xff]  ;;  %v4038_v27 = vld [vmem:[#allocation6 + $0xf88] sm:$0xff] }
 0x33c   :  { %6794 = vmatprep.subr.bf16.mxu0 %v9017_v25  ;;  %6958 = vmatprep.subr.bf16.mxu1 %v9019_v23  ;;  %v4042_v25 = vld [vmem:[#allocation6 + $0xfa8] sm:$0xff]  ;;  %v9056_v23 = vcombine.low %v4029_v11, %v4033_v13  ;;  %v9065_v30 = vcombine.high %v4037_v21, %v4041_v24  ;;  %v9064_v34 = vcombine.low %v4037_v21, %v4041_v24  ;;  %v3564_v11 = vld [vmem:[#allocation6 + $0xb8] sm:$0xff] }
 0x33d   :  { %v9067_v31 = vcombine.high %v4038_v27, %v4042_v25  ;;  %v9066_v38 = vcombine.low %v4038_v27, %v4042_v25  ;;  %v3572_v21 = vld [vmem:[#allocation6 + $0xf8] sm:$0xff] }
 0x33f   :  { %6795 = vmatpush1.bf16.msra.mxu0 %v9016_v36  ;;  %6959 = vmatpush1.bf16.msra.mxu1 %v9018_v32  ;;  %v4045_v36 = vld [vmem:[#allocation6 + $0xfc0] sm:$0xff] }
 0x340   :  { %6796 = vmatprep.subr.bf16.mxu0 %v9025_v33  ;;  %6960 = vmatprep.subr.bf16.mxu1 %v9027_v35  ;;  %v4049_v32 = vld [vmem:[#allocation6 + $0xfe0] sm:$0xff]  ;;  %v4046_v33 = vld [vmem:[#allocation6 + $0xfc8] sm:$0xff] }
 0x341   :  { %v4050_v35 = vld [vmem:[#allocation6 + $0xfe8] sm:$0xff]  ;;  %v9073_v41 = vcombine.high %v4045_v36, %v4049_v32  ;;  %v9072_v0 = vcombine.low %v4045_v36, %v4049_v32 }
 0x342   :  { %v9074_v52 = vcombine.low %v4046_v33, %v4050_v35 }
 0x343   :  { %6797 = vmatpush1.bf16.msra.mxu0 %v9024_v48  ;;  %6961 = vmatpush1.bf16.msra.mxu1 %v9026_v49  ;;  %v9075_v48 = vcombine.high %v4046_v33, %v4050_v35  ;;  %v3543_v49 = vld [vmem:[#allocation6 + $0x10] sm:$0xff] }
 0x344   :  { %6798 = vmatprep.subr.bf16.mxu0 %v9033_v50  ;;  %6962 = vmatprep.subr.bf16.mxu1 %v9035_v45  ;;  %v3544_v50 = vld [vmem:[#allocation6 + $0x18] sm:$0xff]  ;;  %v8573_v55 = vcombine.high %v3543_v49, %v3547_v44  ;;  %v8572_v63 = vcombine.low %v3543_v49, %v3547_v44  ;;  %v3583_v35 = vld [vmem:[#allocation6 + $0x150] sm:$0xff] }
 0x345   :  { %v3548_v45 = vld [vmem:[#allocation6 + $0x38] sm:$0xff] }
 0x346   :  { %v8574_v3 = vcombine.low %v3544_v50, %v3548_v45 }
 0x347   :  { %6799 = vmatpush1.bf16.msra.mxu0 %v9032_v58  ;;  %6963 = vmatpush1.bf16.msra.mxu1 %v9034_v59  ;;  %v8575_v58 = vcombine.high %v3544_v50, %v3548_v45  ;;  %v3551_v59 = vld [vmem:[#allocation6 + $0x50] sm:$0xff] }
 0x348   :  { %6800 = vmatprep.subr.bf16.mxu0 %v9041_v9  ;;  %6964 = vmatprep.subr.bf16.mxu1 %v9043_v62  ;;  %v3555_v9 = vld [vmem:[#allocation6 + $0x70] sm:$0xff]  ;;  %v3556_v62 = vld [vmem:[#allocation6 + $0x78] sm:$0xff] }
 0x349   :  { %v8581_v5 = vcombine.high %v3551_v59, %v3555_v9  ;;  %v8580_v13 = vcombine.low %v3551_v59, %v3555_v9  ;;  %v8582_v14 = vcombine.low %v3552_v51, %v3556_v62  ;;  %v3591_v50 = vld [vmem:[#allocation6 + $0x190] sm:$0xff] }
 0x34a   :  { %v3595_v45 = vld [vmem:[#allocation6 + $0x1b0] sm:$0xff] }
 0x34b   :  { %6801 = vmatpush1.bf16.msra.mxu0 %v9040_v6  ;;  %6965 = vmatpush1.bf16.msra.mxu1 %v9042_v7  ;;  %v8583_v6 = vcombine.high %v3552_v51, %v3556_v62  ;;  %v3559_v7 = vld [vmem:[#allocation6 + $0x90] sm:$0xff]  ;;  %v3600_v62 = vld [vmem:[#allocation6 + $0x1d8] sm:$0xff] }
 0x34c   :  { %6802 = vmatprep.subr.bf16.mxu0 %v9049_v8  ;;  %6966 = vmatprep.subr.bf16.mxu1 %v9051_v60  ;;  %v3563_v8 = vld [vmem:[#allocation6 + $0xb0] sm:$0xff]  ;;  %v3560_v60 = vld [vmem:[#allocation6 + $0x98] sm:$0xff] }
 0x34d   :  { %v8589_v15 = vcombine.high %v3559_v7, %v3563_v8  ;;  %v8588_v24 = vcombine.low %v3559_v7, %v3563_v8  ;;  %v8590_v27 = vcombine.low %v3560_v60, %v3564_v11  ;;  %v3599_v9 = vld [vmem:[#allocation6 + $0x1d0] sm:$0xff] }
 0x34e   :  { %v3603_v51 = vld [vmem:[#allocation6 + $0x1f0] sm:$0xff] }
 0x34f   :  { %6803 = vmatpush1.bf16.msra.mxu0 %v9048_v16  ;;  %6967 = vmatpush1.bf16.msra.mxu1 %v9050_v17  ;;  %v8591_v16 = vcombine.high %v3560_v60, %v3564_v11  ;;  %v3567_v17 = vld [vmem:[#allocation6 + $0xd0] sm:$0xff]  ;;  %v3608_v11 = vld [vmem:[#allocation6 + $0x218] sm:$0xff] }
 0x350   :  { %6804 = vmatprep.subr.bf16.mxu0 %v9057_v4  ;;  %6968 = vmatprep.subr.bf16.mxu1 %v9059_v20  ;;  %v3571_v4 = vld [vmem:[#allocation6 + $0xf0] sm:$0xff]  ;;  %v3568_v20 = vld [vmem:[#allocation6 + $0xd8] sm:$0xff] }
 0x351   :  { %v8597_v25 = vcombine.high %v3567_v17, %v3571_v4  ;;  %v8598_v36 = vcombine.low %v3568_v20, %v3572_v21  ;;  %v3607_v8 = vld [vmem:[#allocation6 + $0x210] sm:$0xff] }
 0x352   :  { %v3611_v60 = vld [vmem:[#allocation6 + $0x230] sm:$0xff] }
 0x353   :  { %6805 = vmatpush1.bf16.msra.mxu0 %v9056_v23  ;;  %6969 = vmatpush1.bf16.msra.mxu1 %v9058_v28  ;;  %v8599_v23 = vcombine.high %v3568_v20, %v3572_v21  ;;  %v3575_v28 = vld [vmem:[#allocation6 + $0x110] sm:$0xff]  ;;  %v3616_v21 = vld [vmem:[#allocation6 + $0x258] sm:$0xff] }
 0x354   :  { %6806 = vmatprep.subr.bf16.mxu0 %v9065_v30  ;;  %6970 = vmatprep.subr.bf16.mxu1 %v9067_v31  ;;  %v3580_v30 = vld [vmem:[#allocation6 + $0x138] sm:$0xff]  ;;  %v8596_v31 = vcombine.low %v3567_v17, %v3571_v4  ;;  %v8605_v32 = vcombine.high %v3575_v28, %v3579_v29  ;;  %v3615_v4 = vld [vmem:[#allocation6 + $0x250] sm:$0xff] }
 0x355   :  { %v3619_v20 = vld [vmem:[#allocation6 + $0x270] sm:$0xff] }
 0x357   :  { %6807 = vmatpush1.bf16.msra.mxu0 %v9064_v34  ;;  %6971 = vmatpush1.bf16.msra.mxu1 %v9066_v38  ;;  %v3587_v34 = vld [vmem:[#allocation6 + $0x170] sm:$0xff]  ;;  %v3584_v38 = vld [vmem:[#allocation6 + $0x158] sm:$0xff] }
 0x358   :  { %6808 = vmatprep.subr.bf16.mxu0 %v9073_v41  ;;  %6972 = vmatprep.subr.bf16.mxu1 %v9075_v48  ;;  %v8604_v41 = vcombine.low %v3575_v28, %v3579_v29  ;;  %v8613_v49 = vcombine.high %v3583_v35, %v3587_v34  ;;  %v8615_v44 = vcombine.high %v3584_v38, %v3588_v40  ;;  %v3623_v29 = vld [vmem:[#allocation6 + $0x290] sm:$0xff] }
 0x359   :  { %v8612_v54 = vcombine.low %v3583_v35, %v3587_v34  ;;  %v3631_v34 = vld [vmem:[#allocation6 + $0x2d0] sm:$0xff] }
 0x35b   :  { %6809 = vmatpush1.bf16.msra.mxu0 %v9072_v0  ;;  %6973 = vmatpush1.bf16.msra.mxu1 %v9074_v52  ;;  %v3592_v0 = vld [vmem:[#allocation6 + $0x198] sm:$0xff] }
 0x35c   :  { %6983 = vmatprep.subr.bf16.mxu0 %v8573_v55  ;;  %7147 = vmatprep.subr.bf16.mxu1 %v8575_v58  ;;  %v3596_v52 = vld [vmem:[#allocation6 + $0x1b8] sm:$0xff]  ;;  %v8614_v55 = vcombine.low %v3584_v38, %v3588_v40  ;;  %v8621_v58 = vcombine.high %v3591_v50, %v3595_v45  ;;  %v3635_v38 = vld [vmem:[#allocation6 + $0x2f0] sm:$0xff] }
 0x35d   :  { %v8623_v59 = vcombine.high %v3592_v0, %v3596_v52  ;;  %v3632_v40 = vld [vmem:[#allocation6 + $0x2d8] sm:$0xff] }
 0x35e   :  { %6811 = vmatmul.mubr.bf16.vlgmr.msra.gmra.mrb[8].mxu0 %v9916_v1  ;;  %6975 = vmatmul.mubr.bf16.vlgmr.msra.gmra.mrb[8].mxu1 %v9916_v1 }
 0x35f   :  { %6984 = vmatpush1.bf16.msra.mxu0 %v8572_v63  ;;  %7015 = vmatprep.mubr.bf16.mxu0 %v9850_v37  ;;  %v3604_v63 = vld [vmem:[#allocation6 + $0x1f8] sm:$0xff] }
 0x360   :  { %7148 = vmatpush1.bf16.msra.mxu1 %v8574_v3  ;;  %7179 = vmatprep.mubr.bf16.mxu1 %v9850_v37  ;;  %v3576_v37 = vld [vmem:[#allocation6 + $0x118] sm:$0xff]  ;;  %v8620_v3 = vcombine.low %v3591_v50, %v3595_v45  ;;  %v8631_v7 = vcombine.high %v3600_v62, %v3604_v63  ;;  %v3639_v45 = vld [vmem:[#allocation6 + $0x310] sm:$0xff] }
 0x361   :  { %6985 = vmatprep.subr.bf16.mxu0 %v8581_v5  ;;  %7149 = vmatprep.subr.bf16.mxu1 %v8583_v6  ;;  %v8607_v33 = vcombine.high %v3576_v37, %v3580_v30  ;;  %v8606_v48 = vcombine.low %v3576_v37, %v3580_v30  ;;  %v8622_v5 = vcombine.low %v3592_v0, %v3596_v52  ;;  %v3627_v37 = vld [vmem:[#allocation6 + $0x2b0] sm:$0xff]  ;;  %v3624_v30 = vld [vmem:[#allocation6 + $0x298] sm:$0xff] }
 0x362   :  { %v8629_v6 = vcombine.high %v3599_v9, %v3603_v51  ;;  %v3643_v0 = vld [vmem:[#allocation6 + $0x330] sm:$0xff]  ;;  %v3640_v52 = vld [vmem:[#allocation6 + $0x318] sm:$0xff] }
 0x363   :  { %6986 = vmatpush1.bf16.msra.mxu0 %v8580_v13  ;;  %v3612_v13 = vld [vmem:[#allocation6 + $0x238] sm:$0xff] }
 0x364   :  { %7150 = vmatpush1.bf16.msra.mxu1 %v8582_v14  ;;  %6987 = vmatprep.subr.bf16.mxu0 %v8589_v15  ;;  %v8628_v14 = vcombine.low %v3599_v9, %v3603_v51  ;;  %v8630_v15 = vcombine.low %v3600_v62, %v3604_v63  ;;  %v8639_v17 = vcombine.high %v3608_v11, %v3612_v13  ;;  %v3647_v51 = vld [vmem:[#allocation6 + $0x350] sm:$0xff]  ;;  %v3648_v63 = vld [vmem:[#allocation6 + $0x358] sm:$0xff] }
 0x365   :  { %7151 = vmatprep.subr.bf16.mxu1 %v8591_v16  ;;  %v8637_v16 = vcombine.high %v3607_v8, %v3611_v60  ;;  %v3651_v62 = vld [vmem:[#allocation6 + $0x370] sm:$0xff] }
 0x367   :  { %6988 = vmatpush1.bf16.msra.mxu0 %v8588_v24  ;;  %v3620_v24 = vld [vmem:[#allocation6 + $0x278] sm:$0xff] }
 0x368   :  { %7152 = vmatpush1.bf16.msra.mxu1 %v8590_v27  ;;  %6989 = vmatprep.subr.bf16.mxu0 %v8597_v25  ;;  %v8636_v27 = vcombine.low %v3607_v8, %v3611_v60  ;;  %v8638_v25 = vcombine.low %v3608_v11, %v3612_v13  ;;  %v8647_v28 = vcombine.high %v3616_v21, %v3620_v24  ;;  %v3655_v60 = vld [vmem:[#allocation6 + $0x390] sm:$0xff]  ;;  %v3656_v13 = vld [vmem:[#allocation6 + $0x398] sm:$0xff] }
 0x369   :  { %7153 = vmatprep.subr.bf16.mxu1 %v8599_v23  ;;  %v8645_v23 = vcombine.high %v3615_v4, %v3619_v20  ;;  %v3659_v11 = vld [vmem:[#allocation6 + $0x3b0] sm:$0xff] }
 0x36b   :  { %6990 = vmatpush1.bf16.msra.mxu0 %v8596_v31  ;;  %v3628_v31 = vld [vmem:[#allocation6 + $0x2b8] sm:$0xff] }
 0x36c   :  { %7154 = vmatpush1.bf16.msra.mxu1 %v8598_v36  ;;  %6991 = vmatprep.subr.bf16.mxu0 %v8605_v32  ;;  %v8644_v36 = vcombine.low %v3615_v4, %v3619_v20  ;;  %v8646_v32 = vcombine.low %v3616_v21, %v3620_v24  ;;  %v8655_v35 = vcombine.high %v3624_v30, %v3628_v31  ;;  %v3663_v20 = vld [vmem:[#allocation6 + $0x3d0] sm:$0xff]  ;;  %v3664_v24 = vld [vmem:[#allocation6 + $0x3d8] sm:$0xff] }
 0x36d   :  { %7155 = vmatprep.subr.bf16.mxu1 %v8607_v33  ;;  %v8653_v33 = vcombine.high %v3623_v29, %v3627_v37  ;;  %v3667_v21 = vld [vmem:[#allocation6 + $0x3f0] sm:$0xff] }
 0x36f   :  { %6992 = vmatpush1.bf16.msra.mxu0 %v8604_v41  ;;  %v3636_v41 = vld [vmem:[#allocation6 + $0x2f8] sm:$0xff] }
 0x370   :  { %7156 = vmatpush1.bf16.msra.mxu1 %v8606_v48  ;;  %6993 = vmatprep.subr.bf16.mxu0 %v8613_v49  ;;  %v8652_v48 = vcombine.low %v3623_v29, %v3627_v37  ;;  %v8654_v49 = vcombine.low %v3624_v30, %v3628_v31  ;;  %v8663_v50 = vcombine.high %v3632_v40, %v3636_v41  ;;  %v3671_v37 = vld [vmem:[#allocation6 + $0x410] sm:$0xff]  ;;  %v3672_v31 = vld [vmem:[#allocation6 + $0x418] sm:$0xff] }
 0x371   :  { %7157 = vmatprep.subr.bf16.mxu1 %v8615_v44  ;;  %v8661_v44 = vcombine.high %v3631_v34, %v3635_v38  ;;  %v3675_v30 = vld [vmem:[#allocation6 + $0x430] sm:$0xff] }
 0x373   :  { %6994 = vmatpush1.bf16.msra.mxu0 %v8612_v54  ;;  %v3644_v54 = vld [vmem:[#allocation6 + $0x338] sm:$0xff] }
 0x374   :  { %7158 = vmatpush1.bf16.msra.mxu1 %v8614_v55  ;;  %6995 = vmatprep.subr.bf16.mxu0 %v8621_v58  ;;  %v8660_v55 = vcombine.low %v3631_v34, %v3635_v38  ;;  %v8662_v58 = vcombine.low %v3632_v40, %v3636_v41  ;;  %v8671_v9 = vcombine.high %v3640_v52, %v3644_v54  ;;  %v3679_v38 = vld [vmem:[#allocation6 + $0x450] sm:$0xff] }
 0x375   :  { %7159 = vmatprep.subr.bf16.mxu1 %v8623_v59  ;;  %v8669_v59 = vcombine.high %v3639_v45, %v3643_v0  ;;  %v3683_v40 = vld [vmem:[#allocation6 + $0x470] sm:$0xff]  ;;  %v8700_v41 = vcombine.low %v3671_v37, %v3675_v30 }
 0x377   :  { %6996 = vmatpush1.bf16.msra.mxu0 %v8620_v3  ;;  %v3652_v3 = vld [vmem:[#allocation6 + $0x378] sm:$0xff] }
 0x378   :  { %7160 = vmatpush1.bf16.msra.mxu1 %v8622_v5  ;;  %6997 = vmatprep.subr.bf16.mxu0 %v8629_v6  ;;  %v8668_v5 = vcombine.low %v3639_v45, %v3643_v0  ;;  %v8670_v6 = vcombine.low %v3640_v52, %v3644_v54  ;;  %v8679_v8 = vcombine.high %v3648_v63, %v3652_v3  ;;  %v3687_v45 = vld [vmem:[#allocation6 + $0x490] sm:$0xff]  ;;  %v3688_v54 = vld [vmem:[#allocation6 + $0x498] sm:$0xff] }
 0x379   :  { %7161 = vmatprep.subr.bf16.mxu1 %v8631_v7  ;;  %v8677_v7 = vcombine.high %v3647_v51, %v3651_v62  ;;  %v3691_v0 = vld [vmem:[#allocation6 + $0x4b0] sm:$0xff] }
 0x37b   :  { %6998 = vmatpush1.bf16.msra.mxu0 %v8628_v14  ;;  %v3660_v14 = vld [vmem:[#allocation6 + $0x3b8] sm:$0xff] }
 0x37c   :  { %7162 = vmatpush1.bf16.msra.mxu1 %v8630_v15  ;;  %6999 = vmatprep.subr.bf16.mxu0 %v8637_v16  ;;  %v8676_v15 = vcombine.low %v3647_v51, %v3651_v62  ;;  %v8678_v16 = vcombine.low %v3648_v63, %v3652_v3  ;;  %v8687_v4 = vcombine.high %v3656_v13, %v3660_v14  ;;  %v3695_v62 = vld [vmem:[#allocation6 + $0x4d0] sm:$0xff]  ;;  %v3696_v3 = vld [vmem:[#allocation6 + $0x4d8] sm:$0xff] }
 0x37d   :  { %7163 = vmatprep.subr.bf16.mxu1 %v8639_v17  ;;  %v8685_v17 = vcombine.high %v3655_v60, %v3659_v11  ;;  %v3699_v63 = vld [vmem:[#allocation6 + $0x4f0] sm:$0xff] }
 0x37f   :  { %7000 = vmatpush1.bf16.msra.mxu0 %v8636_v27  ;;  %v3668_v27 = vld [vmem:[#allocation6 + $0x3f8] sm:$0xff] }
 0x380   :  { %7164 = vmatpush1.bf16.msra.mxu1 %v8638_v25  ;;  %7001 = vmatprep.subr.bf16.mxu0 %v8645_v23  ;;  %v8684_v25 = vcombine.low %v3655_v60, %v3659_v11  ;;  %v8686_v23 = vcombine.low %v3656_v13, %v3660_v14  ;;  %v8695_v29 = vcombine.high %v3664_v24, %v3668_v27  ;;  %v3703_v60 = vld [vmem:[#allocation6 + $0x510] sm:$0xff]  ;;  %v3704_v13 = vld [vmem:[#allocation6 + $0x518] sm:$0xff] }
 0x381   :  { %7165 = vmatprep.subr.bf16.mxu1 %v8647_v28  ;;  %v8693_v28 = vcombine.high %v3663_v20, %v3667_v21  ;;  %v3707_v11 = vld [vmem:[#allocation6 + $0x530] sm:$0xff]  ;;  %v3708_v14 = vld [vmem:[#allocation6 + $0x538] sm:$0xff] }
 0x383   :  { %7002 = vmatpush1.bf16.msra.mxu0 %v8644_v36  ;;  %v3676_v36 = vld [vmem:[#allocation6 + $0x438] sm:$0xff] }
 0x384   :  { %7166 = vmatpush1.bf16.msra.mxu1 %v8646_v32  ;;  %7003 = vmatprep.subr.bf16.mxu0 %v8653_v33  ;;  %v8692_v32 = vcombine.low %v3663_v20, %v3667_v21  ;;  %v8694_v33 = vcombine.low %v3664_v24, %v3668_v27  ;;  %v8703_v34 = vcombine.high %v3672_v31, %v3676_v36  ;;  %v3715_v20 = vld [vmem:[#allocation6 + $0x570] sm:$0xff]  ;;  %v3712_v21 = vld [vmem:[#allocation6 + $0x558] sm:$0xff] }
 0x385   :  { %7167 = vmatprep.subr.bf16.mxu1 %v8655_v35  ;;  %v8701_v35 = vcombine.high %v3671_v37, %v3675_v30  ;;  %v3716_v24 = vld [vmem:[#allocation6 + $0x578] sm:$0xff]  ;;  %v8732_v27 = vcombine.low %v3703_v60, %v3707_v11  ;;  %v3723_v37 = vld [vmem:[#allocation6 + $0x5b0] sm:$0xff] }
 0x386   :  { %v3720_v30 = vld [vmem:[#allocation6 + $0x598] sm:$0xff] }
 0x387   :  { %7004 = vmatpush1.bf16.msra.mxu0 %v8652_v48  ;;  %v3680_v48 = vld [vmem:[#allocation6 + $0x458] sm:$0xff] }
 0x388   :  { %7168 = vmatpush1.bf16.msra.mxu1 %v8654_v49  ;;  %7005 = vmatprep.subr.bf16.mxu0 %v8661_v44  ;;  %v3684_v49 = vld [vmem:[#allocation6 + $0x478] sm:$0xff]  ;;  %v8702_v44 = vcombine.low %v3672_v31, %v3676_v36 }
 0x389   :  { %7169 = vmatprep.subr.bf16.mxu1 %v8663_v50  ;;  %v8709_v50 = vcombine.high %v3679_v38, %v3683_v40  ;;  %v8711_v52 = vcombine.high %v3680_v48, %v3684_v49  ;;  %v3724_v31 = vld [vmem:[#allocation6 + $0x5b8] sm:$0xff] }
 0x38b   :  { %7006 = vmatpush1.bf16.msra.mxu0 %v8660_v55  ;;  %v3692_v55 = vld [vmem:[#allocation6 + $0x4b8] sm:$0xff] }
 0x38c   :  { %7170 = vmatpush1.bf16.msra.mxu1 %v8662_v58  ;;  %7007 = vmatprep.subr.bf16.mxu0 %v8669_v59  ;;  %v8708_v58 = vcombine.low %v3679_v38, %v3683_v40  ;;  %v8710_v59 = vcombine.low %v3680_v48, %v3684_v49  ;;  %v8719_v51 = vcombine.high %v3688_v54, %v3692_v55  ;;  %v3731_v38 = vld [vmem:[#allocation6 + $0x5f0] sm:$0xff]  ;;  %v3728_v40 = vld [vmem:[#allocation6 + $0x5d8] sm:$0xff] }
 0x38d   :  { %7171 = vmatprep.subr.bf16.mxu1 %v8671_v9  ;;  %v8717_v9 = vcombine.high %v3687_v45, %v3691_v0  ;;  %v8750_v49 = vcombine.low %v3720_v30, %v3724_v31 }
 0x38f   :  { %7008 = vmatpush1.bf16.msra.mxu0 %v8668_v5  ;;  %v3700_v5 = vld [vmem:[#allocation6 + $0x4f8] sm:$0xff] }
 0x390   :  { %7172 = vmatpush1.bf16.msra.mxu1 %v8670_v6  ;;  %7009 = vmatprep.subr.bf16.mxu0 %v8677_v7  ;;  %v8716_v6 = vcombine.low %v3687_v45, %v3691_v0  ;;  %v8725_v7 = vcombine.high %v3695_v62, %v3699_v63  ;;  %v3735_v45 = vld [vmem:[#allocation6 + $0x610] sm:$0xff] }
 0x391   :  { %7173 = vmatprep.subr.bf16.mxu1 %v8679_v8  ;;  %v8727_v8 = vcombine.high %v3696_v3, %v3700_v5  ;;  %v3739_v0 = vld [vmem:[#allocation6 + $0x630] sm:$0xff] }
 0x393   :  { %7010 = vmatpush1.bf16.msra.mxu0 %v8676_v15  ;;  %v8726_v15 = vcombine.low %v3696_v3, %v3700_v5  ;;  %v3748_v3 = vld [vmem:[#allocation6 + $0x678] sm:$0xff]  ;;  %v8764_v5 = vcombine.low %v3735_v45, %v3739_v0 }
 0x394   :  { %7174 = vmatpush1.bf16.msra.mxu1 %v8678_v16  ;;  %7011 = vmatprep.subr.bf16.mxu0 %v8685_v17  ;;  %v8733_v16 = vcombine.high %v3703_v60, %v3707_v11  ;;  %v8735_v17 = vcombine.high %v3704_v13, %v3708_v14  ;;  %v3755_v60 = vld [vmem:[#allocation6 + $0x6b0] sm:$0xff]  ;;  %v3752_v11 = vld [vmem:[#allocation6 + $0x698] sm:$0xff] }
 0x395   :  { %7175 = vmatprep.subr.bf16.mxu1 %v8687_v4  ;;  %v3711_v4 = vld [vmem:[#allocation6 + $0x550] sm:$0xff] }
 0x396   :  { %v8740_v36 = vcombine.low %v3711_v4, %v3715_v20 }
 0x397   :  { %7012 = vmatpush1.bf16.msra.mxu0 %v8684_v25  ;;  %v8734_v25 = vcombine.low %v3704_v13, %v3708_v14  ;;  %v3756_v13 = vld [vmem:[#allocation6 + $0x6b8] sm:$0xff] }
 0x398   :  { %7176 = vmatpush1.bf16.msra.mxu1 %v8686_v23  ;;  %7013 = vmatprep.subr.bf16.mxu0 %v8693_v28  ;;  %v8741_v23 = vcombine.high %v3711_v4, %v3715_v20  ;;  %v8743_v28 = vcombine.high %v3712_v21, %v3716_v24  ;;  %v3763_v4 = vld [vmem:[#allocation6 + $0x6f0] sm:$0xff]  ;;  %v3760_v20 = vld [vmem:[#allocation6 + $0x6d8] sm:$0xff] }
 0x399   :  { %7177 = vmatprep.subr.bf16.mxu1 %v8695_v29  ;;  %v3719_v29 = vld [vmem:[#allocation6 + $0x590] sm:$0xff] }
 0x39a   :  { %v8748_v48 = vcombine.low %v3719_v29, %v3723_v37 }
 0x39b   :  { %7014 = vmatpush1.bf16.msra.mxu0 %v8692_v32  ;;  %v8742_v32 = vcombine.low %v3712_v21, %v3716_v24  ;;  %v3764_v21 = vld [vmem:[#allocation6 + $0x6f8] sm:$0xff] }
 0x39c   :  { %7178 = vmatpush1.bf16.msra.mxu1 %v8694_v33  ;;  %7024 = vmatprep.subr.bf16.mxu0 %v8701_v35  ;;  %v8749_v33 = vcombine.high %v3719_v29, %v3723_v37  ;;  %v8751_v35 = vcombine.high %v3720_v30, %v3724_v31  ;;  %v3771_v29 = vld [vmem:[#allocation6 + $0x730] sm:$0xff]  ;;  %v3768_v37 = vld [vmem:[#allocation6 + $0x718] sm:$0xff] }
 0x39d   :  { %7188 = vmatprep.subr.bf16.mxu1 %v8703_v34  ;;  %v3727_v34 = vld [vmem:[#allocation6 + $0x5d0] sm:$0xff]  ;;  %v3772_v30 = vld [vmem:[#allocation6 + $0x738] sm:$0xff] }
 0x39e   :  { %7016 = vmatmul.mubr.bf16.vlgmr.msra.gmra.mrb[12].mxu0 %v9866_v61 }
 0x39f   :  { %7180 = vmatmul.mubr.bf16.vlgmr.msra.gmra.mrb[12].mxu1 %v9866_v61  ;;  %7025 = vmatpush1.bf16.msra.mxu0 %v8700_v41  ;;  %v8718_v61 = vcombine.low %v3688_v54, %v3692_v55  ;;  %v3732_v41 = vld [vmem:[#allocation6 + $0x5f8] sm:$0xff]  ;;  %v8756_v55 = vcombine.low %v3727_v34, %v3731_v38 }
 0x3a0   :  { %7056 = vmatprep.mubr.bf16.mxu0 %v9868_v2  ;;  %7189 = vmatpush1.bf16.msra.mxu1 %v8702_v44  ;;  %v8757_v44 = vcombine.high %v3727_v34, %v3731_v38  ;;  %v3740_v54 = vld [vmem:[#allocation6 + $0x638] sm:$0xff]  ;;  %v3779_v34 = vld [vmem:[#allocation6 + $0x770] sm:$0xff] }
 0x3a1   :  { %7220 = vmatprep.mubr.bf16.mxu1 %v9868_v2  ;;  %7026 = vmatprep.subr.bf16.mxu0 %v8709_v50  ;;  %v8724_v2 = vcombine.low %v3695_v62, %v3699_v63  ;;  %v8759_v50 = vcombine.high %v3728_v40, %v3732_v41  ;;  %v3747_v62 = vld [vmem:[#allocation6 + $0x670] sm:$0xff]  ;;  %v3744_v63 = vld [vmem:[#allocation6 + $0x658] sm:$0xff] }
 0x3a2   :  { %7190 = vmatprep.subr.bf16.mxu1 %v8711_v52  ;;  %v3736_v52 = vld [vmem:[#allocation6 + $0x618] sm:$0xff] }
 0x3a3   :  { %7027 = vmatpush1.bf16.msra.mxu0 %v8708_v58  ;;  %v8758_v58 = vcombine.low %v3728_v40, %v3732_v41  ;;  %v3776_v38 = vld [vmem:[#allocation6 + $0x758] sm:$0xff] }
 0x3a4   :  { %7191 = vmatpush1.bf16.msra.mxu1 %v8710_v59  ;;  %7028 = vmatprep.subr.bf16.mxu0 %v8717_v9  ;;  %v8765_v59 = vcombine.high %v3735_v45, %v3739_v0  ;;  %v8767_v9 = vcombine.high %v3736_v52, %v3740_v54  ;;  %v3780_v40 = vld [vmem:[#allocation6 + $0x778] sm:$0xff]  ;;  %v3787_v45 = vld [vmem:[#allocation6 + $0x7b0] sm:$0xff] }
 0x3a5   :  { %7192 = vmatprep.subr.bf16.mxu1 %v8719_v51  ;;  %v3743_v51 = vld [vmem:[#allocation6 + $0x650] sm:$0xff]  ;;  %v3784_v0 = vld [vmem:[#allocation6 + $0x798] sm:$0xff] }
 0x3a6   :  { %v8772_v14 = vcombine.low %v3743_v51, %v3747_v62 }
 0x3a7   :  { %7029 = vmatpush1.bf16.msra.mxu0 %v8716_v6  ;;  %v8766_v6 = vcombine.low %v3736_v52, %v3740_v54  ;;  %v3788_v52 = vld [vmem:[#allocation6 + $0x7b8] sm:$0xff] }
 0x3a8   :  { %7193 = vmatpush1.bf16.msra.mxu1 %v8718_v61  ;;  %7030 = vmatprep.subr.bf16.mxu0 %v8725_v7  ;;  %v8773_v61 = vcombine.high %v3743_v51, %v3747_v62  ;;  %v8775_v7 = vcombine.high %v3744_v63, %v3748_v3  ;;  %v3795_v51 = vld [vmem:[#allocation6 + $0x7f0] sm:$0xff]  ;;  %v3792_v62 = vld [vmem:[#allocation6 + $0x7d8] sm:$0xff] }
 0x3a9   :  { %7194 = vmatprep.subr.bf16.mxu1 %v8727_v8  ;;  %v3751_v8 = vld [vmem:[#allocation6 + $0x690] sm:$0xff] }
 0x3aa   :  { %v8780_v24 = vcombine.low %v3751_v8, %v3755_v60 }
 0x3ab   :  { %7031 = vmatpush1.bf16.msra.mxu0 %v8724_v2  ;;  %v8774_v2 = vcombine.low %v3744_v63, %v3748_v3  ;;  %v3796_v63 = vld [vmem:[#allocation6 + $0x7f8] sm:$0xff] }
 0x3ac   :  { %7195 = vmatpush1.bf16.msra.mxu1 %v8726_v15  ;;  %7032 = vmatprep.subr.bf16.mxu0 %v8733_v16  ;;  %v8781_v15 = vcombine.high %v3751_v8, %v3755_v60  ;;  %v8783_v16 = vcombine.high %v3752_v11, %v3756_v13  ;;  %v3803_v8 = vld [vmem:[#allocation6 + $0x830] sm:$0xff]  ;;  %v3800_v60 = vld [vmem:[#allocation6 + $0x818] sm:$0xff] }
 0x3ad   :  { %7196 = vmatprep.subr.bf16.mxu1 %v8735_v17  ;;  %v3759_v17 = vld [vmem:[#allocation6 + $0x6d0] sm:$0xff] }
 0x3ae   :  { %v8788_v31 = vcombine.low %v3759_v17, %v3763_v4 }
 0x3af   :  { %7033 = vmatpush1.bf16.msra.mxu0 %v8732_v27  ;;  %v8782_v27 = vcombine.low %v3752_v11, %v3756_v13  ;;  %v3804_v11 = vld [vmem:[#allocation6 + $0x838] sm:$0xff] }
 0x3b0   :  { %7197 = vmatpush1.bf16.msra.mxu1 %v8734_v25  ;;  %7034 = vmatprep.subr.bf16.mxu0 %v8741_v23  ;;  %v8789_v25 = vcombine.high %v3759_v17, %v3763_v4  ;;  %v8791_v23 = vcombine.high %v3760_v20, %v3764_v21  ;;  %v3811_v17 = vld [vmem:[#allocation6 + $0x870] sm:$0xff] }
 0x3b1   :  { %7198 = vmatprep.subr.bf16.mxu1 %v8743_v28  ;;  %v3767_v28 = vld [vmem:[#allocation6 + $0x710] sm:$0xff] }
 0x3b2   :  { %v8796_v41 = vcombine.low %v3767_v28, %v3771_v29 }
 0x3b3   :  { %7035 = vmatpush1.bf16.msra.mxu0 %v8740_v36  ;;  %v8790_v36 = vcombine.low %v3760_v20, %v3764_v21  ;;  %v3808_v20 = vld [vmem:[#allocation6 + $0x858] sm:$0xff] }
 0x3b4   :  { %7199 = vmatpush1.bf16.msra.mxu1 %v8742_v32  ;;  %7036 = vmatprep.subr.bf16.mxu0 %v8749_v33  ;;  %v8797_v32 = vcombine.high %v3767_v28, %v3771_v29  ;;  %v8799_v33 = vcombine.high %v3768_v37, %v3772_v30  ;;  %v3812_v21 = vld [vmem:[#allocation6 + $0x878] sm:$0xff] }
 0x3b5   :  { %7200 = vmatprep.subr.bf16.mxu1 %v8751_v35  ;;  %v3775_v35 = vld [vmem:[#allocation6 + $0x750] sm:$0xff]  ;;  %v8839_v28 = vcombine.high %v3808_v20, %v3812_v21  ;;  %v3816_v29 = vld [vmem:[#allocation6 + $0x898] sm:$0xff] }
 0x3b6   :  { %v8804_v54 = vcombine.low %v3775_v35, %v3779_v34 }
 0x3b7   :  { %7037 = vmatpush1.bf16.msra.mxu0 %v8748_v48  ;;  %v8798_v48 = vcombine.low %v3768_v37, %v3772_v30  ;;  %v3820_v37 = vld [vmem:[#allocation6 + $0x8b8] sm:$0xff] }
 0x3b8   :  { %7201 = vmatpush1.bf16.msra.mxu1 %v8750_v49  ;;  %7038 = vmatprep.subr.bf16.mxu0 %v8757_v44  ;;  %v8805_v49 = vcombine.high %v3775_v35, %v3779_v34  ;;  %v8807_v44 = vcombine.high %v3776_v38, %v3780_v40  ;;  %v3827_v35 = vld [vmem:[#allocation6 + $0x8f0] sm:$0xff]  ;;  %v3824_v34 = vld [vmem:[#allocation6 + $0x8d8] sm:$0xff] }
 0x3b9   :  { %7202 = vmatprep.subr.bf16.mxu1 %v8759_v50  ;;  %v3783_v50 = vld [vmem:[#allocation6 + $0x790] sm:$0xff] }
 0x3ba   :  { %v8812_v3 = vcombine.low %v3783_v50, %v3787_v45 }
 0x3bb   :  { %7039 = vmatpush1.bf16.msra.mxu0 %v8756_v55  ;;  %v8806_v55 = vcombine.low %v3776_v38, %v3780_v40  ;;  %v3828_v38 = vld [vmem:[#allocation6 + $0x8f8] sm:$0xff] }
 0x3bc   :  { %7203 = vmatpush1.bf16.msra.mxu1 %v8758_v58  ;;  %7040 = vmatprep.subr.bf16.mxu0 %v8765_v59  ;;  %v8813_v58 = vcombine.high %v3783_v50, %v3787_v45  ;;  %v8815_v59 = vcombine.high %v3784_v0, %v3788_v52  ;;  %v3832_v50 = vld [vmem:[#allocation6 + $0x918] sm:$0xff] }
 0x3bd   :  { %7204 = vmatprep.subr.bf16.mxu1 %v8767_v9  ;;  %v3791_v9 = vld [vmem:[#allocation6 + $0x7d0] sm:$0xff]  ;;  %v3836_v45 = vld [vmem:[#allocation6 + $0x938] sm:$0xff] }
 0x3be   :  { %v8820_v13 = vcombine.low %v3791_v9, %v3795_v51 }
 0x3bf   :  { %7041 = vmatpush1.bf16.msra.mxu0 %v8764_v5  ;;  %v8814_v5 = vcombine.low %v3784_v0, %v3788_v52  ;;  %v8854_v0 = vcombine.low %v3824_v34, %v3828_v38 }
 0x3c0   :  { %7205 = vmatpush1.bf16.msra.mxu1 %v8766_v6  ;;  %7042 = vmatprep.subr.bf16.mxu0 %v8773_v61  ;;  %v8821_v6 = vcombine.high %v3791_v9, %v3795_v51  ;;  %v8823_v61 = vcombine.high %v3792_v62, %v3796_v63  ;;  %v3844_v9 = vld [vmem:[#allocation6 + $0x978] sm:$0xff] }
 0x3c1   :  { %7206 = vmatprep.subr.bf16.mxu1 %v8775_v7  ;;  %v3799_v7 = vld [vmem:[#allocation6 + $0x810] sm:$0xff] }
 0x3c2   :  { %v8828_v4 = vcombine.low %v3799_v7, %v3803_v8 }
 0x3c3   :  { %7043 = vmatpush1.bf16.msra.mxu0 %v8772_v14  ;;  %v8822_v14 = vcombine.low %v3792_v62, %v3796_v63  ;;  %v8862_v62 = vcombine.low %v3832_v50, %v3836_v45 }
 0x3c4   :  { %7207 = vmatpush1.bf16.msra.mxu1 %v8774_v2  ;;  %7044 = vmatprep.subr.bf16.mxu0 %v8781_v15  ;;  %v8829_v2 = vcombine.high %v3799_v7, %v3803_v8  ;;  %v8831_v15 = vcombine.high %v3800_v60, %v3804_v11  ;;  %v3852_v7 = vld [vmem:[#allocation6 + $0x9b8] sm:$0xff] }
 0x3c5   :  { %7208 = vmatprep.subr.bf16.mxu1 %v8783_v16  ;;  %v3807_v16 = vld [vmem:[#allocation6 + $0x850] sm:$0xff] }
 0x3c6   :  { %v8836_v30 = vcombine.low %v3807_v16, %v3811_v17 }
 0x3c7   :  { %7045 = vmatpush1.bf16.msra.mxu0 %v8780_v24  ;;  %v8830_v24 = vcombine.low %v3800_v60, %v3804_v11 }
 0x3c8   :  { %7209 = vmatpush1.bf16.msra.mxu1 %v8782_v27  ;;  %7046 = vmatprep.subr.bf16.mxu0 %v8789_v25  ;;  %v8837_v27 = vcombine.high %v3807_v16, %v3811_v17  ;;  %v3815_v25 = vld [vmem:[#allocation6 + $0x890] sm:$0xff]  ;;  %v3860_v16 = vld [vmem:[#allocation6 + $0x9f8] sm:$0xff] }
 0x3c9   :  { %7210 = vmatprep.subr.bf16.mxu1 %v8791_v23  ;;  %v3819_v23 = vld [vmem:[#allocation6 + $0x8b0] sm:$0xff] }
 0x3ca   :  { %v8844_v40 = vcombine.low %v3815_v25, %v3819_v23 }
 0x3cb   :  { %7047 = vmatpush1.bf16.msra.mxu0 %v8788_v31  ;;  %v8838_v31 = vcombine.low %v3808_v20, %v3812_v21 }
 0x3cc   :  { %7211 = vmatpush1.bf16.msra.mxu1 %v8790_v36  ;;  %7048 = vmatprep.subr.bf16.mxu0 %v8797_v32  ;;  %v8845_v36 = vcombine.high %v3815_v25, %v3819_v23  ;;  %v8847_v32 = vcombine.high %v3816_v29, %v3820_v37  ;;  %v3864_v25 = vld [vmem:[#allocation6 + $0xa18] sm:$0xff] }
 0x3cd   :  { %7212 = vmatprep.subr.bf16.mxu1 %v8799_v33  ;;  %v3823_v33 = vld [vmem:[#allocation6 + $0x8d0] sm:$0xff]  ;;  %v3868_v23 = vld [vmem:[#allocation6 + $0xa38] sm:$0xff] }
 0x3cf   :  { %7049 = vmatpush1.bf16.msra.mxu0 %v8796_v41  ;;  %v8853_v41 = vcombine.high %v3823_v33, %v3827_v35 }
 0x3d0   :  { %7213 = vmatpush1.bf16.msra.mxu1 %v8798_v48  ;;  %7050 = vmatprep.subr.bf16.mxu0 %v8805_v49  ;;  %v8855_v48 = vcombine.high %v3824_v34, %v3828_v38  ;;  %v3831_v49 = vld [vmem:[#allocation6 + $0x910] sm:$0xff]  ;;  %v8894_v34 = vcombine.low %v3864_v25, %v3868_v23 }
 0x3d1   :  { %7214 = vmatprep.subr.bf16.mxu1 %v8807_v44  ;;  %v3835_v44 = vld [vmem:[#allocation6 + $0x930] sm:$0xff] }
 0x3d2   :  { %v8861_v52 = vcombine.high %v3831_v49, %v3835_v44  ;;  %v8860_v51 = vcombine.low %v3831_v49, %v3835_v44  ;;  %v3884_v49 = vld [vmem:[#allocation6 + $0xab8] sm:$0xff] }
 0x3d3   :  { %7051 = vmatpush1.bf16.msra.mxu0 %v8804_v54  ;;  %v8863_v54 = vcombine.high %v3832_v50, %v3836_v45 }
 0x3d4   :  { %7215 = vmatpush1.bf16.msra.mxu1 %v8806_v55  ;;  %7052 = vmatprep.subr.bf16.mxu0 %v8813_v58  ;;  %v3839_v55 = vld [vmem:[#allocation6 + $0x950] sm:$0xff] }
 0x3d5   :  { %7216 = vmatprep.subr.bf16.mxu1 %v8815_v59  ;;  %v3843_v58 = vld [vmem:[#allocation6 + $0x970] sm:$0xff]  ;;  %v3840_v59 = vld [vmem:[#allocation6 + $0x958] sm:$0xff] }
 0x3d6   :  { %v8869_v63 = vcombine.high %v3839_v55, %v3843_v58  ;;  %v8868_v8 = vcombine.low %v3839_v55, %v3843_v58  ;;  %v8870_v60 = vcombine.low %v3840_v59, %v3844_v9  ;;  %v3892_v55 = vld [vmem:[#allocation6 + $0xaf8] sm:$0xff] }
 0x3d7   :  { %7053 = vmatpush1.bf16.msra.mxu0 %v8812_v3  ;;  %v8871_v3 = vcombine.high %v3840_v59, %v3844_v9 }
 0x3d8   :  { %7217 = vmatpush1.bf16.msra.mxu1 %v8814_v5  ;;  %7054 = vmatprep.subr.bf16.mxu0 %v8821_v6  ;;  %v3847_v5 = vld [vmem:[#allocation6 + $0x990] sm:$0xff] }
 0x3d9   :  { %7218 = vmatprep.subr.bf16.mxu1 %v8823_v61  ;;  %v3851_v6 = vld [vmem:[#allocation6 + $0x9b0] sm:$0xff]  ;;  %v3848_v61 = vld [vmem:[#allocation6 + $0x998] sm:$0xff] }
 0x3da   :  { %v8877_v11 = vcombine.high %v3847_v5, %v3851_v6  ;;  %v8876_v17 = vcombine.low %v3847_v5, %v3851_v6  ;;  %v3900_v5 = vld [vmem:[#allocation6 + $0xb38] sm:$0xff] }
 0x3db   :  { %7055 = vmatpush1.bf16.msra.mxu0 %v8820_v13  ;;  %v8879_v13 = vcombine.high %v3848_v61, %v3852_v7 }
 0x3dc   :  { %7219 = vmatpush1.bf16.msra.mxu1 %v8822_v14  ;;  %7065 = vmatprep.subr.bf16.mxu0 %v8829_v2  ;;  %v3855_v14 = vld [vmem:[#allocation6 + $0x9d0] sm:$0xff] }
 0x3dd   :  { %7229 = vmatprep.subr.bf16.mxu1 %v8831_v15  ;;  %v3859_v2 = vld [vmem:[#allocation6 + $0x9f0] sm:$0xff]  ;;  %v3856_v15 = vld [vmem:[#allocation6 + $0x9d8] sm:$0xff] }
 0x3de   :  { %7057 = vmatmul.mubr.bf16.vlgmr.msra.gmra.mrb[12].mxu0 %v9879_v26  ;;  %v8885_v20 = vcombine.high %v3855_v14, %v3859_v2  ;;  %v8887_v21 = vcombine.high %v3856_v15, %v3860_v16 }
 0x3df   :  { %7221 = vmatmul.mubr.bf16.vlgmr.msra.gmra.mrb[12].mxu1 %v9879_v26  ;;  %7066 = vmatpush1.bf16.msra.mxu0 %v8828_v4  ;;  %v8846_v26 = vcombine.low %v3816_v29, %v3820_v37  ;;  %v8878_v4 = vcombine.low %v3848_v61, %v3852_v7  ;;  %v8886_v29 = vcombine.low %v3856_v15, %v3860_v16 }
 0x3e0   :  { %7097 = vmatprep.mubr.bf16.mxu0 %v9899_v10  ;;  %7230 = vmatpush1.bf16.msra.mxu1 %v8830_v24  ;;  %v3863_v24 = vld [vmem:[#allocation6 + $0xa10] sm:$0xff] }
 0x3e1   :  { %7261 = vmatprep.mubr.bf16.mxu1 %v9899_v10  ;;  %7067 = vmatprep.subr.bf16.mxu0 %v8837_v27  ;;  %v8852_v10 = vcombine.low %v3823_v33, %v3827_v35  ;;  %v3867_v27 = vld [vmem:[#allocation6 + $0xa30] sm:$0xff]  ;;  %v3876_v33 = vld [vmem:[#allocation6 + $0xa78] sm:$0xff] }
 0x3e2   :  { %7231 = vmatprep.subr.bf16.mxu1 %v8839_v28  ;;  %v8884_v28 = vcombine.low %v3855_v14, %v3859_v2  ;;  %v8893_v37 = vcombine.high %v3863_v24, %v3867_v27  ;;  %v8892_v35 = vcombine.low %v3863_v24, %v3867_v27  ;;  %v3908_v14 = vld [vmem:[#allocation6 + $0xb78] sm:$0xff] }
 0x3e3   :  { %7068 = vmatpush1.bf16.msra.mxu0 %v8836_v30  ;;  %v8895_v30 = vcombine.high %v3864_v25, %v3868_v23  ;;  %v3916_v24 = vld [vmem:[#allocation6 + $0xbb8] sm:$0xff] }
 0x3e4   :  { %7232 = vmatpush1.bf16.msra.mxu1 %v8838_v31  ;;  %7069 = vmatprep.subr.bf16.mxu0 %v8845_v36  ;;  %v3871_v31 = vld [vmem:[#allocation6 + $0xa50] sm:$0xff] }
 0x3e5   :  { %7233 = vmatprep.subr.bf16.mxu1 %v8847_v32  ;;  %v3875_v36 = vld [vmem:[#allocation6 + $0xa70] sm:$0xff]  ;;  %v3872_v32 = vld [vmem:[#allocation6 + $0xa58] sm:$0xff] }
 0x3e6   :  { %v8901_v38 = vcombine.high %v3871_v31, %v3875_v36  ;;  %v8900_v44 = vcombine.low %v3871_v31, %v3875_v36  ;;  %v8902_v50 = vcombine.low %v3872_v32, %v3876_v33  ;;  %v3924_v31 = vld [vmem:[#allocation6 + $0xbf8] sm:$0xff] }
 0x3e7   :  { %7070 = vmatpush1.bf16.msra.mxu0 %v8844_v40  ;;  %v8903_v40 = vcombine.high %v3872_v32, %v3876_v33 }
 0x3e8   :  { %7234 = vmatpush1.bf16.msra.mxu1 %v8846_v26  ;;  %7071 = vmatprep.subr.bf16.mxu0 %v8853_v41  ;;  %v3879_v26 = vld [vmem:[#allocation6 + $0xa90] sm:$0xff] }
 0x3e9   :  { %7235 = vmatprep.subr.bf16.mxu1 %v8855_v48  ;;  %v3883_v41 = vld [vmem:[#allocation6 + $0xab0] sm:$0xff]  ;;  %v3880_v48 = vld [vmem:[#allocation6 + $0xa98] sm:$0xff] }
 0x3ea   :  { %v8909_v45 = vcombine.high %v3879_v26, %v3883_v41  ;;  %v8908_v58 = vcombine.low %v3879_v26, %v3883_v41  ;;  %v8910_v59 = vcombine.low %v3880_v48, %v3884_v49  ;;  %v3932_v26 = vld [vmem:[#allocation6 + $0xc38] sm:$0xff] }
 0x3eb   :  { %7072 = vmatpush1.bf16.msra.mxu0 %v8852_v10  ;;  %v8911_v10 = vcombine.high %v3880_v48, %v3884_v49 }
 0x3ec   :  { %7236 = vmatpush1.bf16.msra.mxu1 %v8854_v0  ;;  %7073 = vmatprep.subr.bf16.mxu0 %v8861_v52  ;;  %v3887_v0 = vld [vmem:[#allocation6 + $0xad0] sm:$0xff] }
 0x3ed   :  { %7237 = vmatprep.subr.bf16.mxu1 %v8863_v54  ;;  %v3891_v52 = vld [vmem:[#allocation6 + $0xaf0] sm:$0xff]  ;;  %v3888_v54 = vld [vmem:[#allocation6 + $0xad8] sm:$0xff] }
 0x3ee   :  { %v8917_v9 = vcombine.high %v3887_v0, %v3891_v52  ;;  %v8916_v6 = vcombine.low %v3887_v0, %v3891_v52  ;;  %v8918_v61 = vcombine.low %v3888_v54, %v3892_v55  ;;  %v3936_v0 = vld [vmem:[#allocation6 + $0xc58] sm:$0xff] }
 0x3ef   :  { %7074 = vmatpush1.bf16.msra.mxu0 %v8860_v51  ;;  %v8919_v51 = vcombine.high %v3888_v54, %v3892_v55  ;;  %v3940_v52 = vld [vmem:[#allocation6 + $0xc78] sm:$0xff] }
 0x3f0   :  { %7238 = vmatpush1.bf16.msra.mxu1 %v8862_v62  ;;  %7075 = vmatprep.subr.bf16.mxu0 %v8869_v63  ;;  %v3895_v62 = vld [vmem:[#allocation6 + $0xb10] sm:$0xff] }
 0x3f1   :  { %7239 = vmatprep.subr.bf16.mxu1 %v8871_v3  ;;  %v3899_v63 = vld [vmem:[#allocation6 + $0xb30] sm:$0xff]  ;;  %v3896_v3 = vld [vmem:[#allocation6 + $0xb18] sm:$0xff] }
 0x3f2   :  { %v8925_v7 = vcombine.high %v3895_v62, %v3899_v63  ;;  %v8924_v2 = vcombine.low %v3895_v62, %v3899_v63  ;;  %v8926_v15 = vcombine.low %v3896_v3, %v3900_v5  ;;  %v3948_v62 = vld [vmem:[#allocation6 + $0xcb8] sm:$0xff] }
 0x3f3   :  { %7076 = vmatpush1.bf16.msra.mxu0 %v8868_v8  ;;  %v8927_v8 = vcombine.high %v3896_v3, %v3900_v5  ;;  %v8966_v3 = vcombine.low %v3936_v0, %v3940_v52 }
 0x3f4   :  { %7240 = vmatpush1.bf16.msra.mxu1 %v8870_v60  ;;  %7077 = vmatprep.subr.bf16.mxu0 %v8877_v11  ;;  %v3903_v60 = vld [vmem:[#allocation6 + $0xb50] sm:$0xff] }
 0x3f5   :  { %7241 = vmatprep.subr.bf16.mxu1 %v8879_v13  ;;  %v3907_v11 = vld [vmem:[#allocation6 + $0xb70] sm:$0xff]  ;;  %v3904_v13 = vld [vmem:[#allocation6 + $0xb58] sm:$0xff] }
 0x3f6   :  { %v8933_v16 = vcombine.high %v3903_v60, %v3907_v11  ;;  %v8932_v27 = vcombine.low %v3903_v60, %v3907_v11  ;;  %v8934_v25 = vcombine.low %v3904_v13, %v3908_v14  ;;  %v3956_v60 = vld [vmem:[#allocation6 + $0xcf8] sm:$0xff] }
 0x3f7   :  { %7078 = vmatpush1.bf16.msra.mxu0 %v8876_v17  ;;  %v8935_v17 = vcombine.high %v3904_v13, %v3908_v14 }
 0x3f8   :  { %7242 = vmatpush1.bf16.msra.mxu1 %v8878_v4  ;;  %7079 = vmatprep.subr.bf16.mxu0 %v8885_v20  ;;  %v3911_v4 = vld [vmem:[#allocation6 + $0xb90] sm:$0xff] }
 0x3f9   :  { %7243 = vmatprep.subr.bf16.mxu1 %v8887_v21  ;;  %v3915_v20 = vld [vmem:[#allocation6 + $0xbb0] sm:$0xff]  ;;  %v3912_v21 = vld [vmem:[#allocation6 + $0xb98] sm:$0xff] }
 0x3fa   :  { %v8941_v23 = vcombine.high %v3911_v4, %v3915_v20  ;;  %v8940_v36 = vcombine.low %v3911_v4, %v3915_v20  ;;  %v8942_v32 = vcombine.low %v3912_v21, %v3916_v24 }
 0x3fb   :  { %7080 = vmatpush1.bf16.msra.mxu0 %v8884_v28  ;;  %v8943_v28 = vcombine.high %v3912_v21, %v3916_v24  ;;  %v3967_v24 = vld [vmem:[#allocation6 + $0xd50] sm:$0xff] }
 0x3fc   :  { %7244 = vmatpush1.bf16.msra.mxu1 %v8886_v29  ;;  %7081 = vmatprep.subr.bf16.mxu0 %v8893_v37  ;;  %v3919_v29 = vld [vmem:[#allocation6 + $0xbd0] sm:$0xff] }
 0x3fd   :  { %7245 = vmatprep.subr.bf16.mxu1 %v8895_v30  ;;  %v3923_v37 = vld [vmem:[#allocation6 + $0xbf0] sm:$0xff]  ;;  %v3920_v30 = vld [vmem:[#allocation6 + $0xbd8] sm:$0xff] }
 0x3fe   :  { %v8949_v33 = vcombine.high %v3919_v29, %v3923_v37  ;;  %v8948_v41 = vcombine.low %v3919_v29, %v3923_v37  ;;  %v8950_v48 = vcombine.low %v3920_v30, %v3924_v31 }
 0x3ff   :  { %7082 = vmatpush1.bf16.msra.mxu0 %v8892_v35  ;;  %v8951_v35 = vcombine.high %v3920_v30, %v3924_v31  ;;  %v3975_v31 = vld [vmem:[#allocation6 + $0xd90] sm:$0xff] }
 0x400   :  { %7246 = vmatpush1.bf16.msra.mxu1 %v8894_v34  ;;  %7083 = vmatprep.subr.bf16.mxu0 %v8901_v38  ;;  %v3927_v34 = vld [vmem:[#allocation6 + $0xc10] sm:$0xff] }
 0x401   :  { %7247 = vmatprep.subr.bf16.mxu1 %v8903_v40  ;;  %v3931_v38 = vld [vmem:[#allocation6 + $0xc30] sm:$0xff]  ;;  %v3928_v40 = vld [vmem:[#allocation6 + $0xc18] sm:$0xff] }
 0x402   :  { %v8957_v49 = vcombine.high %v3927_v34, %v3931_v38  ;;  %v8958_v54 = vcombine.low %v3928_v40, %v3932_v26 }
 0x403   :  { %7084 = vmatpush1.bf16.msra.mxu0 %v8900_v44  ;;  %v8959_v44 = vcombine.high %v3928_v40, %v3932_v26 }
 0x404   :  { %7248 = vmatpush1.bf16.msra.mxu1 %v8902_v50  ;;  %7085 = vmatprep.subr.bf16.mxu0 %v8909_v45  ;;  %v3935_v50 = vld [vmem:[#allocation6 + $0xc50] sm:$0xff] }
 0x405   :  { %7249 = vmatprep.subr.bf16.mxu1 %v8911_v10  ;;  %v3939_v45 = vld [vmem:[#allocation6 + $0xc70] sm:$0xff]  ;;  %v8956_v10 = vcombine.low %v3927_v34, %v3931_v38 }
 0x406   :  { %v8965_v55 = vcombine.high %v3935_v50, %v3939_v45  ;;  %v8964_v63 = vcombine.low %v3935_v50, %v3939_v45  ;;  %v3984_v45 = vld [vmem:[#allocation6 + $0xdd8] sm:$0xff] }
 0x407   :  { %7086 = vmatpush1.bf16.msra.mxu0 %v8908_v58  ;;  %v3943_v58 = vld [vmem:[#allocation6 + $0xc90] sm:$0xff] }
 0x408   :  { %7250 = vmatpush1.bf16.msra.mxu1 %v8910_v59  ;;  %7087 = vmatprep.subr.bf16.mxu0 %v8917_v9  ;;  %v3947_v59 = vld [vmem:[#allocation6 + $0xcb0] sm:$0xff]  ;;  %v8967_v9 = vcombine.high %v3936_v0, %v3940_v52 }
 0x409   :  { %7251 = vmatprep.subr.bf16.mxu1 %v8919_v51  ;;  %v3944_v51 = vld [vmem:[#allocation6 + $0xc98] sm:$0xff]  ;;  %v8973_v5 = vcombine.high %v3943_v58, %v3947_v59  ;;  %v8972_v11 = vcombine.low %v3943_v58, %v3947_v59 }
 0x40b   :  { %7088 = vmatpush1.bf16.msra.mxu0 %v8916_v6  ;;  %v8975_v6 = vcombine.high %v3944_v51, %v3948_v62 }
 0x40c   :  { %7252 = vmatpush1.bf16.msra.mxu1 %v8918_v61  ;;  %7089 = vmatprep.subr.bf16.mxu0 %v8925_v7  ;;  %v3951_v61 = vld [vmem:[#allocation6 + $0xcd0] sm:$0xff] }
 0x40d   :  { %7253 = vmatprep.subr.bf16.mxu1 %v8927_v8  ;;  %v3955_v7 = vld [vmem:[#allocation6 + $0xcf0] sm:$0xff]  ;;  %v3952_v8 = vld [vmem:[#allocation6 + $0xcd8] sm:$0xff] }
 0x40e   :  { %v8981_v13 = vcombine.high %v3951_v61, %v3955_v7  ;;  %v8983_v14 = vcombine.high %v3952_v8, %v3956_v60  ;;  %v8982_v4 = vcombine.low %v3952_v8, %v3956_v60  ;;  %v3999_v60 = vld [vmem:[#allocation6 + $0xe50] sm:$0xff] }
 0x40f   :  { %7090 = vmatpush1.bf16.msra.mxu0 %v8924_v2  ;;  %v3959_v2 = vld [vmem:[#allocation6 + $0xd10] sm:$0xff] }
 0x410   :  { %7254 = vmatpush1.bf16.msra.mxu1 %v8926_v15  ;;  %7091 = vmatprep.subr.bf16.mxu0 %v8933_v16  ;;  %v3963_v15 = vld [vmem:[#allocation6 + $0xd30] sm:$0xff]  ;;  %v3960_v16 = vld [vmem:[#allocation6 + $0xd18] sm:$0xff] }
 0x411   :  { %7255 = vmatprep.subr.bf16.mxu1 %v8935_v17  ;;  %v3964_v17 = vld [vmem:[#allocation6 + $0xd38] sm:$0xff]  ;;  %v8989_v20 = vcombine.high %v3959_v2, %v3963_v15 }
 0x412   :  { %v8991_v21 = vcombine.high %v3960_v16, %v3964_v17  ;;  %v8990_v29 = vcombine.low %v3960_v16, %v3964_v17  ;;  %v4007_v17 = vld [vmem:[#allocation6 + $0xe90] sm:$0xff] }
 0x413   :  { %7092 = vmatpush1.bf16.msra.mxu0 %v8932_v27  ;;  %v3971_v27 = vld [vmem:[#allocation6 + $0xd70] sm:$0xff] }
 0x414   :  { %7256 = vmatpush1.bf16.msra.mxu1 %v8934_v25  ;;  %7093 = vmatprep.subr.bf16.mxu0 %v8941_v23  ;;  %v3968_v25 = vld [vmem:[#allocation6 + $0xd58] sm:$0xff]  ;;  %v8997_v37 = vcombine.high %v3967_v24, %v3971_v27 }
 0x415   :  { %7257 = vmatprep.subr.bf16.mxu1 %v8943_v28  ;;  %v3972_v23 = vld [vmem:[#allocation6 + $0xd78] sm:$0xff]  ;;  %v8988_v28 = vcombine.low %v3959_v2, %v3963_v15 }
 0x416   :  { %v8999_v30 = vcombine.high %v3968_v25, %v3972_v23  ;;  %v8998_v34 = vcombine.low %v3968_v25, %v3972_v23  ;;  %v4015_v23 = vld [vmem:[#allocation6 + $0xed0] sm:$0xff] }
 0x417   :  { %7094 = vmatpush1.bf16.msra.mxu0 %v8940_v36  ;;  %v3979_v36 = vld [vmem:[#allocation6 + $0xdb0] sm:$0xff] }
 0x418   :  { %7258 = vmatpush1.bf16.msra.mxu1 %v8942_v32  ;;  %7095 = vmatprep.subr.bf16.mxu0 %v8949_v33  ;;  %v3976_v32 = vld [vmem:[#allocation6 + $0xd98] sm:$0xff]  ;;  %v9005_v38 = vcombine.high %v3975_v31, %v3979_v36 }
 0x419   :  { %7259 = vmatprep.subr.bf16.mxu1 %v8951_v35  ;;  %v3980_v33 = vld [vmem:[#allocation6 + $0xdb8] sm:$0xff]  ;;  %v8996_v35 = vcombine.low %v3967_v24, %v3971_v27 }
 0x41a   :  { %v9006_v59 = vcombine.low %v3976_v32, %v3980_v33 }
 0x41b   :  { %7096 = vmatpush1.bf16.msra.mxu0 %v8948_v41  ;;  %v9007_v41 = vcombine.high %v3976_v32, %v3980_v33  ;;  %v4023_v33 = vld [vmem:[#allocation6 + $0xf10] sm:$0xff] }
 0x41c   :  { %7260 = vmatpush1.bf16.msra.mxu1 %v8950_v48  ;;  %7106 = vmatprep.subr.bf16.mxu0 %v8957_v49  ;;  %v3983_v48 = vld [vmem:[#allocation6 + $0xdd0] sm:$0xff] }
 0x41d   :  { %7270 = vmatprep.subr.bf16.mxu1 %v8959_v44  ;;  %v3987_v49 = vld [vmem:[#allocation6 + $0xdf0] sm:$0xff] }
 0x41e   :  { %7098 = vmatmul.mubr.bf16.vlgmr.msra.gmra.mrb[12].mxu0 %v9901_v57 }
 0x41f   :  { %7262 = vmatmul.mubr.bf16.vlgmr.msra.gmra.mrb[12].mxu1 %v9901_v57  ;;  %7107 = vmatpush1.bf16.msra.mxu0 %v8956_v10  ;;  %v8974_v57 = vcombine.low %v3944_v51, %v3948_v62  ;;  %v3988_v10 = vld [vmem:[#allocation6 + $0xdf8] sm:$0xff]  ;;  %v3991_v62 = vld [vmem:[#allocation6 + $0xe10] sm:$0xff] }
 0x420   :  { %7138 = vmatprep.mubr.bf16.mxu0 %v9905_v19  ;;  %7271 = vmatpush1.bf16.msra.mxu1 %v8958_v54  ;;  %v9004_v54 = vcombine.low %v3975_v31, %v3979_v36  ;;  %v9015_v51 = vcombine.high %v3984_v45, %v3988_v10 }
 0x421   :  { %7302 = vmatprep.mubr.bf16.mxu1 %v9905_v19  ;;  %7108 = vmatprep.subr.bf16.mxu0 %v8965_v55  ;;  %v8980_v19 = vcombine.low %v3951_v61, %v3955_v7  ;;  %v9014_v61 = vcombine.low %v3984_v45, %v3988_v10  ;;  %v4031_v10 = vld [vmem:[#allocation6 + $0xf50] sm:$0xff] }
 0x422   :  { %7272 = vmatprep.subr.bf16.mxu1 %v8967_v9  ;;  %v9013_v9 = vcombine.high %v3983_v48, %v3987_v49 }
 0x423   :  { %7109 = vmatpush1.bf16.msra.mxu0 %v8964_v63  ;;  %v3995_v63 = vld [vmem:[#allocation6 + $0xe30] sm:$0xff] }
 0x424   :  { %7273 = vmatpush1.bf16.msra.mxu1 %v8966_v3  ;;  %7110 = vmatprep.subr.bf16.mxu0 %v8973_v5  ;;  %v3992_v3 = vld [vmem:[#allocation6 + $0xe18] sm:$0xff]  ;;  %v9021_v7 = vcombine.high %v3991_v62, %v3995_v63 }
 0x425   :  { %7274 = vmatprep.subr.bf16.mxu1 %v8975_v6  ;;  %v3996_v5 = vld [vmem:[#allocation6 + $0xe38] sm:$0xff]  ;;  %v9012_v6 = vcombine.low %v3983_v48, %v3987_v49 }
 0x426   :  { %v9023_v8 = vcombine.high %v3992_v3, %v3996_v5  ;;  %v9022_v2 = vcombine.low %v3992_v3, %v3996_v5  ;;  %v4044_v3 = vld [vmem:[#allocation6 + $0xfb8] sm:$0xff]  ;;  %v9942_v5 = vld [vmem:[#allocation7] sm:$0xff] }
 0x427   :  { %7111 = vmatpush1.bf16.msra.mxu0 %v8972_v11  ;;  %v4003_v11 = vld [vmem:[#allocation6 + $0xe70] sm:$0xff] }
 0x428   :  { %7275 = vmatpush1.bf16.msra.mxu1 %v8974_v57  ;;  %7112 = vmatprep.subr.bf16.mxu0 %v8981_v13  ;;  %v4000_v57 = vld [vmem:[#allocation6 + $0xe58] sm:$0xff]  ;;  %v9029_v15 = vcombine.high %v3999_v60, %v4003_v11 }
 0x429   :  { %7276 = vmatprep.subr.bf16.mxu1 %v8983_v14  ;;  %v4004_v13 = vld [vmem:[#allocation6 + $0xe78] sm:$0xff]  ;;  %v9020_v14 = vcombine.low %v3991_v62, %v3995_v63  ;;  %v4043_v62 = vld [vmem:[#allocation6 + $0xfb0] sm:$0xff] }
 0x42a   :  { %v9031_v16 = vcombine.high %v4000_v57, %v4004_v13  ;;  %v9030_v24 = vcombine.low %v4000_v57, %v4004_v13  ;;  %v4040_v63 = vld [vmem:[#allocation6 + $0xf98] sm:$0xff]  ;;  %v4062_v57 = vrot.slane %v9942_v5, %v595_v56 }
 0x42b   :  { %7113 = vmatpush1.bf16.msra.mxu0 %v8980_v19  ;;  %v4011_v19 = vld [vmem:[#allocation6 + $0xeb0] sm:$0xff]  ;;  %v4048_v13 = vld [vmem:[#allocation6 + $0xfd8] sm:$0xff] }
 0x42c   :  { %7277 = vmatpush1.bf16.msra.mxu1 %v8982_v4  ;;  %7114 = vmatprep.subr.bf16.mxu0 %v8989_v20  ;;  %v4008_v4 = vld [vmem:[#allocation6 + $0xe98] sm:$0xff]  ;;  %v9037_v27 = vcombine.high %v4007_v17, %v4011_v19 }
 0x42d   :  { %7278 = vmatprep.subr.bf16.mxu1 %v8991_v21  ;;  %v4012_v20 = vld [vmem:[#allocation6 + $0xeb8] sm:$0xff]  ;;  %v9028_v21 = vcombine.low %v3999_v60, %v4003_v11  ;;  %v4047_v60 = vld [vmem:[#allocation6 + $0xfd0] sm:$0xff] }
 0x42e   :  { %v9039_v25 = vcombine.high %v4008_v4, %v4012_v20  ;;  %v9038_v31 = vcombine.low %v4008_v4, %v4012_v20  ;;  %v4051_v11 = vld [vmem:[#allocation6 + $0xff0] sm:$0xff] }
 0x42f   :  { %7115 = vmatpush1.bf16.msra.mxu0 %v8988_v28  ;;  %v4019_v28 = vld [vmem:[#allocation6 + $0xef0] sm:$0xff]  ;;  %v9076_v56 = vcombine.low %v4047_v60, %v4051_v11 }
 0x430   :  { %7279 = vmatpush1.bf16.msra.mxu1 %v8990_v29  ;;  %7116 = vmatprep.subr.bf16.mxu0 %v8997_v37  ;;  %v4016_v29 = vld [vmem:[#allocation6 + $0xed8] sm:$0xff]  ;;  %v9045_v36 = vcombine.high %v4015_v23, %v4019_v28 }
 0x431   :  { %v9934_v40 = vpop.f32.mrb[8].mxu0  ;;  %v9936_v26 = vpop.f32.mrb[8].mxu1  ;;  %7280 = vmatprep.subr.bf16.mxu1 %v8999_v30  ;;  %v4020_v37 = vld [vmem:[#allocation6 + $0xef8] sm:$0xff]  ;;  %v9036_v30 = vcombine.low %v4007_v17, %v4011_v19  ;;  %v9077_v17 = vcombine.high %v4047_v60, %v4051_v11 }
 0x432   :  { %v9938_v44 = vpop.f32.mrb[9].mxu0  ;;  %v9940_v50 = vpop.f32.mrb[9].mxu1  ;;  %v9047_v32 = vcombine.high %v4016_v29, %v4020_v37  ;;  %v9046_v48 = vcombine.low %v4016_v29, %v4020_v37  ;;  %v9381_v29 = vld [vmem:[%s10182_s5 + $0xc8] sm:$0xff]   ;;  %v9409_v60 = vld [vmem:[%s10182_s5 + $0x1c0] sm:$0xff]  }
 0x433   :  { %v6816_v0 = vpop.f32.mrb[10].mxu0  ;;  %v6980_v52 = vpop.f32.mrb[10].mxu1  ;;  %7117 = vmatpush1.bf16.msra.mxu0 %v8996_v35  ;;  %v4027_v35 = vld [vmem:[#allocation6 + $0xf30] sm:$0xff]  ;;  %v9258_v4 = vadd.f32 %v9938_v44, %v4062_v57  ;;  %v9378_v44 = vld [vmem:[%s10182_s5] sm:$0xff]  }
 0x434   :  { %7281 = vmatpush1.bf16.msra.mxu1 %v8998_v34  ;;  %v6817_v55 = vpop.f32.mrb[11].mxu0  ;;  %v6981_v58 = vpop.f32.mrb[11].mxu1  ;;  %7118 = vmatprep.subr.bf16.mxu0 %v9005_v38  ;;  %v4024_v34 = vld [vmem:[#allocation6 + $0xf18] sm:$0xff]  ;;  %v9053_v49 = vcombine.high %v4023_v33, %v4027_v35  ;;  %v4035_v0 = vld [vmem:[#allocation6 + $0xf70] sm:$0xff] }
 0x435   :  { %7282 = vmatprep.subr.bf16.mxu1 %v9007_v41  ;;  %v4028_v38 = vld [vmem:[#allocation6 + $0xf38] sm:$0xff]  ;;  %v9044_v41 = vcombine.low %v4015_v23, %v4019_v28  ;;  %v9052_v55 = vcombine.low %v4023_v33, %v4027_v35  ;;  %v9380_v23 = vld [vmem:[%s10182_s5 + $0x48] sm:$0xff]   ;;  %v9387_v33 = vld [vmem:[%s10182_s5 + $0x90] sm:$0xff]  }
 0x436   :  { %v9055_v45 = vcombine.high %v4024_v34, %v4028_v38  ;;  %v4032_v52 = vld [vmem:[#allocation6 + $0xf58] sm:$0xff]  ;;  %v9054_v58 = vcombine.low %v4024_v34, %v4028_v38  ;;  %v9388_v35 = vld [vmem:[%s10182_s5 + $0x58] sm:$0xff]  }
 0x437   :  { %7119 = vmatpush1.bf16.msra.mxu0 %v9004_v54  ;;  %v4036_v54 = vld [vmem:[#allocation6 + $0xf78] sm:$0xff]  ;;  %v9389_v34 = vld [vmem:[%s10182_s5 + $0xd8] sm:$0xff]  }
 0x438   :  { %7283 = vmatpush1.bf16.msra.mxu1 %v9006_v59  ;;  %7120 = vmatprep.subr.bf16.mxu0 %v9013_v9  ;;  %v9061_v59 = vcombine.high %v4031_v10, %v4035_v0  ;;  %v9063_v9 = vcombine.high %v4032_v52, %v4036_v54  ;;  %v9390_v38 = vld [vmem:[%s10182_s5 + $0x18] sm:$0xff]   ;;  %v9410_v11 = vld [vmem:[%s10182_s5 + $0x100] sm:$0xff]  }
 0x439   :  { %7284 = vmatprep.subr.bf16.mxu1 %v9015_v51  ;;  %v4039_v51 = vld [vmem:[#allocation6 + $0xf90] sm:$0xff] }
 0x43b   :  { %7121 = vmatpush1.bf16.msra.mxu0 %v9012_v6  ;;  %v9060_v6 = vcombine.low %v4031_v10, %v4035_v0  ;;  %v9395_v10 = vld [vmem:[%s10182_s5 + $0xa0] sm:$0xff]   ;;  %v9396_v0 = vld [vmem:[%s10182_s5 + $0x68] sm:$0xff]  }
 0x43c   :  { %7285 = vmatpush1.bf16.msra.mxu1 %v9014_v61  ;;  %7122 = vmatprep.subr.bf16.mxu0 %v9021_v7  ;;  %v9062_v61 = vcombine.low %v4032_v52, %v4036_v54  ;;  %v9069_v7 = vcombine.high %v4039_v51, %v4043_v62  ;;  %v9397_v52 = vld [vmem:[%s10182_s5 + $0xe8] sm:$0xff]  }
 0x43d   :  { %7286 = vmatprep.subr.bf16.mxu1 %v9023_v8  ;;  %v9071_v8 = vcombine.high %v4040_v63, %v4044_v3  ;;  %v9398_v54 = vld [vmem:[%s10182_s5 + $0x28] sm:$0xff]  }
 0x43f   :  { %7123 = vmatpush1.bf16.msra.mxu0 %v9020_v14  ;;  %v4052_v14 = vld [vmem:[#allocation6 + $0xff8] sm:$0xff] }
 0x440   :  { %7287 = vmatpush1.bf16.msra.mxu1 %v9022_v2  ;;  %7124 = vmatprep.subr.bf16.mxu0 %v9029_v15  ;;  %v4070_v2 = vrot.slane %v9942_v5, %v603_v22  ;;  %v9068_v15 = vcombine.low %v4039_v51, %v4043_v62  ;;  %v9079_v19 = vcombine.high %v4048_v13, %v4052_v14  ;;  %v9376_v22 = vld [vmem:[%s10182_s5 + $0x40] sm:$0xff]   ;;  %v9401_v51 = vld [vmem:[%s10182_s5 + $0xf0] sm:$0xff]  }
 0x441   :  { %7288 = vmatprep.subr.bf16.mxu1 %v9031_v16  ;;  %v9070_v16 = vcombine.low %v4040_v63, %v4044_v3  ;;  %v9403_v63 = vld [vmem:[%s10182_s5 + $0xb0] sm:$0xff]  }
 0x442   :  { %v9260_v20 = vadd.f32 %v9940_v50, %v4070_v2  ;;  %v9379_v50 = vld [vmem:[%s10182_s5 + $0x80] sm:$0xff]  }
 0x443   :  { %7125 = vmatpush1.bf16.msra.mxu0 %v9028_v21  ;;  %v9078_v21 = vcombine.low %v4048_v13, %v4052_v14  ;;  %v9411_v13 = vld [vmem:[%s10182_s5 + $0x180] sm:$0xff]   ;;  %v9412_v14 = vld [vmem:[%s10182_s5 + $0x148] sm:$0xff]  }
 0x444   :  { %7289 = vmatpush1.bf16.msra.mxu1 %v9030_v24  ;;  %7126 = vmatprep.subr.bf16.mxu0 %v9037_v27  ;;  %v9377_v24 = vld [vmem:[%s10182_s5 + $0xc0] sm:$0xff]   ;;  %v7312_v27 = vmax.f32 %v9258_v4, 0.0  ;;  %v9417_v4 = vld [vmem:[%s10182_s5 + $0x1d0] sm:$0xff]  }
 0x445   :  { %7290 = vmatprep.subr.bf16.mxu1 %v9039_v25  ;;  %v7314_v25 = vmax.f32 %v9260_v20, 0.0  ;;  %v9418_v20 = vld [vmem:[%s10182_s5 + $0x110] sm:$0xff]  }
 0x446   :  { %v7320_v28 = vpack.c.bf16 %v7312_v27, %v7312_v27  ;;  %v9423_v27 = vld [vmem:[%s10182_s5 + $0x198] sm:$0xff]  }
 0x447   :  { %7127 = vmatpush1.bf16.msra.mxu0 %v9036_v30  ;;  %v7322_v37 = vpack.c.bf16 %v7314_v25, %v7314_v25  ;;  %v9382_v30 = vld [vmem:[%s10182_s5 + $0x8] sm:$0xff]   ;;  %v9424_v25 = vld [vmem:[%s10182_s5 + $0x160] sm:$0xff]  }
 0x448   :  { %7291 = vmatpush1.bf16.msra.mxu1 %v9038_v31  ;;  %7128 = vmatprep.subr.bf16.mxu0 %v9045_v36  ;;  %v9383_v31 = vld [vmem:[%s10182_s5 + $0x88] sm:$0xff]   ;;  %v9384_v36 = vld [vmem:[%s10182_s5 + $0x50] sm:$0xff]  }
 0x449   :  { %7292 = vmatprep.subr.bf16.mxu1 %v9047_v32  ;;  %v9386_v32 = vld [vmem:[%s10182_s5 + $0x10] sm:$0xff]  }
 0x44b   :  { %7129 = vmatpush1.bf16.msra.mxu0 %v9044_v41  ;;  %v9391_v41 = vld [vmem:[%s10182_s5 + $0x98] sm:$0xff]  }
 0x44c   :  { %7293 = vmatpush1.bf16.msra.mxu1 %v9046_v48  ;;  %7130 = vmatprep.subr.bf16.mxu0 %v9053_v49  ;;  %v9392_v48 = vld [vmem:[%s10182_s5 + $0x60] sm:$0xff]  }
 0x44d   :  { %7294 = vmatprep.subr.bf16.mxu1 %v9055_v45  ;;  %v9393_v49 = vld [vmem:[%s10182_s5 + $0xe0] sm:$0xff]  }
 0x44e   :  { %v9394_v45 = vld [vmem:[%s10182_s5 + $0x20] sm:$0xff]  }
 0x44f   :  { %7131 = vmatpush1.bf16.msra.mxu0 %v9052_v55  ;;  %v4058_v55 = vrot.slane %v9942_v5, %v591_v12  ;;  %v9402_v12 = vld [vmem:[%s10182_s5 + $0x30] sm:$0xff]  }
 0x450   :  { %7295 = vmatpush1.bf16.msra.mxu1 %v9054_v58  ;;  %7132 = vmatprep.subr.bf16.mxu0 %v9061_v59  ;;  %v9399_v58 = vld [vmem:[%s10182_s5 + $0xa8] sm:$0xff]   ;;  %v9400_v59 = vld [vmem:[%s10182_s5 + $0x70] sm:$0xff]  }
 0x451   :  { %7296 = vmatprep.subr.bf16.mxu1 %v9063_v9  ;;  %v4066_v9 = vrot.slane %v9942_v5, %v599_v47  ;;  %v9257_v62 = vadd.f32 %v9934_v40, %v4058_v55  ;;  %v9404_v47 = vld [vmem:[%s10182_s5 + $0x78] sm:$0xff]  }
 0x452   :  { %v9406_v40 = vld [vmem:[%s10182_s5 + $0x38] sm:$0xff]  }
 0x453   :  { %7133 = vmatpush1.bf16.msra.mxu0 %v9060_v6  ;;  %v9259_v3 = vadd.f32 %v9936_v26, %v4066_v9  ;;  %v9405_v6 = vld [vmem:[%s10182_s5 + $0xf8] sm:$0xff]   ;;  %v9408_v26 = vld [vmem:[%s10182_s5 + $0x140] sm:$0xff]  }
 0x454   :  { %7297 = vmatpush1.bf16.msra.mxu1 %v9062_v61  ;;  %7134 = vmatprep.subr.bf16.mxu0 %v9069_v7  ;;  %v7311_v61 = vmax.f32 %v9257_v62, 0.0  ;;  %v9407_v7 = vld [vmem:[%s10182_s5 + $0xb8] sm:$0xff]  }
 0x455   :  { %7298 = vmatprep.subr.bf16.mxu1 %v9071_v8  ;;  %v7313_v8 = vmax.f32 %v9259_v3, 0.0 }
 0x456   :  { %v7319_v57 = vpack.c.bf16 %v7311_v61, %v7311_v61 }
 0x457   :  { %7135 = vmatpush1.bf16.msra.mxu0 %v9068_v15  ;;  %v7321_v2 = vpack.c.bf16 %v7313_v8, %v7313_v8  ;;  %v9413_v15 = vld [vmem:[%s10182_s5 + $0x1c8] sm:$0xff]  }
 0x458   :  { %7299 = vmatpush1.bf16.msra.mxu1 %v9070_v16  ;;  %7136 = vmatprep.subr.bf16.mxu0 %v9077_v17  ;;  %v9414_v16 = vld [vmem:[%s10182_s5 + $0x108] sm:$0xff]  }
 0x459   :  { %7300 = vmatprep.subr.bf16.mxu1 %v9079_v19  ;;  %v9415_v17 = vld [vmem:[%s10182_s5 + $0x188] sm:$0xff]   ;;  %v9416_v19 = vld [vmem:[%s10182_s5 + $0x150] sm:$0xff]  }
 0x45b   :  { %7137 = vmatpush1.bf16.msra.mxu0 %v9076_v56  ;;  %v9419_v56 = vld [vmem:[%s10182_s5 + $0x190] sm:$0xff]  }
 0x45c   :  { %7301 = vmatpush1.bf16.msra.mxu1 %v9078_v21  ;;  %9150 = vmatprep.subr.bf16.mxu0 %v9376_v22  ;;  %v9420_v21 = vld [vmem:[%s10182_s5 + $0x158] sm:$0xff]  }
 0x45d   :  { %9172 = vmatprep.subr.bf16.mxu1 %v9377_v24  ;;  %v9421_v22 = vld [vmem:[%s10182_s5 + $0x1d8] sm:$0xff]  }
 0x45e   :  { %7139 = vmatmul.mubr.bf16.vlgmr.msra.gmra.mrb[12].mxu0 %v9916_v1  ;;  %v9422_v24 = vld [vmem:[%s10182_s5 + $0x118] sm:$0xff]  }
 0x45f   :  { %7303 = vmatmul.mubr.bf16.vlgmr.msra.gmra.mrb[12].mxu1 %v9916_v1  ;;  %9151 = vmatpush3.bf16.msra.mxu0 %v9378_v44  ;;  %v9385_v1 = vld [vmem:[%s10182_s5 + $0xd0] sm:$0xff]   ;;  %v9425_v44 = vld [vmem:[%s10182_s5 + $0x1e0] sm:$0xff]  }
 0x460   :  { %7878 = vmatprep.mubr.bf16.mxu0 %v7320_v28  ;;  %9173 = vmatpush3.bf16.msra.mxu1 %v9379_v50  ;;  %v9426_v50 = vld [vmem:[%s10182_s5 + $0x120] sm:$0xff]   ;;  %v9428_v28 = vld [vmem:[%s10182_s5 + $0x168] sm:$0xff]  }
 0x461   :  { %7918 = vmatprep.mubr.bf16.mxu1 %v7322_v37  ;;  %9152 = vmatprep.subr.bf16.mxu0 %v9380_v23  ;;  %v9427_v23 = vld [vmem:[%s10182_s5 + $0x1a0] sm:$0xff]   ;;  %v9430_v37 = vld [vmem:[%s10182_s5 + $0x128] sm:$0xff]  }
 0x462   :  { %9174 = vmatprep.subr.bf16.mxu1 %v9381_v29  ;;  %v9429_v29 = vld [vmem:[%s10182_s5 + $0x1e8] sm:$0xff]  }
 0x463   :  { %9153 = vmatpush3.bf16.msra.mxu0 %v9382_v30  ;;  %v9431_v30 = vld [vmem:[%s10182_s5 + $0x1a8] sm:$0xff]  }
 0x464   :  { %9175 = vmatpush3.bf16.msra.mxu1 %v9383_v31  ;;  %9154 = vmatprep.subr.bf16.mxu0 %v9384_v36  ;;  %v9432_v31 = vld [vmem:[%s10182_s5 + $0x170] sm:$0xff]  }
 0x465   :  { %9176 = vmatprep.subr.bf16.mxu1 %v9385_v1  ;;  %v9433_v36 = vld [vmem:[%s10182_s5 + $0x1f0] sm:$0xff]  }
 0x466   :  { %v9434_v1 = vld [vmem:[%s10182_s5 + $0x130] sm:$0xff]  }
 0x467   :  { %9155 = vmatpush3.bf16.msra.mxu0 %v9386_v32  ;;  %v9435_v32 = vld [vmem:[%s10182_s5 + $0x1b0] sm:$0xff]  }
 0x468   :  { %9177 = vmatpush3.bf16.msra.mxu1 %v9387_v33  ;;  %9156 = vmatprep.subr.bf16.mxu0 %v9388_v35  ;;  %v9436_v33 = vld [vmem:[%s10182_s5 + $0x178] sm:$0xff]  }
 0x469   :  { %9178 = vmatprep.subr.bf16.mxu1 %v9389_v34  ;;  %v9437_v35 = vld [vmem:[%s10182_s5 + $0x1f8] sm:$0xff]  }
 0x46a   :  { %v9438_v34 = vld [vmem:[%s10182_s5 + $0x138] sm:$0xff]  }
 0x46b   :  { %9157 = vmatpush3.bf16.msra.mxu0 %v9390_v38  ;;  %v9439_v38 = vld [vmem:[%s10182_s5 + $0x1b8] sm:$0xff]  }
 0x46c   :  { %9179 = vmatpush3.bf16.msra.mxu1 %v9391_v41  ;;  %9158 = vmatprep.subr.bf16.mxu0 %v9392_v48  ;;  %v8028_v41 = vld [vmem:[%s10186_s9] sm:$0xff]  ;;  %v4074_v48 = vrot.slane %v9942_v5, %v607_v42 }
 0x46d   :  { %9180 = vmatprep.subr.bf16.mxu1 %v9393_v49  ;;  %8030 = vrot.lane.b32.xlu0 %v8028_v41, %s9616_s23  ;;  %v4082_v49 = vrot.slane %v9942_v5, %v615_v18  ;;  %s9623_s23 = smov 96  }
 0x46f   :  { %9159 = vmatpush3.bf16.msra.mxu0 %v9394_v45  ;;  %v4078_v45 = vrot.slane %v9942_v5, %v611_v53 }
 0x470   :  { %9181 = vmatpush3.bf16.msra.mxu1 %v9395_v10  ;;  %9160 = vmatprep.subr.bf16.mxu0 %v9396_v0  ;;  %v4086_v10 = vrot.slane %v9942_v5, %v619_v43 }
 0x471   :  { %9182 = vmatprep.subr.bf16.mxu1 %v9397_v52 }
 0x473   :  { %9161 = vmatpush3.bf16.msra.mxu0 %v9398_v54 }
 0x474   :  { %9183 = vmatpush3.bf16.msra.mxu1 %v9399_v58  ;;  %9162 = vmatprep.subr.bf16.mxu0 %v9400_v59 }
 0x475   :  { %9184 = vmatprep.subr.bf16.mxu1 %v9401_v51 }
 0x477   :  { %9163 = vmatpush3.bf16.msra.mxu0 %v9402_v12 }
 0x478   :  { %9185 = vmatpush3.bf16.msra.mxu1 %v9403_v63  ;;  %9164 = vmatprep.subr.bf16.mxu0 %v9404_v47 }
 0x479   :  { %9186 = vmatprep.subr.bf16.mxu1 %v9405_v6 }
 0x47b   :  { %9165 = vmatpush3.bf16.msra.mxu0 %v9406_v40 }
 0x47c   :  { %9187 = vmatpush3.bf16.msra.mxu1 %v9407_v7  ;;  %9194 = vmatprep.subr.bf16.mxu0 %v9408_v26  ;;  %v9080_v7 = vld [vmem:[#allocation9] ss:$0 sm:$0xff] }
 0x47d   :  { %9216 = vmatprep.subr.bf16.mxu1 %v9409_v60 }
 0x47e   :  { %7879 = vmatmul.mubr.bf16.vlgmr.msra.gmra.mrb[16].mxu0 %v7319_v57 }
 0x47f   :  { %7919 = vmatmul.mubr.bf16.vlgmr.msra.gmra.mrb[16].mxu1 %v7321_v2  ;;  %9195 = vmatpush3.bf16.msra.mxu0 %v9410_v11 }
 0x480   :  { %9217 = vmatpush3.bf16.msra.mxu1 %v9411_v13  ;;  %9196 = vmatprep.subr.bf16.mxu0 %v9412_v14 }
 0x481   :  { %9218 = vmatprep.subr.bf16.mxu1 %v9413_v15 }
 0x483   :  { %9197 = vmatpush3.bf16.msra.mxu0 %v9414_v16 }
 0x484   :  { %9219 = vmatpush3.bf16.msra.mxu1 %v9415_v17  ;;  %9198 = vmatprep.subr.bf16.mxu0 %v9416_v19  ;;  %v9440_v17 = vld [vmem:[#allocation10] sm:$0xff]   ;;  %v9621_v19 = vmov 0.0  }
 0x485   :  { %9220 = vmatprep.subr.bf16.mxu1 %v9417_v4 }
 0x487   :  { %9199 = vmatpush3.bf16.msra.mxu0 %v9418_v20 }
 0x488   :  { %9221 = vmatpush3.bf16.msra.mxu1 %v9419_v56  ;;  %9200 = vmatprep.subr.bf16.mxu0 %v9420_v21 }
 0x489   :  { %9222 = vmatprep.subr.bf16.mxu1 %v9421_v22 }
 0x48b   :  { %9201 = vmatpush3.bf16.msra.mxu0 %v9422_v24 }
 0x48c   :  { %9223 = vmatpush3.bf16.msra.mxu1 %v9423_v27  ;;  %9202 = vmatprep.subr.bf16.mxu0 %v9424_v25 }
 0x48d   :  { %9224 = vmatprep.subr.bf16.mxu1 %v9425_v44 }
 0x48f   :  { %9203 = vmatpush3.bf16.msra.mxu0 %v9426_v50 }
 0x490   :  { %9225 = vmatpush3.bf16.msra.mxu1 %v9427_v23  ;;  %9204 = vmatprep.subr.bf16.mxu0 %v9428_v28 }
 0x491   :  { %9226 = vmatprep.subr.bf16.mxu1 %v9429_v29 }
 0x493   :  { %9205 = vmatpush3.bf16.msra.mxu0 %v9430_v37 }
 0x494   :  { %9227 = vmatpush3.bf16.msra.mxu1 %v9431_v30  ;;  %9206 = vmatprep.subr.bf16.mxu0 %v9432_v31 }
 0x495   :  { %9228 = vmatprep.subr.bf16.mxu1 %v9433_v36 }
 0x497   :  { %9207 = vmatpush3.bf16.msra.mxu0 %v9434_v1 }
 0x498   :  { %9229 = vmatpush3.bf16.msra.mxu1 %v9435_v32  ;;  %9208 = vmatprep.subr.bf16.mxu0 %v9436_v33  ;;  %v9441_v33 = vld [vmem:[#allocation10 + $0x8] sm:$0xff]  }
 0x499   :  { %9230 = vmatprep.subr.bf16.mxu1 %v9437_v35 }
 0x49b   :  { %9209 = vmatpush3.bf16.msra.mxu0 %v9438_v34 }
 0x49c   :  { %9231 = vmatpush3.bf16.msra.mxu1 %v9439_v38  ;;  %9241 = vmatprep.subr.bf16.mxu0 %v9621_v19  ;;  %v8023_v38 = vand.u32 127, %v589_v39 }
 0x49e   :  { %vm8024_vm2 = vcmp.lt.s32.totalorder %v8023_v38, 32 }
 0x531   :  { %v7140_v0 = vpop.f32.mrb[12].mxu0 }
 0x532   :  { %v9261_v52 = vadd.f32 %v7140_v0, %v4074_v48  ;;  %v7304_v54 = vpop.f32.mrb[12].mxu1  ;;  %v7142_v55 = vpop.f32.mrb[13].mxu0 }
 0x533   :  { %v9263_v58 = vadd.f32 %v7304_v54, %v4082_v49  ;;  %v9262_v59 = vadd.f32 %v7142_v55, %v4078_v45  ;;  %v7306_v9 = vpop.f32.mrb[13].mxu1  ;;  %v7144_v42 = vpop.f32.mrb[14].mxu0 }
 0x534   :  { %v7315_v51 = vmax.f32 %v9261_v52, 0.0  ;;  %v9264_v12 = vadd.f32 %v7306_v9, %v4086_v10  ;;  %v7308_v62 = vpop.f32.mrb[14].mxu1  ;;  %v7145_v18 = vpop.f32.mrb[15].mxu0  ;;  %v9146_v9 = vld [vmem:[#allocation12] ss:$0 sm:$0xff] }
 0x535   :  { %v7317_v63 = vmax.f32 %v9263_v58, 0.0  ;;  %v7316_v47 = vmax.f32 %v9262_v59, 0.0  ;;  %v7309_v3 = vpop.f32.mrb[15].mxu1  ;;  %v8031_v10 = vpop.permute.xlu0 %8030 }
 0x536   :  { %v7318_v53 = vmax.f32 %v9264_v12, 0.0  ;;  %v7323_v46 = vpack.c.bf16 %v7315_v51, %v7315_v51 }
 0x537   :  { %v7324_v6 = vpack.c.bf16 %v7316_v47, %v7316_v47  ;;  %v7325_v43 = vpack.c.bf16 %v7317_v63, %v7317_v63 }
 0x538   :  { %v7326_v40 = vpack.c.bf16 %v7318_v53, %v7318_v53 }
 0x539   :  { %7958 = vmatprep.mubr.bf16.mxu0 %v7324_v6 }
 0x53a   :  { %7998 = vmatprep.mubr.bf16.mxu1 %v7326_v40  ;;  %7959 = vmatmul.mubr.bf16.vlgmr.msra.gmra.mrb[20].mxu0 %v7323_v46 }
 0x53b   :  { %7999 = vmatmul.mubr.bf16.vlgmr.msra.gmra.mrb[20].mxu1 %v7325_v43  ;;  %9242 = vmatpush3.bf16.msra.mxu0 %v9440_v17 }
 0x53c   :  { %9243 = vmatprep.subr.bf16.mxu0 %v9621_v19  ;;  %9245 = vmatprep.mubr.msk.bf16.mxu0 %vm9622_vm0, %v9621_v19 }
 0x53f   :  { %9244 = vmatpush3.bf16.msra.mxu0 %v9441_v33 }
 0x551   :  { %v9166_v5 = vpop.f32.mrb[16].mxu0 }
 0x552   :  { %v9188_v61 = vpop.f32.mrb[16].mxu1  ;;  %v9167_v26 = vpop.f32.mrb[17].mxu0 }
 0x553   :  { %v9168_v8 = vadd.f32 %v9167_v26, %v9166_v5  ;;  %v9189_v60 = vpop.f32.mrb[17].mxu1  ;;  %v9169_v11 = vpop.f32.mrb[18].mxu0 }
 0x554   :  { %v9190_v57 = vadd.f32 %v9189_v60, %v9188_v61  ;;  %v9191_v13 = vpop.f32.mrb[18].mxu1  ;;  %v9170_v14 = vpop.f32.mrb[19].mxu0 }
 0x555   :  { %v7881_v2 = vadd.f32 %v9168_v8, %v9080_v7  ;;  %v9192_v15 = vpop.f32.mrb[19].mxu1 }
 0x557   :  { %v7921_v16 = vadd.f32 %v9190_v57, %v7881_v2 }
 0x60d   :  { %v9210_v4 = vpop.f32.mrb[20].mxu0 }
 0x60e   :  { %v9232_v20 = vpop.f32.mrb[20].mxu1  ;;  %v9211_v56 = vpop.f32.mrb[21].mxu0 }
 0x60f   :  { %v9212_v21 = vadd.f32 %v9211_v56, %v9210_v4  ;;  %v9233_v22 = vpop.f32.mrb[21].mxu1  ;;  %v9213_v24 = vpop.f32.mrb[22].mxu0 }
 0x610   :  { %v9234_v27 = vadd.f32 %v9233_v22, %v9232_v20  ;;  %v9235_v25 = vpop.f32.mrb[22].mxu1  ;;  %v9214_v44 = vpop.f32.mrb[23].mxu0 }
 0x611   :  { %v7961_v50 = vadd.f32 %v9212_v21, %v7921_v16  ;;  %v9236_v23 = vpop.f32.mrb[23].mxu1 }
 0x613   :  { %v8001_v28 = vadd.f32 %v9234_v27, %v7961_v50 }
 0x615   :  { %v9145_v29 = vadd.f32 -5.0, %v8001_v28 }
 0x617   :  { %v8008_v37 = vand.u32 2147483647, %v9145_v29  ;;  %v8007_v45 = vmax.f32 %v9145_v29, 0.0 }
 0x619   :  { %v8009_v30 = vsub.f32 0.0, %v8008_v37 }
 0x61b   :  { %v8010_v31 = vmul.f32 1.442695, %v8009_v30 }
 0x61d   :  { %9442 = vpow2.f32 %v8010_v31 }
 0x627   :  { %v9443_v36 = vpop.eup %9442 }
 0x628   :  { %v8012_v1 = vadd.f32 1.0, %v9443_v36  ;;  %v8015_v32 = vmul.f32 -0.5, %v9443_v36  ;;  %v8018_v34 = vand.u32 2147483647, %v9443_v36 }
 0x62a   :  { %9444 = vlog2.f32 %v8012_v1  ;;  %v8016_v35 = vadd.f32 1.0, %v8015_v32  ;;  %vm8019_vm1 = vcmp.lt.f32.partialorder %v8018_v34, 0.0004427343 }
 0x62c   :  { %v8017_v49 = vmul.f32 %v9443_v36, %v8016_v35 }
 0x634   :  { %v9445_v41 = vpop.eup %9444 }
 0x635   :  { %v8014_v48 = vmul.f32 0.6931472, %v9445_v41 }
 0x637   :  { %v8020_v0 = vsel %vm8019_vm1, %v8017_v49, %v8014_v48 }
 0x638   :  { %v8021_v52 = vadd.f32 %v8020_v0, %v8007_v45 }
 0x63a   :  { %v8025_v54 = vsel %vm8024_vm2, %v8001_v28, %v8021_v52  ;;  %v8033_v55 = vmul.f32 %v8031_v10, %v8021_v52 }
 0x63b   :  { %8027 = vst.msk [vmem:[%s10187_s10] sm:$0xff] %vm8026_vm3, %v8025_v54 }
 0x63c   :  { %8035 = vrot.lane.b32.xlu0 %v8033_v55, %s9623_s23 }
 0x6ae   :  { %v8036_v58 = vpop.permute.xlu0 %8035 }
 0x6af   :  { %v8038_v39 = vadd.f32 %v8036_v58, %v8001_v28 }
 0x6b1   :  { %v8039_v59 = vpack.c.bf16 %v8038_v39, %v8038_v39 }
 0x6b3   :  { %9246 = vmatmul.mubr.msk.bf16.vlgmr.msra.gmra.mrb[24].mxu0 %vm8063_vm4, %v8039_v59 }
 0x786   :  { %v8101_v42 = vpop.f32.mrb[24].mxu0 }
 0x787   :  { %v8102_v51 = vadd.f32 %v9146_v9, %v8101_v42  ;;  %v9247_v12 = vpop.f32.mrb[25].mxu0 }
 0x788   :  { %v8104_v62 = vpop.f32.mrb[26].mxu0 }
 0x789   :  { %8107 = vst [vmem:[%s10188_s11] sm:$0xff] %v8102_v51  ;;  %v9248_v18 = vpop.f32.mrb[27].mxu0 }
 0x78a   :  { %8116 = vsyncpa [#allocation3], 1 }
 0x78b   :  { %8117 = vsyncpa [#allocation5], 1 }
 0x78c   :  { %8118 = vsyncpa [#allocation8], 1 }
 0x78d   :  { %8119 = vsyncpa [#allocation11], 1 }

</bundles_post_ra>
